<compile_context>
chip_gen: v5e
topology: v5e:2x2
jax: 0.10.0
libtpu: 0.0.40
codegen_flags: <defaults>
</compile_context>

<pallas_src>
import functools
import math

import jax
import jax.numpy as jnp
from jax.experimental import pallas as pl
from jax.experimental.pallas import tpu as pltpu

# ---- module hyperparameters (defaults from CONV_SENSORS.__init__) -----------
INPUT_DIM = 3
NUM_FILTER = 64
KERNEL_SIZE = 500
STRIDE = 100

N_TAPS = KERNEL_SIZE // STRIDE            # 5  (requires KERNEL_SIZE % STRIDE == 0)
BLOCK_RAW = STRIDE * INPUT_DIM            # 300 values per non-overlapping block
F_PAD = 128                               # filters padded 64 -> 128 (lane-dense)


def _elu(y):
    # ELU(alpha=1): y if y > 0 else exp(y) - 1 (clamp the unselected branch).
    return jnp.where(y > 0.0, y, jnp.exp(jnp.minimum(y, 0.0)) - 1.0)


# ---- Pallas kernel -----------------------------------------------------------
def _conv_sensors_kernel(x_ref, w_ref, b_ref, o_ref, *, t_out, n_taps, f_pad, bb):
    # x_ref: [BB, nb, 300]            input blocks for this batch tile
    # w_ref: [300, n_taps * f_pad]    tap-stacked weights (VMEM-resident)
    # b_ref: [1, f_pad]               bias (f32, zero-padded columns)
    # o_ref: [BB, t_out, f_pad]       lane-dense f32 output
    w = w_ref[...]
    b = b_ref[...]
    for i in range(bb):                                       # static unroll over batch tile
        y = jnp.dot(x_ref[i], w, preferred_element_type=jnp.float32)  # [nb, n_taps*f_pad]
        acc = y[0:t_out, 0:f_pad]
        for j in range(1, n_taps):                            # shift-add narrow tap outputs
            acc = acc + y[j:j + t_out, j * f_pad:(j + 1) * f_pad]
        o_ref[i] = _elu(acc + b).astype(o_ref.dtype)


# ---- wrapper -----------------------------------------------------------------
def conv_sensors_forward(data_sensor, w_stack, bias2d, *, batch_tile=None):
    """data_sensor: [B, L, INPUT_DIM] -> [B, T_out, NUM_FILTER] (float32).

    w_stack: [300, N_TAPS * F_PAD] (f32 or bf16), bias2d: [1, F_PAD] f32.
    """
    B, L, C = data_sensor.shape
    assert C == INPUT_DIM, C
    assert L >= KERNEL_SIZE, L
    # TODO(synk): the tap decomposition assumes kernel_size % stride == 0 (true
    # for the module defaults 500/100); other configs would need an im2col path.
    assert KERNEL_SIZE % STRIDE == 0

    compute_dtype = w_stack.dtype
    t_out = (L - KERNEL_SIZE) // STRIDE + 1
    nb = t_out + N_TAPS - 1                 # exactly the blocks any window reads
    # (t_out - 1)*STRIDE + KERNEL_SIZE <= L  =>  nb*STRIDE <= L: no tail pad needed.
    x = data_sensor[:, :nb * STRIDE, :].astype(compute_dtype)
    blocks = x.reshape(B, nb, BLOCK_RAW)    # [B, nb, 300]; no lane pad

    # Batch tile: amortize per-step overhead (8-32), keep grid >= 2 when B >= 2
    # (both v7x TensorCores busy), and cap the input tile at ~4 MiB so the
    # double-buffered pipeline stays far below the scoped-VMEM limit (v7x: 32 MiB).
    if batch_tile is None:
        dsize = jnp.dtype(compute_dtype).itemsize
        vmem_cap_rows = max(1, (4 << 20) // (nb * BLOCK_RAW * dsize))
        batch_tile = max(1, min(32, pl.cdiv(B, 2), vmem_cap_rows))
    bb = min(batch_tile, B)
    grid = pl.cdiv(B, bb)                   # partial last block handled by Pallas masking

    kernel = functools.partial(_conv_sensors_kernel,
                               t_out=t_out, n_taps=N_TAPS, f_pad=F_PAD, bb=bb)
    out = pl.pallas_call(
        kernel,
        out_shape=jax.ShapeDtypeStruct((B, t_out, F_PAD), jnp.float32),
        grid=(grid,),
        in_specs=[
            # last two block dims equal the full array dims -> legal without (8,128) pad
            pl.BlockSpec((bb, nb, BLOCK_RAW), lambda i: (i, 0, 0)),
            # NOTE: if profiling shows exposed input DMA, add
            #   pipeline_mode=pl.Buffered(3) to the x BlockSpec above.
            pl.BlockSpec((BLOCK_RAW, N_TAPS * F_PAD), lambda i: (0, 0)),
            pl.BlockSpec((1, F_PAD), lambda i: (0, 0)),
        ],
        out_specs=pl.BlockSpec((bb, t_out, F_PAD), lambda i: (i, 0, 0)),
        compiler_params=pltpu.CompilerParams(dimension_semantics=("parallel",)),
    )(blocks, w_stack, bias2d)
    return out[:, :, :NUM_FILTER]


# ---- parameter init (mirrors nn.Conv1d) + re-layout for the kernel -----------
def init_params(key):
    kw, kb = jax.random.split(key)
    fan_in = INPUT_DIM * KERNEL_SIZE
    bound = 1.0 / math.sqrt(fan_in)
    weight = jax.random.uniform(kw, (NUM_FILTER, INPUT_DIM, KERNEL_SIZE),
                                jnp.float32, -bound, bound)   # torch [O, C, K]
    bias = jax.random.uniform(kb, (NUM_FILTER,), jnp.float32, -bound, bound)
    return {"weight": weight, "bias": bias}


def pack_params(params, compute_dtype=jnp.float32):
    """Torch conv weight [O, C, K] -> tap-stacked [300, N_TAPS*128] (+ padded bias)."""
    w = params["weight"]
    # window flatten order is (k, c): W_flat[k*C + c, o] = w[o, c, k]
    w_flat = jnp.transpose(w, (2, 1, 0)).reshape(KERNEL_SIZE * INPUT_DIM, NUM_FILTER)
    w_taps = w_flat.reshape(N_TAPS, BLOCK_RAW, NUM_FILTER)            # [5, 300, 64]
    w_taps = jnp.pad(w_taps, ((0, 0), (0, 0), (0, F_PAD - NUM_FILTER)))  # lane-dense N
    w_stack = jnp.transpose(w_taps, (1, 0, 2)).reshape(BLOCK_RAW, N_TAPS * F_PAD)
    bias2d = jnp.pad(params["bias"], (0, F_PAD - NUM_FILTER))[None, :]
    return {"w_stack": w_stack.astype(compute_dtype),
            "bias2d": bias2d.astype(jnp.float32)}


# ---- pure-JAX reference (for correctness check) -------------------------------
def reference_forward(data_sensor, params):
    lhs = jnp.transpose(data_sensor, (0, 2, 1))               # [B, C, L]
    y = jax.lax.conv_general_dilated(
        lhs, params["weight"], window_strides=(STRIDE,), padding="VALID",
        dimension_numbers=("NCH", "OIH", "NCH"),
        precision=jax.lax.Precision.HIGHEST)
    y = y + params["bias"][None, :, None]
    y = jax.nn.elu(y)
    return jnp.transpose(y, (0, 2, 1))                        # [B, T_out, O]


if __name__ == "__main__":
    B, L = 8, 1000                        # small: T_out = (1000-500)//100+1 = 6
    key = jax.random.PRNGKey(0)
    k_params, k_x = jax.random.split(key)

    params = init_params(k_params)
    data_sensor = jax.random.normal(k_x, (B, L, INPUT_DIM), jnp.float32)
    ref = reference_forward(data_sensor, params)
    t_out = (L - KERNEL_SIZE) // STRIDE + 1

    fwd = jax.jit(conv_sensors_forward)   # fuse the wrapper slice/cast/reshape

    # float32 path (tight tolerance)
    packed32 = pack_params(params, jnp.float32)
    out32 = jax.block_until_ready(fwd(data_sensor, packed32["w_stack"], packed32["bias2d"]))
    assert out32.shape == (B, t_out, NUM_FILTER), out32.shape
    assert jnp.allclose(out32, ref, atol=1e-4, rtol=1e-4), \
        float(jnp.max(jnp.abs(out32 - ref)))

    # bfloat16 path (perf recommendation for v6e/v7x; f32 accumulation keeps
    # error small for fan-in 1500 — also runs fine on v5e's MXU)
    packed16 = pack_params(params, jnp.bfloat16)
    out16 = jax.block_until_ready(fwd(data_sensor, packed16["w_stack"], packed16["bias2d"]))
    assert out16.shape == (B, t_out, NUM_FILTER), out16.shape
    assert jnp.allclose(out16, ref, atol=5e-2, rtol=5e-2), \
        float(jnp.max(jnp.abs(out16 - ref)))

    print("KERNEL_OK")
</pallas_src>

<mosaic_0001>
module attributes {stable_mosaic.version = 11 : i64} {
  func.func @_conv_sensors_kernel(%arg0: i32, %arg1: memref<4x10x300xf32, #tpu.memory_space<vmem>>, %arg2: memref<300x640xf32, #tpu.memory_space<vmem>>, %arg3: memref<1x128xf32, #tpu.memory_space<vmem>>, %arg4: memref<4x6x128xf32, #tpu.memory_space<vmem>>) attributes {dimension_semantics = [#tpu.dimension_semantics<parallel>], iteration_bounds = array<i64: 2>, scalar_prefetch = 0 : i64, scratch_operands = 0 : i64, tpu.core_type = #tpu.core_type<tc>, window_params = [{transform_indices = @transform_0, window_bounds = array<i64: 4, 10, 300>}, {pipeline_mode = #tpu.pipeline_mode<synchronous>, transform_indices = @transform_1, window_bounds = array<i64: 300, 640>}, {pipeline_mode = #tpu.pipeline_mode<synchronous>, transform_indices = @transform_2, window_bounds = array<i64: 1, 128>}, {transform_indices = @transform_3, window_bounds = array<i64: 4, 6, 128>}]} {
    %c0 = arith.constant 0 : index
    %c0_0 = arith.constant 0 : index
    %0 = vector.load %arg2[%c0, %c0_0] : memref<300x640xf32, #tpu.memory_space<vmem>>, vector<300x640xf32>
    %c0_1 = arith.constant 0 : index
    %c0_2 = arith.constant 0 : index
    %1 = vector.load %arg3[%c0_1, %c0_2] : memref<1x128xf32, #tpu.memory_space<vmem>>, vector<1x128xf32>
    %c0_3 = arith.constant 0 : index
    %c0_4 = arith.constant 0 : index
    %c0_5 = arith.constant 0 : index
    %2 = vector.load %arg1[%c0_3, %c0_4, %c0_5] : memref<4x10x300xf32, #tpu.memory_space<vmem>>, vector<1x10x300xf32>
    %3 = vector.shape_cast %2 : vector<1x10x300xf32> to vector<10x300xf32>
    %cst = arith.constant dense<0.000000e+00> : vector<10x640xf32>
    %4 = tpu.matmul %3, %0, %cst {dimension_numbers = #tpu.dot_dimension_numbers<[1], [0], [0], [1], [0, 0, 1, 1], [], []>} : vector<10x300xf32>, vector<300x640xf32>, vector<10x640xf32> -> vector<10x640xf32>
    %5 = vector.extract_strided_slice %4 {offsets = [0, 0], sizes = [6, 128], strides = [1, 1]} : vector<10x640xf32> to vector<6x128xf32>
    %6 = vector.extract_strided_slice %4 {offsets = [1, 128], sizes = [6, 128], strides = [1, 1]} : vector<10x640xf32> to vector<6x128xf32>
    %7 = arith.addf %5, %6 : vector<6x128xf32>
    %8 = vector.extract_strided_slice %4 {offsets = [2, 256], sizes = [6, 128], strides = [1, 1]} : vector<10x640xf32> to vector<6x128xf32>
    %9 = arith.addf %7, %8 : vector<6x128xf32>
    %10 = vector.extract_strided_slice %4 {offsets = [3, 384], sizes = [6, 128], strides = [1, 1]} : vector<10x640xf32> to vector<6x128xf32>
    %11 = arith.addf %9, %10 : vector<6x128xf32>
    %12 = vector.extract_strided_slice %4 {offsets = [4, 512], sizes = [6, 128], strides = [1, 1]} : vector<10x640xf32> to vector<6x128xf32>
    %13 = arith.addf %11, %12 : vector<6x128xf32>
    %14 = vector.broadcast %1 : vector<1x128xf32> to vector<6x128xf32>
    %15 = arith.addf %13, %14 : vector<6x128xf32>
    %cst_6 = arith.constant 0.000000e+00 : f32
    %16 = vector.broadcast %cst_6 : f32 to vector<6x128xf32>
    %17 = arith.cmpf ogt, %15, %16 : vector<6x128xf32>
    %cst_7 = arith.constant 0.000000e+00 : f32
    %18 = vector.broadcast %cst_7 : f32 to vector<6x128xf32>
    %19 = arith.minimumf %15, %18 : vector<6x128xf32>
    %20 = math.exp %19 : vector<6x128xf32>
    %cst_8 = arith.constant 1.000000e+00 : f32
    %21 = vector.broadcast %cst_8 : f32 to vector<6x128xf32>
    %22 = arith.subf %20, %21 : vector<6x128xf32>
    %23 = arith.select %17, %15, %22 : vector<6x128xi1>, vector<6x128xf32>
    %c0_9 = arith.constant 0 : index
    %c0_10 = arith.constant 0 : index
    %c0_11 = arith.constant 0 : index
    %24 = vector.load %arg4[%c0_9, %c0_10, %c0_11] : memref<4x6x128xf32, #tpu.memory_space<vmem>>, vector<1x6x128xf32>
    %25 = vector.shape_cast %24 : vector<1x6x128xf32> to vector<6x128xf32>
    %26 = vector.shape_cast %23 : vector<6x128xf32> to vector<1x6x128xf32>
    tpu.vector_store %arg4[%c0_9, %c0_10, %c0_11], %26 {strides = array<i32>} : memref<4x6x128xf32, #tpu.memory_space<vmem>>, vector<1x6x128xf32>,
    %c1 = arith.constant 1 : index
    %c0_12 = arith.constant 0 : index
    %c0_13 = arith.constant 0 : index
    %27 = vector.load %arg1[%c1, %c0_12, %c0_13] : memref<4x10x300xf32, #tpu.memory_space<vmem>>, vector<1x10x300xf32>
    %28 = vector.shape_cast %27 : vector<1x10x300xf32> to vector<10x300xf32>
    %cst_14 = arith.constant dense<0.000000e+00> : vector<10x640xf32>
    %29 = tpu.matmul %28, %0, %cst_14 {dimension_numbers = #tpu.dot_dimension_numbers<[1], [0], [0], [1], [0, 0, 1, 1], [], []>} : vector<10x300xf32>, vector<300x640xf32>, vector<10x640xf32> -> vector<10x640xf32>
    %30 = vector.extract_strided_slice %29 {offsets = [0, 0], sizes = [6, 128], strides = [1, 1]} : vector<10x640xf32> to vector<6x128xf32>
    %31 = vector.extract_strided_slice %29 {offsets = [1, 128], sizes = [6, 128], strides = [1, 1]} : vector<10x640xf32> to vector<6x128xf32>
    %32 = arith.addf %30, %31 : vector<6x128xf32>
    %33 = vector.extract_strided_slice %29 {offsets = [2, 256], sizes = [6, 128], strides = [1, 1]} : vector<10x640xf32> to vector<6x128xf32>
    %34 = arith.addf %32, %33 : vector<6x128xf32>
    %35 = vector.extract_strided_slice %29 {offsets = [3, 384], sizes = [6, 128], strides = [1, 1]} : vector<10x640xf32> to vector<6x128xf32>
    %36 = arith.addf %34, %35 : vector<6x128xf32>
    %37 = vector.extract_strided_slice %29 {offsets = [4, 512], sizes = [6, 128], strides = [1, 1]} : vector<10x640xf32> to vector<6x128xf32>
    %38 = arith.addf %36, %37 : vector<6x128xf32>
    %39 = vector.broadcast %1 : vector<1x128xf32> to vector<6x128xf32>
    %40 = arith.addf %38, %39 : vector<6x128xf32>
    %cst_15 = arith.constant 0.000000e+00 : f32
    %41 = vector.broadcast %cst_15 : f32 to vector<6x128xf32>
    %42 = arith.cmpf ogt, %40, %41 : vector<6x128xf32>
    %cst_16 = arith.constant 0.000000e+00 : f32
    %43 = vector.broadcast %cst_16 : f32 to vector<6x128xf32>
    %44 = arith.minimumf %40, %43 : vector<6x128xf32>
    %45 = math.exp %44 : vector<6x128xf32>
    %cst_17 = arith.constant 1.000000e+00 : f32
    %46 = vector.broadcast %cst_17 : f32 to vector<6x128xf32>
    %47 = arith.subf %45, %46 : vector<6x128xf32>
    %48 = arith.select %42, %40, %47 : vector<6x128xi1>, vector<6x128xf32>
    %c1_18 = arith.constant 1 : index
    %c0_19 = arith.constant 0 : index
    %c0_20 = arith.constant 0 : index
    %49 = vector.load %arg4[%c1_18, %c0_19, %c0_20] : memref<4x6x128xf32, #tpu.memory_space<vmem>>, vector<1x6x128xf32>
    %50 = vector.shape_cast %49 : vector<1x6x128xf32> to vector<6x128xf32>
    %51 = vector.shape_cast %48 : vector<6x128xf32> to vector<1x6x128xf32>
    tpu.vector_store %arg4[%c1_18, %c0_19, %c0_20], %51 {strides = array<i32>} : memref<4x6x128xf32, #tpu.memory_space<vmem>>, vector<1x6x128xf32>,
    %c2 = arith.constant 2 : index
    %c0_21 = arith.constant 0 : index
    %c0_22 = arith.constant 0 : index
    %52 = vector.load %arg1[%c2, %c0_21, %c0_22] : memref<4x10x300xf32, #tpu.memory_space<vmem>>, vector<1x10x300xf32>
    %53 = vector.shape_cast %52 : vector<1x10x300xf32> to vector<10x300xf32>
    %cst_23 = arith.constant dense<0.000000e+00> : vector<10x640xf32>
    %54 = tpu.matmul %53, %0, %cst_23 {dimension_numbers = #tpu.dot_dimension_numbers<[1], [0], [0], [1], [0, 0, 1, 1], [], []>} : vector<10x300xf32>, vector<300x640xf32>, vector<10x640xf32> -> vector<10x640xf32>
    %55 = vector.extract_strided_slice %54 {offsets = [0, 0], sizes = [6, 128], strides = [1, 1]} : vector<10x640xf32> to vector<6x128xf32>
    %56 = vector.extract_strided_slice %54 {offsets = [1, 128], sizes = [6, 128], strides = [1, 1]} : vector<10x640xf32> to vector<6x128xf32>
    %57 = arith.addf %55, %56 : vector<6x128xf32>
    %58 = vector.extract_strided_slice %54 {offsets = [2, 256], sizes = [6, 128], strides = [1, 1]} : vector<10x640xf32> to vector<6x128xf32>
    %59 = arith.addf %57, %58 : vector<6x128xf32>
    %60 = vector.extract_strided_slice %54 {offsets = [3, 384], sizes = [6, 128], strides = [1, 1]} : vector<10x640xf32> to vector<6x128xf32>
    %61 = arith.addf %59, %60 : vector<6x128xf32>
    %62 = vector.extract_strided_slice %54 {offsets = [4, 512], sizes = [6, 128], strides = [1, 1]} : vector<10x640xf32> to vector<6x128xf32>
    %63 = arith.addf %61, %62 : vector<6x128xf32>
    %64 = vector.broadcast %1 : vector<1x128xf32> to vector<6x128xf32>
    %65 = arith.addf %63, %64 : vector<6x128xf32>
    %cst_24 = arith.constant 0.000000e+00 : f32
    %66 = vector.broadcast %cst_24 : f32 to vector<6x128xf32>
    %67 = arith.cmpf ogt, %65, %66 : vector<6x128xf32>
    %cst_25 = arith.constant 0.000000e+00 : f32
    %68 = vector.broadcast %cst_25 : f32 to vector<6x128xf32>
    %69 = arith.minimumf %65, %68 : vector<6x128xf32>
    %70 = math.exp %69 : vector<6x128xf32>
    %cst_26 = arith.constant 1.000000e+00 : f32
    %71 = vector.broadcast %cst_26 : f32 to vector<6x128xf32>
    %72 = arith.subf %70, %71 : vector<6x128xf32>
    %73 = arith.select %67, %65, %72 : vector<6x128xi1>, vector<6x128xf32>
    %c2_27 = arith.constant 2 : index
    %c0_28 = arith.constant 0 : index
    %c0_29 = arith.constant 0 : index
    %74 = vector.load %arg4[%c2_27, %c0_28, %c0_29] : memref<4x6x128xf32, #tpu.memory_space<vmem>>, vector<1x6x128xf32>
    %75 = vector.shape_cast %74 : vector<1x6x128xf32> to vector<6x128xf32>
    %76 = vector.shape_cast %73 : vector<6x128xf32> to vector<1x6x128xf32>
    tpu.vector_store %arg4[%c2_27, %c0_28, %c0_29], %76 {strides = array<i32>} : memref<4x6x128xf32, #tpu.memory_space<vmem>>, vector<1x6x128xf32>,
    %c3 = arith.constant 3 : index
    %c0_30 = arith.constant 0 : index
    %c0_31 = arith.constant 0 : index
    %77 = vector.load %arg1[%c3, %c0_30, %c0_31] : memref<4x10x300xf32, #tpu.memory_space<vmem>>, vector<1x10x300xf32>
    %78 = vector.shape_cast %77 : vector<1x10x300xf32> to vector<10x300xf32>
    %cst_32 = arith.constant dense<0.000000e+00> : vector<10x640xf32>
    %79 = tpu.matmul %78, %0, %cst_32 {dimension_numbers = #tpu.dot_dimension_numbers<[1], [0], [0], [1], [0, 0, 1, 1], [], []>} : vector<10x300xf32>, vector<300x640xf32>, vector<10x640xf32> -> vector<10x640xf32>
    %80 = vector.extract_strided_slice %79 {offsets = [0, 0], sizes = [6, 128], strides = [1, 1]} : vector<10x640xf32> to vector<6x128xf32>
    %81 = vector.extract_strided_slice %79 {offsets = [1, 128], sizes = [6, 128], strides = [1, 1]} : vector<10x640xf32> to vector<6x128xf32>
    %82 = arith.addf %80, %81 : vector<6x128xf32>
    %83 = vector.extract_strided_slice %79 {offsets = [2, 256], sizes = [6, 128], strides = [1, 1]} : vector<10x640xf32> to vector<6x128xf32>
    %84 = arith.addf %82, %83 : vector<6x128xf32>
    %85 = vector.extract_strided_slice %79 {offsets = [3, 384], sizes = [6, 128], strides = [1, 1]} : vector<10x640xf32> to vector<6x128xf32>
    %86 = arith.addf %84, %85 : vector<6x128xf32>
    %87 = vector.extract_strided_slice %79 {offsets = [4, 512], sizes = [6, 128], strides = [1, 1]} : vector<10x640xf32> to vector<6x128xf32>
    %88 = arith.addf %86, %87 : vector<6x128xf32>
    %89 = vector.broadcast %1 : vector<1x128xf32> to vector<6x128xf32>
    %90 = arith.addf %88, %89 : vector<6x128xf32>
    %cst_33 = arith.constant 0.000000e+00 : f32
    %91 = vector.broadcast %cst_33 : f32 to vector<6x128xf32>
    %92 = arith.cmpf ogt, %90, %91 : vector<6x128xf32>
    %cst_34 = arith.constant 0.000000e+00 : f32
    %93 = vector.broadcast %cst_34 : f32 to vector<6x128xf32>
    %94 = arith.minimumf %90, %93 : vector<6x128xf32>
    %95 = math.exp %94 : vector<6x128xf32>
    %cst_35 = arith.constant 1.000000e+00 : f32
    %96 = vector.broadcast %cst_35 : f32 to vector<6x128xf32>
    %97 = arith.subf %95, %96 : vector<6x128xf32>
    %98 = arith.select %92, %90, %97 : vector<6x128xi1>, vector<6x128xf32>
    %c3_36 = arith.constant 3 : index
    %c0_37 = arith.constant 0 : index
    %c0_38 = arith.constant 0 : index
    %99 = vector.load %arg4[%c3_36, %c0_37, %c0_38] : memref<4x6x128xf32, #tpu.memory_space<vmem>>, vector<1x6x128xf32>
    %100 = vector.shape_cast %99 : vector<1x6x128xf32> to vector<6x128xf32>
    %101 = vector.shape_cast %98 : vector<6x128xf32> to vector<1x6x128xf32>
    tpu.vector_store %arg4[%c3_36, %c0_37, %c0_38], %101 {strides = array<i32>} : memref<4x6x128xf32, #tpu.memory_space<vmem>>, vector<1x6x128xf32>,
    return
  }
  func.func @transform_0(%arg0: i32) -> (i32, i32, i32) {
    %c0_i32 = arith.constant 0 : i32
    %c0_i32_0 = arith.constant 0 : i32
    %c0_i32_1 = arith.constant 0 : i32
    return %arg0, %c0_i32, %c0_i32_0 : i32, i32, i32
  }
  func.func @transform_1(%arg0: i32) -> (i32, i32) {
    %c0_i32 = arith.constant 0 : i32
    %c0_i32_0 = arith.constant 0 : i32
    %c0_i32_1 = arith.constant 0 : i32
    return %c0_i32, %c0_i32_0 : i32, i32
  }
  func.func @transform_2(%arg0: i32) -> (i32, i32) {
    %c0_i32 = arith.constant 0 : i32
    %c0_i32_0 = arith.constant 0 : i32
    %c0_i32_1 = arith.constant 0 : i32
    return %c0_i32, %c0_i32_0 : i32, i32
  }
  func.func @transform_3(%arg0: i32) -> (i32, i32, i32) {
    %c0_i32 = arith.constant 0 : i32
    %c0_i32_0 = arith.constant 0 : i32
    %c0_i32_1 = arith.constant 0 : i32
    return %arg0, %c0_i32, %c0_i32_0 : i32, i32, i32
  }
}

</mosaic_0001>

<bundles_post_ra>
// kernel: conv_sensors_forward.1
= control target key start
LH: loop header
LB: loop body
LE: loop exit
PB: predicated region body
PF: predicated region fallthrough
CT: control target
= control target key end

     0   :  { %s2296_s12 = smov 0   ;;  %s5335_s0 = inlined_call_operand.vmem [shape: f32[8,10,300], index: 0, kind: input, shape index: {}]   ;;  %s5336_s1 = inlined_call_operand.vmem [shape: f32[300,640], index: 1, kind: input, shape index: {}]   ;;  %s5337_s2 = inlined_call_operand.vmem [shape: f32[1,128], index: 2, kind: input, shape index: {}]   ;;  %s5338_s3 = inlined_call_operand.vmem [shape: f32[8,6,128], index: 3, kind: output, shape index: {}]  }
   0x1 LB: > { %s1963_s13 = sadd.s32 4294967295, %s2274_s12   ;;  %p1967_p0 = scmp.ge.s32.totalorder %s2274_s12, 1  ;;  %s2274_s12 = sphi %s2296_s12, %s13_s12  }
   0x2   : > { %p139_p1 = scmp.lt.s32.totalorder %s2274_s12, 3 }
   0x4   : > { %p140_p2 = pnand %p1967_p0, %p139_p1 }
   0x6   : > { %143 = sbr.rel (%p140_p2) target bundleno = 649 (0x289), region = 32 }
   0xb   : > { %v2307_v0 = vld [vmem:[%s5336_s1 + $0x5c8] sm:$0xf]  ;;  %vm381_vm0 = vcmask 1043456   ;;  %v2312_v1 = vld [vmem:[%s5336_s1 + $0x4e0] sm:$0xff]  ;;  %v2325_v3 = vld [vmem:[%s5336_s1 + $0x4b8] sm:$0xff]  ;;  %s2409_s25 = sshll.u32 %s1963_s13, 2 }
   0xc   : > { %v2317_v2 = vld [vmem:[%s5336_s1 + $0x5a0] sm:$0xff]  ;;  %1972 = vmatpush.msk.msra.mxu3 %vm381_vm0, %v2307_v0  ;;  %485 = vmatpush.msra.mxu2 %v2312_v1  ;;  %5569 = vst [vmem:[#allocation2_spill] sm:$0xff] %v2325_v3  ;;  %v2330_v4 = vld [vmem:[%s5336_s1 + $0x258] sm:$0xff]  ;;  %v2347_v7 = vld [vmem:[%s5336_s1 + $0x490] sm:$0xff]  ;;  %p165_p3 = scmp.lt.s32.totalorder %s2409_s25, 7  ;;  %vm374_vm1 = vcmask 359424  }
   0xd   : > { %v2335_v5 = vld [vmem:[%s5336_s1 + $0x4d8] sm:$0xff]  ;;  %397 = vmatpush.msra.mxu0 %v2330_v4  ;;  %5570 = vst [vmem:[#allocation3_spill] sm:$0xff] %v2347_v7  ;;  %v2352_v8 = vld [vmem:[%s5336_s1 + $0x230] sm:$0xff]  ;;  %v2371_v11 = vld [vmem:[%s5336_s1 + $0x468] sm:$0xff]  ;;  %vm743_vm2 = vcmask 1044480  }
   0xe   : > { %419 = vmatpush.msra.mxu1 %v2335_v5  ;;  %v2342_v6 = vld [vmem:[%s5336_s1 + $0x578] sm:$0xff]  ;;  %452 = vmatpush.msra.mxu3 %v2317_v2  ;;  %v2359_v9 = vld [vmem:[%s5336_s1 + $0x4b0] sm:$0xff]  ;;  %5571 = vst [vmem:[#allocation4_spill] sm:$0xff] %v2371_v11  ;;  %v2376_v12 = vld [vmem:[%s5336_s1 + $0x208] sm:$0xff]  ;;  %s6028_s25 = smov (!%p165_p3, %s2409_s25), 7 }
   0xf   : > { %486 = vmatpush.msra.mxu2 %v2325_v3  ;;  %v2364_v10 = vld [vmem:[%s5336_s1 + $0x550] sm:$0xff]  ;;  %398 = vmatpush.msra.mxu0 %v2352_v8  ;;  %v2381_v13 = vld [vmem:[%s5336_s1 + $0x488] sm:$0xff]  ;;  %v2388_v14 = vld [vmem:[%s5336_s1 + $0x1e0] sm:$0xff]  ;;  %s2059_s19 = smul.u32 48, %s6028_s25  ;;  %s1971_s29 = sshll.u32 %s6028_s25, 3 }
  0x10   : > { %420 = vmatpush.msra.mxu1 %v2359_v9  ;;  %453 = vmatpush.msra.mxu3 %v2342_v6  ;;  %v2393_v15 = vld [vmem:[%s5336_s1 + $0x460] sm:$0xff]  ;;  %v2400_v16 = vld [vmem:[%s5336_s1 + $0x528] sm:$0xff]  ;;  %v2416_v18 = vld [vmem:[%s5336_s1 + $0x1b8] sm:$0xff]  ;;  %s4591_s16 = scalar_lea.vmem %s5338_s3, %s1971_s29 }
  0x11   : > { %487 = vmatpush.msra.mxu2 %v2347_v7  ;;  %399 = vmatpush.msra.mxu0 %v2376_v12  ;;  %v2405_v17 = vld [vmem:[%s5336_s1 + $0x440] sm:$0xff]  ;;  %v2421_v19 = vld [vmem:[%s5336_s1 + $0x438] sm:$0xff]  ;;  %v2445_v23 = vld [vmem:[%s5336_s1 + $0x190] sm:$0xff]  ;;  %s2601_s11 = scalar_lea.vmem %s5335_s0, %s2059_s19 }
  0x12   : > { %421 = vmatpush.msra.mxu1 %v2381_v13  ;;  %5572 = vst [vmem:[#allocation5_spill] sm:$0xff] %v2405_v17  ;;  %454 = vmatpush.msra.mxu3 %v2364_v10  ;;  %v2428_v20 = vld [vmem:[%s5336_s1 + $0x500] sm:$0xff]  ;;  %v2433_v21 = vld [vmem:[%s5336_s1 + $0x418] sm:$0xff]  ;;  %v2453_v24 = vld [vmem:[%s5336_s1 + $0x3f0] sm:$0xff] }
  0x13   : > { %488 = vmatpush.msra.mxu2 %v2371_v11  ;;  %400 = vmatpush.msra.mxu0 %v2388_v14  ;;  %5573 = vst [vmem:[#allocation6_spill] sm:$0xff] %v2433_v21  ;;  %v2440_v22 = vld [vmem:[%s5336_s1 + $0x260] sm:$0xff]  ;;  %v2458_v25 = vld [vmem:[%s5336_s1 + $0x410] sm:$0xff]  ;;  %v2465_v26 = vld [vmem:[%s5336_s1 + $0x238] sm:$0xff] }
  0x14   : > { %422 = vmatpush.msra.mxu1 %v2393_v15  ;;  %455 = vmatpush.msra.mxu3 %v2400_v16  ;;  %5574 = vst [vmem:[#allocation7_spill] sm:$0xff] %v2453_v24  ;;  %v2470_v27 = vld [vmem:[%s5336_s1 + $0x168] sm:$0xff]  ;;  %v2489_v30 = vld [vmem:[%s5336_s1 + $0x210] sm:$0xff]  ;;  %v2494_v31 = vld [vmem:[%s5336_s1 + $0x140] sm:$0xff] }
  0x15   : > { %489 = vmatpush.msra.mxu2 %v2405_v17  ;;  %401 = vmatpush.msra.mxu0 %v2416_v18  ;;  %v2477_v28 = vld [vmem:[%s5336_s1 + $0x3c8] sm:$0xff]  ;;  %v2506_v32 = vld [vmem:[%s5336_s1 + $0x3a0] sm:$0xff]  ;;  %v2523_v35 = vld [vmem:[%s5336_s1 + $0x118] sm:$0xff] }
  0x16   : > { %423 = vmatpush.msra.mxu1 %v2421_v19  ;;  %456 = vmatpush.msra.mxu3 %v2428_v20  ;;  %5575 = vst [vmem:[#allocation8_spill] sm:$0xff] %v2477_v28  ;;  %v2482_v29 = vld [vmem:[%s5336_s1 + $0x3e8] sm:$0xff]  ;;  %v2511_v33 = vld [vmem:[%s5336_s1 + $0x3c0] sm:$0xff]  ;;  %v2530_v36 = vld [vmem:[%s5336_s1 + $0x378] sm:$0xff] }
  0x17   : > { %490 = vmatpush.msra.mxu2 %v2433_v21  ;;  %402 = vmatpush.msra.mxu0 %v2445_v23  ;;  %5576 = vst [vmem:[#allocation9_spill] sm:$0xff] %v2506_v32  ;;  %v2518_v34 = vld [vmem:[%s5336_s1 + $0x1e8] sm:$0xff]  ;;  %v2535_v37 = vld [vmem:[%s5336_s1 + $0x398] sm:$0xff]  ;;  %v2542_v38 = vld [vmem:[%s5336_s1 + $0x1c0] sm:$0xff] }
  0x18   : > { %463 = vmatpush.msrb.mxu3 %v2440_v22  ;;  %424 = vmatpush.msra.mxu1 %v2458_v25  ;;  %5577 = vst [vmem:[#allocation10_spill] sm:$0xff] %v2530_v36  ;;  %v2547_v39 = vld [vmem:[%s5336_s1 + $0xf0] sm:$0xff]  ;;  %v2567_v42 = vld [vmem:[%s5336_s1 + $0x198] sm:$0xff]  ;;  %v2572_v43 = vld [vmem:[%s5336_s1 + $0xc8] sm:$0xff] }
  0x19   : > { %491 = vmatpush.msra.mxu2 %v2453_v24  ;;  %403 = vmatpush.msra.mxu0 %v2470_v27  ;;  %v2555_v40 = vld [vmem:[%s5336_s1 + $0x350] sm:$0xff]  ;;  %v2579_v44 = vld [vmem:[%s5336_s1 + $0x328] sm:$0xff]  ;;  %v2596_v47 = vld [vmem:[%s5336_s1 + $0xa0] sm:$0xff] }
  0x1a   : > { %464 = vmatpush.msrb.mxu3 %v2465_v26  ;;  %425 = vmatpush.msra.mxu1 %v2482_v29  ;;  %5578 = vst [vmem:[#allocation11_spill] sm:$0xff] %v2555_v40  ;;  %v2560_v41 = vld [vmem:[%s5336_s1 + $0x370] sm:$0xff]  ;;  %v2584_v45 = vld [vmem:[%s5336_s1 + $0x348] sm:$0xff]  ;;  %v2608_v48 = vld [vmem:[%s5336_s1 + $0x300] sm:$0xff] }
  0x1b   : > { %492 = vmatpush.msra.mxu2 %v2477_v28  ;;  %404 = vmatpush.msra.mxu0 %v2494_v31  ;;  %5579 = vst [vmem:[#allocation12_spill] sm:$0xff] %v2579_v44  ;;  %v2591_v46 = vld [vmem:[%s5336_s1 + $0x170] sm:$0xff]  ;;  %v2613_v49 = vld [vmem:[%s5336_s1 + $0x320] sm:$0xff]  ;;  %v2620_v50 = vld [vmem:[%s5336_s1 + $0x148] sm:$0xff] }
  0x1c   : > { %465 = vmatpush.msrb.mxu3 %v2489_v30  ;;  %426 = vmatpush.msra.mxu1 %v2511_v33  ;;  %5580 = vst [vmem:[#allocation13_spill] sm:$0xff] %v2591_v46  ;;  %v2625_v51 = vld [vmem:[%s5336_s1 + $0x78] sm:$0xff]  ;;  %v2630_v52 = vld [vmem:[%s2601_s11 + $0x10] sm:$0xff]  ;;  %v2647_v55 = vld [vmem:[%s5336_s1 + $0x120] sm:$0xff] }
  0x1d   : > { %493 = vmatpush.msra.mxu2 %v2506_v32  ;;  %405 = vmatpush.msra.mxu0 %v2523_v35  ;;  %5581 = vst [vmem:[#allocation14_spill] sm:$0xff] %v2608_v48  ;;  %v2635_v53 = vld [vmem:[%s5336_s1 + $0x2d8] sm:$0xff]  ;;  %v2654_v56 = vld [vmem:[%s5336_s1 + $0x2b0] sm:$0xff]  ;;  %v2679_v60 = vld [vmem:[%s5336_s1 + $0x288] sm:$0xff] }
  0x1e   : > { %466 = vmatpush.msrb.mxu3 %v2518_v34  ;;  %427 = vmatpush.msra.mxu1 %v2535_v37  ;;  %5582 = vst [vmem:[#allocation15_spill] sm:$0xff] %v2620_v50  ;;  %v2642_v54 = vld [vmem:[%s5336_s1 + $0x2f8] sm:$0xff]  ;;  %v2659_v57 = vld [vmem:[%s5336_s1 + $0x50] sm:$0xff]  ;;  %v2684_v61 = vld [vmem:[%s5336_s1 + $0x28] sm:$0xff] }
  0x1f   : > { %494 = vmatpush.msra.mxu2 %v2530_v36  ;;  %406 = vmatpush.msra.mxu0 %v2547_v39  ;;  %5583 = vst [vmem:[#allocation16_spill] sm:$0xff] %v2635_v53  ;;  %v2667_v58 = vld [vmem:[%s5336_s1 + $0x2d0] sm:$0xff]  ;;  %v2672_v59 = vld [vmem:[%s5336_s1 + $0xf8] sm:$0xff]  ;;  %v2691_v62 = vld [vmem:[%s5336_s1 + $0x2a8] sm:$0xff] }
  0x20   : > { %467 = vmatpush.msrb.mxu3 %v2542_v38  ;;  %428 = vmatpush.msra.mxu1 %v2560_v41  ;;  %5584 = vst [vmem:[#allocation17_spill] sm:$0xff] %v2647_v55  ;;  %v2696_v63 = vld [vmem:[%s5336_s1 + $0xd0] sm:$0xff]  ;;  %v2736_v36 = vld [vmem:[%s2601_s11 + $0x28] sm:$0x3]  ;;  %v2786_v21 = vld [vmem:[%s5336_s1 + $0x560] sm:$0xff] }
  0x21   : > { %495 = vmatpush.msra.mxu2 %v2555_v40  ;;  %407 = vmatpush.msra.mxu0 %v2572_v43  ;;  %5585 = vst [vmem:[#allocation18_spill] sm:$0xff] %v2654_v56  ;;  %v2730_v40 = vld [vmem:[%s2601_s11] sm:$0xff]  ;;  %v2741_v32 = vld [vmem:[%s5336_s1 + $0x5d0] sm:$0xf]  ;;  %v2748_v28 = vld [vmem:[%s5336_s1 + $0x268] sm:$0xff] }
  0x22   : > { %468 = vmatpush.msrb.mxu3 %v2567_v42  ;;  %429 = vmatpush.msra.mxu1 %v2584_v45  ;;  %5586 = vst [vmem:[#allocation19_spill] sm:$0xff] %v2672_v59  ;;  %v2760_v24 = vld [vmem:[%s5336_s1 + $0x588] sm:$0xff]  ;;  %v2803_v17 = vld [vmem:[%s5336_s1 + $0x30] sm:$0xff]  ;;  %v2835_v11 = vld [vmem:[%s2601_s11 + $0x18] sm:$0x3] }
  0x23   : > { %496 = vmatpush.msra.mxu2 %v2579_v44  ;;  %408 = vmatpush.msra.mxu0 %v2596_v47  ;;  %5587 = vst [vmem:[#allocation20_spill] sm:$0xff] %v2679_v60  ;;  %v2720_v44 = vld [vmem:[%s5336_s1 + $0xa8] sm:$0xff]  ;;  %v2897_v7 = vld [vmem:[%s5336_s1 + $0x270] sm:$0xff]  ;;  %v2950_v3 = vld [vmem:[%s2601_s11 + $0x20] sm:$0x3] }
  0x24   : > { %469 = vmatpush.msrb.mxu3 %v2591_v46  ;;  %430 = vmatpush.msra.mxu1 %v2613_v49  ;;  %5588 = vst [vmem:[#allocation21_spill] sm:$0xff] %v2691_v62  ;;  %v2909_v46 = vld [vmem:[%s5336_s1 + $0x498] sm:$0xff] }
  0x25   : > { %497 = vmatpush.msra.mxu2 %v2608_v48  ;;  %409 = vmatpush.msra.mxu0 %v2625_v51  ;;  %5589 = vst [vmem:[#allocation22_spill] sm:$0xff] %v2696_v63  ;;  %v2715_v48 = vld [vmem:[%s5336_s1 + $0x280] sm:$0xff] }
  0x26   : > { %470 = vmatpush.msrb.mxu3 %v2620_v50  ;;  %431 = vmatpush.msra.mxu1 %v2642_v54  ;;  %5591 = vst [vmem:[#allocation24_spill] sm:$0xff] %v2715_v48  ;;  %v2878_v50 = vld [vmem:[%s5336_s1 + $0x1a0] sm:$0xff] }
  0x27   : > { %1973 = vmatmul.msk.f32.vlgmr.msra.gmra.mxu3 %vm374_vm1, %v2630_v52  ;;  %498 = vmatpush.msra.mxu2 %v2635_v53  ;;  %v2708_v53 = vld [vmem:[%s5336_s1] sm:$0xff]  ;;  %5592 = vst [vmem:[#allocation25_spill] sm:$0xff] %v2720_v44 }
  0x28   : > { %471 = vmatpush.msrb.mxu3 %v2647_v55  ;;  %410 = vmatpush.msra.mxu0 %v2659_v57  ;;  %5594 = vst [vmem:[#allocation27_spill] sm:$0xff] %v2748_v28  ;;  %v2815_v55 = vld [vmem:[%s5336_s1 + $0x558] sm:$0xff] }
  0x29   : > { %499 = vmatpush.msra.mxu2 %v2654_v56  ;;  %432 = vmatpush.msra.mxu1 %v2667_v58  ;;  %v2703_v56 = vld [vmem:[%s5336_s1 + $0x5d8] sm:$0xf]  ;;  %5596 = vst [vmem:[#allocation29_spill] sm:$0xff] %v2760_v24 }
  0x2a   : > { %472 = vmatpush.msrb.mxu3 %v2672_v59  ;;  %5590 = vst [vmem:[#allocation23_spill] sm:$0xff] %v2703_v56  ;;  %411 = vmatpush.msra.mxu0 %v2684_v61  ;;  %v2791_v59 = vld [vmem:[%s5336_s1 + $0x580] sm:$0xff] }
  0x2b   : > { %500 = vmatpush.msra.mxu2 %v2679_v60  ;;  %433 = vmatpush.msra.mxu1 %v2691_v62  ;;  %v2727_v60 = vld [vmem:[%s5336_s1 + $0x5b0] sm:$0xff]  ;;  %5599 = vst [vmem:[#allocation32_spill] sm:$0xff] %v2786_v21 }
  0x2c   : > { %473 = vmatpush.msrb.mxu3 %v2696_v63  ;;  %5593 = vst [vmem:[#allocation26_spill] sm:$0xff] %v2727_v60  ;;  %412 = vmatpush.msra.mxu0 %v2708_v53  ;;  %v2779_v63 = vld [vmem:[%s5336_s1 + $0x58] sm:$0xff]  ;;  %v2928_v62 = vld [vmem:[%s5336_s1 + $0x150] sm:$0xff] }
  0x2d   : > { %1978 = vmatpush.msk.msrb.mxu2 %vm381_vm0, %v2703_v56  ;;  %434 = vmatpush.msra.mxu1 %v2715_v48  ;;  %v2753_v56 = vld [vmem:[%s5336_s1 + $0x80] sm:$0xff]  ;;  %5598 = vst [vmem:[#allocation31_spill] sm:$0xff] %v2779_v63  ;;  %v2890_v48 = vld [vmem:[%s5336_s1 + $0x4c8] sm:$0xff] }
  0x2e   : > { %474 = vmatpush.msrb.mxu3 %v2720_v44  ;;  %5595 = vst [vmem:[#allocation28_spill] sm:$0xff] %v2753_v56  ;;  %413 = vmatmul.f32.vlgmr.msra.gmra.mxu0 %v2730_v40  ;;  %v2765_v44 = vld [vmem:[%s5336_s1 + $0x5a8] sm:$0xff] }
  0x2f   : > { %584 = vmatpush.msrb.mxu2 %v2727_v60  ;;  %1974 = vmatmul.msk.f32.gmra.mxu3 %vm374_vm1, %v2736_v36  ;;  %v2774_v60 = vld [vmem:[%s5336_s1 + $0x240] sm:$0xff]  ;;  %5601 = vst [vmem:[#allocation34_spill] sm:$0xff] %v2803_v17 }
  0x30   : > { %1975 = vmatpush.msk.msrb.mxu0 %vm381_vm0, %v2741_v32  ;;  %5597 = vst [vmem:[#allocation30_spill] sm:$0xff] %v2774_v60  ;;  %529 = vmatpush.msrb.mxu1 %v2748_v28  ;;  %v2832_v28 = vld [vmem:[%s2601_s11 + $0x8] sm:$0xff] }
  0x31   : > { %475 = vmatpush.msrb.mxu3 %v2753_v56  ;;  %585 = vmatpush.msrb.mxu2 %v2760_v24  ;;  %v2798_v56 = vld [vmem:[%s5336_s1 + $0x218] sm:$0xff]  ;;  %5608 = vst [vmem:[#allocation41_spill] sm:$0xff] %v2878_v50 }
  0x32   : > { %518 = vmatpush.msrb.mxu0 %v2765_v44  ;;  %5600 = vst [vmem:[#allocation33_spill] sm:$0xff] %v2798_v56  ;;  %530 = vmatpush.msrb.mxu1 %v2774_v60  ;;  %v2810_v24 = vld [vmem:[%s5336_s1 + $0x538] sm:$0xff]  ;;  %v2822_v60 = vld [vmem:[%s5336_s1 + $0x1f0] sm:$0xff] }
  0x33   : > { %476 = vmatpush.msrb.mxu3 %v2779_v63  ;;  %5602 = vst [vmem:[#allocation35_spill] sm:$0xff] %v2810_v24  ;;  %586 = vmatpush.msrb.mxu2 %v2786_v21  ;;  %v2827_v63 = vld [vmem:[%s5336_s1 + $0x8] sm:$0xff]  ;;  %v2842_v21 = vld [vmem:[%s5336_s1 + $0x510] sm:$0xff] }
  0x34   : > { %519 = vmatpush.msrb.mxu0 %v2791_v59  ;;  %5603 = vst [vmem:[#allocation36_spill] sm:$0xff] %v2822_v60  ;;  %531 = vmatpush.msrb.mxu1 %v2798_v56  ;;  %v2873_v56 = vld [vmem:[%s5336_s1 + $0x508] sm:$0xff] }
  0x35   : > { %5604 = vst [vmem:[#allocation37_spill] sm:$0xff] %v2827_v63  ;;  %477 = vmatpush.msrb.mxu3 %v2803_v17  ;;  %587 = vmatpush.msrb.mxu2 %v2810_v24  ;;  %v2849_v17 = vld [vmem:[%s5336_s1 + $0x530] sm:$0xff]  ;;  %v2854_v24 = vld [vmem:[%s5336_s1 + $0x1c8] sm:$0xff] }
  0x36   : > { %520 = vmatpush.msrb.mxu0 %v2815_v55  ;;  %5605 = vst [vmem:[#allocation38_spill] sm:$0xff] %v2842_v21  ;;  %532 = vmatpush.msrb.mxu1 %v2822_v60  ;;  %v2861_v60 = vld [vmem:[%s5336_s1 + $0x4e8] sm:$0xff] }
  0x37   : > { %478 = vmatpush.msrb.mxu3 %v2827_v63  ;;  %5606 = vst [vmem:[#allocation39_spill] sm:$0xff] %v2854_v24  ;;  %501 = vmatmul.f32.vlgmr.msra.gmra.mxu2 %v2832_v28  ;;  %v2866_v63 = vld [vmem:[%s5336_s1 + $0x4f0] sm:$0xff] }
  0x38   : > { %416 = vmatmul.f32.gmra.mxu0 %v2835_v11  ;;  %5607 = vst [vmem:[#allocation40_spill] sm:$0xff] %v2866_v63  ;;  %588 = vmatpush.msrb.mxu2 %v2842_v21  ;;  %v2885_v21 = vld [vmem:[%s5336_s1 + $0x4c0] sm:$0xff] }
  0x39   : > { %479 = vmatmul.f32.vlgmr.msrb.gmra.mxu3 %v2730_v40  ;;  %521 = vmatpush.msrb.mxu0 %v2849_v17  ;;  %5609 = vst [vmem:[#allocation42_spill] sm:$0xff] %v2885_v21 }
  0x3a   : > { %533 = vmatpush.msrb.mxu1 %v2854_v24  ;;  %5610 = vst [vmem:[#allocation43_spill] sm:$0xff] %v2890_v48  ;;  %551 = vmatpush.msra.mxu3 %v2861_v60  ;;  %v2904_v24 = vld [vmem:[%s5336_s1 + $0x178] sm:$0xff] }
  0x3b   : > { %618 = vmatpush.msra.mxu2 %v2866_v63  ;;  %5611 = vst [vmem:[#allocation44_spill] sm:$0xff] %v2897_v7  ;;  %522 = vmatpush.msrb.mxu0 %v2873_v56  ;;  %v2916_v63 = vld [vmem:[%s5336_s1 + $0x4a0] sm:$0xff] }
  0x3c   : > { %534 = vmatpush.msrb.mxu1 %v2878_v50  ;;  %5612 = vst [vmem:[#allocation45_spill] sm:$0xff] %v2904_v24  ;;  %552 = vmatpush.msra.mxu3 %v2885_v21  ;;  %v2921_v50 = vld [vmem:[%s5336_s1 + $0x248] sm:$0xff]  ;;  %v2945_v21 = vld [vmem:[%s5336_s1 + $0x220] sm:$0xff] }
  0x3d   : > { %5613 = vst [vmem:[#allocation46_spill] sm:$0xff] %v2909_v46  ;;  %619 = vmatpush.msra.mxu2 %v2890_v48  ;;  %595 = vmatpush.msra.mxu0 %v2897_v7  ;;  %v2933_v48 = vld [vmem:[%s5336_s1 + $0x470] sm:$0xff]  ;;  %v2940_v7 = vld [vmem:[%s5336_s1 + $0x478] sm:$0xff] }
  0x3e   : > { %5614 = vst [vmem:[#allocation47_spill] sm:$0xff] %v2916_v63  ;;  %435 = vmatmul.f32.vlgmr.msra.gmra.mxu1 %v2832_v28  ;;  %553 = vmatpush.msra.mxu3 %v2909_v46  ;;  %v2962_v46 = vld [vmem:[%s5336_s1 + $0x448] sm:$0xff] }
  0x3f   : > { %5615 = vst [vmem:[#allocation48_spill] sm:$0xff] %v2921_v50  ;;  %535 = vmatpush.msrb.mxu1 %v2904_v24  ;;  %620 = vmatpush.msra.mxu2 %v2916_v63  ;;  %v2957_v24 = vld [vmem:[%s5336_s1 + $0x128] sm:$0xff]  ;;  %v2969_v63 = vld [vmem:[%s5336_s1 + $0x450] sm:$0xff] }
  0x40   : > { %5616 = vst [vmem:[#allocation49_spill] sm:$0xff] %v2928_v62  ;;  %596 = vmatpush.msra.mxu0 %v2921_v50  ;;  %554 = vmatpush.msra.mxu3 %v2933_v48  ;;  %v2974_v50 = vld [vmem:[%s5336_s1 + $0x1f8] sm:$0xff] }
  0x41   : > { %5617 = vst [vmem:[#allocation50_spill] sm:$0xff] %v2933_v48  ;;  %536 = vmatpush.msrb.mxu1 %v2928_v62  ;;  %621 = vmatpush.msra.mxu2 %v2940_v7  ;;  %v2994_v62 = vld [vmem:[%s5336_s1 + $0x428] sm:$0xff]  ;;  %v2999_v48 = vld [vmem:[%s5336_s1 + $0x1d0] sm:$0xff] }
  0x42   : > { %5618 = vst [vmem:[#allocation51_spill] sm:$0xff] %v2940_v7  ;;  %597 = vmatpush.msra.mxu0 %v2945_v21  ;;  %504 = vmatmul.f32.gmra.mxu2 %v2950_v3  ;;  %v2982_v7 = vld [vmem:[%s5336_s1 + $0x100] sm:$0xff] }
  0x43   : > { %5619 = vst [vmem:[#allocation52_spill] sm:$0xff] %v2945_v21  ;;  %1976 = vmatmul.msk.f32.vlgmr.msrb.gmra.mxu0 %vm374_vm1, %v2630_v52  ;;  %v2987_v21 = vld [vmem:[%s5336_s1 + $0x420] sm:$0xff]  ;;  %537 = vmatpush.msrb.mxu1 %v2957_v24 }
  0x44   : > { %5620 = vst [vmem:[#allocation53_spill] sm:$0xff] %v2957_v24  ;;  %555 = vmatpush.msra.mxu3 %v2962_v46  ;;  %622 = vmatpush.msra.mxu2 %v2969_v63  ;;  %v3006_v24 = vld [vmem:[%s5336_s1 + $0xd8] sm:$0xff] }
  0x45   : > { %5621 = vst [vmem:[#allocation54_spill] sm:$0xff] %v2962_v46  ;;  %598 = vmatpush.msra.mxu0 %v2974_v50  ;;  %v3011_v46 = vld [vmem:[%s5336_s1 + $0x3f8] sm:$0xff]  ;;  %538 = vmatpush.msrb.mxu1 %v2982_v7 }
  0x46   : > { %5622 = vst [vmem:[#allocation55_spill] sm:$0xff] %v2969_v63  ;;  %556 = vmatpush.msra.mxu3 %v2987_v21  ;;  %v3018_v63 = vld [vmem:[%s5336_s1 + $0x400] sm:$0xff]  ;;  %623 = vmatpush.msra.mxu2 %v2994_v62 }
  0x47   : > { %5623 = vst [vmem:[#allocation56_spill] sm:$0xff] %v2974_v50  ;;  %v3023_v50 = vld [vmem:[%s5336_s1 + $0x1a8] sm:$0xff]  ;;  %599 = vmatpush.msra.mxu0 %v2999_v48  ;;  %539 = vmatpush.msrb.mxu1 %v3006_v24 }
  0x48   : > { %5624 = vst [vmem:[#allocation57_spill] sm:$0xff] %v2982_v7  ;;  %v3030_v7 = vld [vmem:[%s5336_s1 + $0xb0] sm:$0xff]  ;;  %557 = vmatpush.msra.mxu3 %v3011_v46  ;;  %624 = vmatpush.msra.mxu2 %v3018_v63 }
  0x49   : > { %5625 = vst [vmem:[#allocation58_spill] sm:$0xff] %v2987_v21  ;;  %v3035_v21 = vld [vmem:[%s5336_s1 + $0x3d0] sm:$0xff]  ;;  %600 = vmatpush.msra.mxu0 %v3023_v50  ;;  %540 = vmatpush.msrb.mxu1 %v3030_v7 }
  0x4a   : > { %5626 = vst [vmem:[#allocation59_spill] sm:$0xff] %v2994_v62  ;;  %v3042_v62 = vld [vmem:[%s5336_s1 + $0x3d8] sm:$0xff]  ;;  %558 = vmatpush.msra.mxu3 %v3035_v21  ;;  %438 = vmatmul.f32.gmra.mxu1 %v2950_v3 }
  0x4b   : > { %5627 = vst [vmem:[#allocation60_spill] sm:$0xff] %v2999_v48  ;;  %v3049_v48 = vld [vmem:[%s5336_s1 + $0x180] sm:$0xff]  ;;  %625 = vmatpush.msra.mxu2 %v3042_v62  ;;  %482 = vmatmul.f32.gmra.mxu3 %v2835_v11 }
  0x4c   : > { %5628 = vst [vmem:[#allocation61_spill] sm:$0xff] %v3006_v24  ;;  %v3056_v24 = vld [vmem:[%s5336_s1 + $0x88] sm:$0xff]  ;;  %1979 = vmatmul.msk.f32.vlgmr.msrb.gmra.mxu2 %vm374_vm1, %v2630_v52  ;;  %601 = vmatpush.msra.mxu0 %v3049_v48 }
  0x4d   : > { %5629 = vst [vmem:[#allocation62_spill] sm:$0xff] %v3011_v46  ;;  %541 = vmatpush.msrb.mxu1 %v3056_v24  ;;  %v3093_v46 = vld [vmem:[%s5336_s1 + $0x388] sm:$0xff]  ;;  %1977 = vmatmul.msk.f32.gmra.mxu0 %vm374_vm1, %v2736_v36 }
  0x4e   : > { %5630 = vst [vmem:[#allocation63_spill] sm:$0xff] %v3018_v63  ;;  %v3061_v63 = vld [vmem:[%s5336_s1 + $0x3a8] sm:$0xff] }
  0x4f   : > { %5631 = vst [vmem:[#allocation64_spill] sm:$0xff] %v3023_v50  ;;  %v3068_v50 = vld [vmem:[%s5336_s1 + $0x3b0] sm:$0xff]  ;;  %559 = vmatpush.msra.mxu3 %v3061_v63 }
  0x50   : > { %5632 = vst [vmem:[#allocation65_spill] sm:$0xff] %v3030_v7  ;;  %v3073_v7 = vld [vmem:[%s5336_s1 + $0x158] sm:$0xff]  ;;  %626 = vmatpush.msra.mxu2 %v3068_v50 }
  0x51   : > { %5633 = vst [vmem:[#allocation66_spill] sm:$0xff] %v3035_v21  ;;  %v3086_v21 = vld [vmem:[%s5336_s1 + $0x380] sm:$0xff]  ;;  %602 = vmatpush.msra.mxu0 %v3073_v7 }
  0x52   : > { %5634 = vst [vmem:[#allocation67_spill] sm:$0xff] %v3042_v62  ;;  %v3081_v62 = vld [vmem:[%s5336_s1 + $0x60] sm:$0xff]  ;;  %560 = vmatpush.msra.mxu3 %v3086_v21  ;;  %627 = vmatpush.msra.mxu2 %v3093_v46 }
  0x53   : > { %5635 = vst [vmem:[#allocation68_spill] sm:$0xff] %v3049_v48  ;;  %v3098_v48 = vld [vmem:[%s5336_s1 + $0x130] sm:$0xff]  ;;  %542 = vmatpush.msrb.mxu1 %v3081_v62 }
  0x54   : > { %5636 = vst [vmem:[#allocation69_spill] sm:$0xff] %v3056_v24  ;;  %v3105_v24 = vld [vmem:[%s5336_s1 + $0x38] sm:$0xff]  ;;  %603 = vmatpush.msra.mxu0 %v3098_v48  ;;  %1980 = vmatmul.msk.f32.gmra.mxu2 %vm374_vm1, %v2736_v36 }
  0x55   : > { %5637 = vst [vmem:[#allocation70_spill] sm:$0xff] %v3061_v63  ;;  %v3110_v63 = vld [vmem:[%s5336_s1 + $0x358] sm:$0xff]  ;;  %543 = vmatpush.msrb.mxu1 %v3105_v24 }
  0x56   : > { %5638 = vst [vmem:[#allocation71_spill] sm:$0xff] %v3068_v50  ;;  %v3117_v50 = vld [vmem:[%s5336_s1 + $0x360] sm:$0xff]  ;;  %561 = vmatpush.msra.mxu3 %v3110_v63 }
  0x57   : > { %5639 = vst [vmem:[#allocation72_spill] sm:$0xff] %v3073_v7  ;;  %v3122_v7 = vld [vmem:[%s5336_s1 + $0x108] sm:$0xff]  ;;  %628 = vmatpush.msra.mxu2 %v3117_v50 }
  0x58   : > { %5640 = vst [vmem:[#allocation73_spill] sm:$0xff] %v3081_v62  ;;  %v3129_v62 = vld [vmem:[%s5336_s1 + $0x10] sm:$0xff]  ;;  %604 = vmatpush.msra.mxu0 %v3122_v7 }
  0x59   : > { %5641 = vst [vmem:[#allocation74_spill] sm:$0xff] %v3086_v21  ;;  %v3134_v21 = vld [vmem:[%s5336_s1 + $0x330] sm:$0xff]  ;;  %544 = vmatpush.msrb.mxu1 %v3129_v62 }
  0x5a   : > { %5642 = vst [vmem:[#allocation75_spill] sm:$0xff] %v3093_v46  ;;  %v3141_v46 = vld [vmem:[%s5336_s1 + $0x338] sm:$0xff]  ;;  %562 = vmatpush.msra.mxu3 %v3134_v21  ;;  %545 = vmatmul.f32.vlgmr.msrb.gmra.mxu1 %v2730_v40 }
  0x5b   : > { %5643 = vst [vmem:[#allocation76_spill] sm:$0xff] %v3098_v48  ;;  %v3150_v48 = vld [vmem:[%s5336_s1 + $0xe0] sm:$0xff]  ;;  %629 = vmatpush.msra.mxu2 %v3141_v46 }
  0x5c   : > { %5644 = vst [vmem:[#allocation77_spill] sm:$0xff] %v3105_v24  ;;  %v3155_v24 = vld [vmem:[%s5336_s1 + $0x308] sm:$0xff]  ;;  %605 = vmatpush.msra.mxu0 %v3150_v48 }
  0x5d   : > { %5645 = vst [vmem:[#allocation78_spill] sm:$0xff] %v3110_v63  ;;  %563 = vmatpush.msra.mxu3 %v3155_v24  ;;  %v3192_v63 = vld [vmem:[%s5336_s1 + $0x5b8] sm:$0xff] }
  0x5e   : > { %5646 = vst [vmem:[#allocation79_spill] sm:$0xff] %v3117_v50  ;;  %v3162_v50 = vld [vmem:[%s5336_s1 + $0x310] sm:$0xff] }
  0x5f   : > { %5647 = vst [vmem:[#allocation80_spill] sm:$0xff] %v3122_v7  ;;  %v3167_v7 = vld [vmem:[%s5336_s1 + $0x5e0] sm:$0xf]  ;;  %630 = vmatpush.msra.mxu2 %v3162_v50 }
  0x60   : > { %5648 = vst [vmem:[#allocation81_spill] sm:$0xff] %v3129_v62  ;;  %v3180_v62 = vld [vmem:[%s5336_s1 + $0x2e0] sm:$0xff]  ;;  %1981 = vmatpush.msk.msra.mxu1 %vm381_vm0, %v3167_v7 }
  0x61   : > { %5649 = vst [vmem:[#allocation82_spill] sm:$0xff] %v3134_v21  ;;  %v3187_v21 = vld [vmem:[%s5336_s1 + $0x2e8] sm:$0xff]  ;;  %564 = vmatpush.msra.mxu3 %v3180_v62 }
  0x62   : > { %5650 = vst [vmem:[#allocation83_spill] sm:$0xff] %v3141_v46  ;;  %v3175_v46 = vld [vmem:[%s5336_s1 + $0xb8] sm:$0xff]  ;;  %631 = vmatpush.msra.mxu2 %v3187_v21  ;;  %652 = vmatpush.msra.mxu1 %v3192_v63 }
  0x63   : > { %5651 = vst [vmem:[#allocation84_spill] sm:$0xff] %v3150_v48  ;;  %v3200_v48 = vld [vmem:[%s5336_s1 + $0x90] sm:$0xff]  ;;  %606 = vmatpush.msra.mxu0 %v3175_v46  ;;  %548 = vmatmul.f32.gmra.mxu1 %v2835_v11 }
  0x64   : > { %5652 = vst [vmem:[#allocation85_spill] sm:$0xff] %v3155_v24  ;;  %v3205_v24 = vld [vmem:[%s5336_s1 + $0x2b8] sm:$0xff] }
  0x65   : > { %5653 = vst [vmem:[#allocation86_spill] sm:$0xff] %v3162_v50  ;;  %v3212_v50 = vld [vmem:[%s5336_s1 + $0x2c0] sm:$0xff]  ;;  %607 = vmatpush.msra.mxu0 %v3200_v48  ;;  %565 = vmatpush.msra.mxu3 %v3205_v24 }
  0x66   : > { %5654 = vst [vmem:[#allocation87_spill] sm:$0xff] %v3167_v7  ;;  %v3219_v7 = vld [vmem:[%s5336_s1 + $0x68] sm:$0xff]  ;;  %632 = vmatpush.msra.mxu2 %v3212_v50 }
  0x67   : > { %5655 = vst [vmem:[#allocation88_spill] sm:$0xff] %v3175_v46  ;;  %v3224_v46 = vld [vmem:[%s5336_s1 + $0x290] sm:$0xff]  ;;  %608 = vmatpush.msra.mxu0 %v3219_v7 }
  0x68   : > { %5656 = vst [vmem:[#allocation89_spill] sm:$0xff] %v3187_v21  ;;  %v3231_v21 = vld [vmem:[%s5336_s1 + $0x298] sm:$0xff]  ;;  %566 = vmatpush.msra.mxu3 %v3224_v46 }
  0x69   : > { %5657 = vst [vmem:[#allocation90_spill] sm:$0xff] %v3192_v63  ;;  %v3236_v63 = vld [vmem:[%s5336_s1 + $0x590] sm:$0xff]  ;;  %633 = vmatpush.msra.mxu2 %v3231_v21  ;;  %567 = vmatmul.f32.vlgmr.msra.gmra.mxu3 %v2832_v28 }
  0x6a   : > { %5658 = vst [vmem:[#allocation91_spill] sm:$0xff] %v3200_v48  ;;  %v3246_v48 = vld [vmem:[%s5336_s1 + $0x40] sm:$0xff]  ;;  %653 = vmatpush.msra.mxu1 %v3236_v63  ;;  %634 = vmatmul.f32.vlgmr.msra.gmra.mxu2 %v2832_v28 }
  0x6b   : > { %5659 = vst [vmem:[#allocation92_spill] sm:$0xff] %v3212_v50  ;;  %v3253_v50 = vld [vmem:[%s5336_s1 + $0x278] sm:$0xff]  ;;  %609 = vmatpush.msra.mxu0 %v3246_v48  ;;  %780 = vmatpush.msrb.mxu2 %v2330_v4 }
  0x6c   : > { %5660 = vst [vmem:[#allocation93_spill] sm:$0xff] %v3219_v7  ;;  %v3260_v7 = vld [vmem:[%s5336_s1 + $0x568] sm:$0xff]  ;;  %664 = vmatpush.msrb.mxu3 %v3253_v50  ;;  %v3298_v4 = vld [vmem:[%s5336_s1 + $0x518] sm:$0xff] }
  0x6d   : > { %5661 = vst [vmem:[#allocation94_spill] sm:$0xff] %v3224_v46  ;;  %v3279_v46 = vld [vmem:[%s5336_s1 + $0x540] sm:$0xff]  ;;  %654 = vmatpush.msra.mxu1 %v3260_v7  ;;  %781 = vmatpush.msrb.mxu2 %v2352_v8  ;;  %v3317_v8 = vld [vmem:[%s5336_s1 + $0x5e8] sm:$0xf] }
  0x6e   : > { %5662 = vst [vmem:[#allocation95_spill] sm:$0xff] %v3231_v21  ;;  %v3265_v21 = vld [vmem:[%s5336_s1 + $0x18] sm:$0xff] }
  0x6f   : > { %5663 = vst [vmem:[#allocation96_spill] sm:$0xff] %v3236_v63  ;;  %v3272_v63 = vld [vmem:[%s5336_s1 + $0x250] sm:$0xff]  ;;  %610 = vmatpush.msra.mxu0 %v3265_v21  ;;  %655 = vmatpush.msra.mxu1 %v3279_v46 }
  0x70   : > { %5664 = vst [vmem:[#allocation97_spill] sm:$0xff] %v3246_v48  ;;  %v3284_v48 = vld [vmem:[%s5336_s1 + $0x4f8] sm:$0xff]  ;;  %665 = vmatpush.msrb.mxu3 %v3272_v63  ;;  %782 = vmatpush.msrb.mxu2 %v2376_v12 }
  0x71   : > { %5665 = vst [vmem:[#allocation98_spill] sm:$0xff] %v3253_v50  ;;  %v3291_v50 = vld [vmem:[%s5336_s1 + $0x228] sm:$0xff]  ;;  %687 = vmatpush.msrb.mxu0 %v3284_v48  ;;  %656 = vmatpush.msra.mxu1 %v3298_v4  ;;  %v3331_v12 = vld [vmem:[%s5336_s1 + $0x1d8] sm:$0xff] }
  0x72   : > { %5666 = vst [vmem:[#allocation99_spill] sm:$0xff] %v3260_v7  ;;  %v3303_v7 = vld [vmem:[%s5336_s1 + $0x4d0] sm:$0xff]  ;;  %666 = vmatpush.msrb.mxu3 %v3291_v50  ;;  %611 = vmatmul.f32.vlgmr.msra.gmra.mxu0 %v2730_v40 }
  0x73   : > { %5667 = vst [vmem:[#allocation100_spill] sm:$0xff] %v3265_v21  ;;  %v3310_v21 = vld [vmem:[%s5336_s1 + $0x200] sm:$0xff]  ;;  %688 = vmatpush.msrb.mxu0 %v3303_v7  ;;  %1984 = vmatpush.msk.msrb.mxu1 %vm381_vm0, %v3317_v8 }
  0x74   : > { %5668 = vst [vmem:[#allocation101_spill] sm:$0xff] %v3279_v46  ;;  %667 = vmatpush.msrb.mxu3 %v3310_v21  ;;  %783 = vmatpush.msrb.mxu2 %v2388_v14  ;;  %v3359_v14 = vld [vmem:[%s5336_s1 + $0x598] sm:$0xff]  ;;  %v3371_v46 = vld [vmem:[%s5336_s1 + $0x188] sm:$0xff] }
  0x75   : > { %5669 = vst [vmem:[#allocation102_spill] sm:$0xff] %v3284_v48  ;;  %v3324_v48 = vld [vmem:[%s5336_s1 + $0x4a8] sm:$0xff]  ;;  %637 = vmatmul.f32.gmra.mxu2 %v2950_v3  ;;  %1982 = vmatmul.msk.f32.vlgmr.msra.gmra.mxu1 %vm374_vm1, %v2630_v52 }
  0x76   : > { %5670 = vst [vmem:[#allocation103_spill] sm:$0xff] %v3298_v4  ;;  %689 = vmatpush.msrb.mxu0 %v3324_v48  ;;  %v3346_v4 = vld [vmem:[%s5336_s1 + $0x480] sm:$0xff]  ;;  %668 = vmatpush.msrb.mxu3 %v3331_v12 }
  0x77   : > { %5671 = vst [vmem:[#allocation104_spill] sm:$0xff] %v3303_v7  ;;  %v3339_v7 = vld [vmem:[%s5336_s1 + $0x5c0] sm:$0xff]  ;;  %784 = vmatpush.msrb.mxu2 %v2416_v18  ;;  %v3385_v18 = vld [vmem:[%s5336_s1 + $0x430] sm:$0xff]  ;;  %570 = vmatmul.f32.gmra.mxu3 %v2950_v3 }
  0x78   : > { %5672 = vst [vmem:[#allocation105_spill] sm:$0xff] %v3317_v8  ;;  %v3351_v8 = vld [vmem:[%s5336_s1 + $0x1b0] sm:$0xff]  ;;  %721 = vmatpush.msrb.mxu1 %v3339_v7  ;;  %690 = vmatpush.msrb.mxu0 %v3346_v4 }
  0x79   : > { %5673 = vst [vmem:[#allocation106_spill] sm:$0xff] %v3324_v48  ;;  %v3366_v48 = vld [vmem:[%s5336_s1 + $0x458] sm:$0xff]  ;;  %669 = vmatpush.msrb.mxu3 %v3351_v8  ;;  %785 = vmatpush.msrb.mxu2 %v2445_v23  ;;  %v3404_v23 = vld [vmem:[%s5336_s1 + $0x408] sm:$0xff] }
  0x7a   : > { %5674 = vst [vmem:[#allocation107_spill] sm:$0xff] %v3339_v7  ;;  %v3378_v7 = vld [vmem:[%s5336_s1 + $0x570] sm:$0xff]  ;;  %722 = vmatpush.msrb.mxu1 %v3359_v14  ;;  %691 = vmatpush.msrb.mxu0 %v3366_v48 }
  0x7b   : > { %5675 = vst [vmem:[#allocation108_spill] sm:$0xff] %v3346_v4  ;;  %v3390_v4 = vld [vmem:[%s5336_s1 + $0x160] sm:$0xff]  ;;  %670 = vmatpush.msrb.mxu3 %v3371_v46  ;;  %786 = vmatpush.msrb.mxu2 %v2470_v27 }
  0x7c   : > { %5676 = vst [vmem:[#allocation109_spill] sm:$0xff] %v3359_v14  ;;  %v3397_v14 = vld [vmem:[%s5336_s1 + $0x548] sm:$0xff]  ;;  %723 = vmatpush.msrb.mxu1 %v3378_v7  ;;  %692 = vmatpush.msrb.mxu0 %v3385_v18  ;;  %v3418_v27 = vld [vmem:[%s5336_s1 + $0x520] sm:$0xff] }
  0x7d   : > { %5677 = vst [vmem:[#allocation110_spill] sm:$0xff] %v3366_v48  ;;  %671 = vmatpush.msrb.mxu3 %v3390_v4  ;;  %v3411_v48 = vld [vmem:[%s5336_s1 + $0x138] sm:$0xff]  ;;  %614 = vmatmul.f32.gmra.mxu0 %v2835_v11 }
  0x7e   : > { %5678 = vst [vmem:[#allocation111_spill] sm:$0xff] %v3378_v7  ;;  %724 = vmatpush.msrb.mxu1 %v3397_v14  ;;  %787 = vmatpush.msrb.mxu2 %v2494_v31  ;;  %v3425_v7 = vld [vmem:[%s5336_s1 + $0x3e0] sm:$0xff]  ;;  %v3440_v31 = vld [vmem:[%s5336_s1 + $0x3b8] sm:$0xff] }
  0x7f   : > { %5679 = vst [vmem:[#allocation112_spill] sm:$0xff] %v3397_v14  ;;  %693 = vmatpush.msrb.mxu0 %v3404_v23  ;;  %1983 = vmatmul.msk.f32.gmra.mxu1 %vm374_vm1, %v2736_v36  ;;  %v3433_v14 = vld [vmem:[%s5336_s1 + $0x110] sm:$0xff] }
  0x80   : > { %5680 = vst [vmem:[#allocation113_spill] sm:$0xff] %v3404_v23  ;;  %672 = vmatpush.msrb.mxu3 %v3411_v48  ;;  %725 = vmatpush.msrb.mxu1 %v3418_v27  ;;  %v3447_v23 = vld [vmem:[%s5336_s1 + $0xe8] sm:$0xff] }
  0x81   : > { %5681 = vst [vmem:[#allocation114_spill] sm:$0xff] %v3418_v27  ;;  %788 = vmatpush.msrb.mxu2 %v2523_v35  ;;  %694 = vmatpush.msrb.mxu0 %v3425_v7  ;;  %v3454_v35 = vld [vmem:[%s5336_s1 + $0x390] sm:$0xff]  ;;  %v3503_v27 = vld [vmem:[%s5336_s1 + $0x48] sm:$0xff] }
  0x82   : > { %802 = vmatpush.msra.mxu1 %v2335_v5  ;;  %673 = vmatpush.msrb.mxu3 %v3433_v14  ;;  %v3461_v5 = vld [vmem:[%s5336_s1 + $0xc0] sm:$0xff] }
  0x83   : > { %789 = vmatpush.msrb.mxu2 %v2547_v39  ;;  %695 = vmatpush.msrb.mxu0 %v3440_v31  ;;  %v3468_v39 = vld [vmem:[%s5336_s1 + $0x368] sm:$0xff] }
  0x84   : > { %803 = vmatpush.msra.mxu1 %v2359_v9  ;;  %674 = vmatpush.msrb.mxu3 %v3447_v23  ;;  %v3475_v9 = vld [vmem:[%s5336_s1 + $0x98] sm:$0xff] }
  0x85   : > { %790 = vmatpush.msrb.mxu2 %v2572_v43  ;;  %696 = vmatpush.msrb.mxu0 %v3454_v35  ;;  %v3482_v43 = vld [vmem:[%s5336_s1 + $0x340] sm:$0xff] }
  0x86   : > { %804 = vmatpush.msra.mxu1 %v2381_v13  ;;  %675 = vmatpush.msrb.mxu3 %v3461_v5  ;;  %v3489_v13 = vld [vmem:[%s5336_s1 + $0x70] sm:$0xff] }
  0x87   : > { %791 = vmatpush.msrb.mxu2 %v2596_v47  ;;  %697 = vmatpush.msrb.mxu0 %v3468_v39  ;;  %v3496_v47 = vld [vmem:[%s5336_s1 + $0x318] sm:$0xff] }
  0x88   : > { %805 = vmatpush.msra.mxu1 %v2393_v15  ;;  %676 = vmatpush.msrb.mxu3 %v3475_v9  ;;  %v3510_v15 = vld [vmem:[%s5336_s1 + $0x2f0] sm:$0xff] }
  0x89   : > { %792 = vmatpush.msrb.mxu2 %v2625_v51  ;;  %698 = vmatpush.msrb.mxu0 %v3482_v43  ;;  %v3517_v51 = vld [vmem:[%s5336_s1 + $0x20] sm:$0xff] }
  0x8a   : > { %806 = vmatpush.msra.mxu1 %v2421_v19  ;;  %677 = vmatpush.msrb.mxu3 %v3489_v13  ;;  %v3526_v19 = vld [vmem:[%s5336_s1 + $0x2c8] sm:$0xff] }
  0x8b   : > { %793 = vmatpush.msrb.mxu2 %v2659_v57  ;;  %699 = vmatpush.msrb.mxu0 %v3496_v47  ;;  %v5710_v57 = vld [vmem:[#allocation9_spill] sm:$0xff] }
  0x8c   : > { %807 = vmatpush.msra.mxu1 %v2458_v25  ;;  %678 = vmatpush.msrb.mxu3 %v3503_v27  ;;  %v3535_v25 = vld [vmem:[%s5336_s1 + $0x2a0] sm:$0xff] }
  0x8d   : > { %794 = vmatpush.msrb.mxu2 %v2684_v61  ;;  %700 = vmatpush.msrb.mxu0 %v3510_v15  ;;  %v5714_v61 = vld [vmem:[#allocation10_spill] sm:$0xff] }
  0x8e   : > { %808 = vmatpush.msra.mxu1 %v2482_v29  ;;  %679 = vmatpush.msrb.mxu3 %v3517_v51  ;;  %v5692_v29 = vld [vmem:[#allocation50_spill] sm:$0xff] }
  0x8f   : > { %795 = vmatpush.msrb.mxu2 %v2708_v53  ;;  %680 = vmatmul.f32.vlgmr.msrb.gmra.mxu3 %v2730_v40  ;;  %v5699_v40 = vld [vmem:[#allocation33_spill] sm:$0xff]  ;;  %v5706_v53 = vld [vmem:[#allocation8_spill] sm:$0xff] }
  0x90   : > { %701 = vmatpush.msrb.mxu0 %v3526_v19  ;;  %809 = vmatpush.msra.mxu1 %v2511_v33  ;;  %v5694_v33 = vld [vmem:[#allocation5_spill] sm:$0xff] }
  0x91   : > { %1994 = vmatpush.msk.msra.mxu3 %vm381_vm0, %v2307_v0  ;;  %1997 = vmatpush.msk.msra.mxu2 %vm381_vm0, %v2741_v32  ;;  %v3565_v0 = vld [vmem:[%s2601_s11 + $0x30] sm:$0xff]  ;;  %v5693_v32 = vld [vmem:[#allocation17_spill] sm:$0xff] }
  0x92   : > { %702 = vmatpush.msrb.mxu0 %v3535_v25  ;;  %810 = vmatpush.msra.mxu1 %v2535_v37  ;;  %v5697_v37 = vld [vmem:[#allocation19_spill] sm:$0xff] }
  0x93   : > { %835 = vmatpush.msra.mxu3 %v2317_v2  ;;  %901 = vmatpush.msra.mxu2 %v2765_v44  ;;  %v5682_v2 = vld [vmem:[#allocation2_spill] sm:$0xff]  ;;  %v5702_v44 = vld [vmem:[#allocation7_spill] sm:$0xff] }
  0x94   : > { %1985 = vmatmul.msk.f32.vlgmr.msrb.gmra.mxu1 %vm374_vm1, %v2630_v52  ;;  %846 = vmatpush.msra.mxu0 %v2440_v22  ;;  %v3590_v22 = vld [vmem:[%s2601_s11 + $0x38] sm:$0xff] }
  0x95   : > { %811 = vmatpush.msra.mxu1 %v2560_v41  ;;  %836 = vmatpush.msra.mxu3 %v2342_v6  ;;  %v5683_v6 = vld [vmem:[#allocation42_spill] sm:$0xff]  ;;  %v5705_v52 = vld [vmem:[#allocation25_spill] sm:$0xff] }
  0x96   : > { %902 = vmatpush.msra.mxu2 %v2791_v59  ;;  %847 = vmatpush.msra.mxu0 %v2465_v26  ;;  %v5689_v26 = vld [vmem:[#allocation15_spill] sm:$0xff]  ;;  %v5700_v41 = vld [vmem:[#allocation58_spill] sm:$0xff] }
  0x97   : > { %703 = vmatmul.f32.vlgmr.msrb.gmra.mxu0 %v2832_v28  ;;  %812 = vmatpush.msra.mxu1 %v2584_v45  ;;  %v5691_v28 = vld [vmem:[#allocation27_spill] sm:$0xff]  ;;  %v5703_v45 = vld [vmem:[#allocation36_spill] sm:$0xff]  ;;  %v5712_v59 = vld [vmem:[#allocation70_spill] sm:$0xff] }
  0x98   : > { %837 = vmatpush.msra.mxu3 %v2364_v10  ;;  %903 = vmatpush.msra.mxu2 %v2815_v55  ;;  %v5684_v10 = vld [vmem:[#allocation21_spill] sm:$0xff]  ;;  %v5708_v55 = vld [vmem:[#allocation66_spill] sm:$0xff] }
  0x99   : > { %848 = vmatpush.msra.mxu0 %v2489_v30  ;;  %683 = vmatmul.f32.gmra.mxu3 %v2835_v11  ;;  %v3583_v11 = vld [vmem:[%s2601_s11 + $0x40] sm:$0xff]  ;;  %v3600_v30 = vld [vmem:[%s2601_s11 + $0x48] sm:$0x3] }
  0x9a   : > { %813 = vmatpush.msra.mxu1 %v2613_v49  ;;  %838 = vmatpush.msra.mxu3 %v2400_v16  ;;  %v5685_v16 = vld [vmem:[#allocation13_spill] sm:$0xff]  ;;  %v5704_v49 = vld [vmem:[#allocation62_spill] sm:$0xff] }
  0x9b   : > { %904 = vmatpush.msra.mxu2 %v2849_v17  ;;  %849 = vmatpush.msra.mxu0 %v2518_v34  ;;  %v5687_v17 = vld [vmem:[#allocation46_spill] sm:$0xff] }
  0x9c   : > { %814 = vmatpush.msra.mxu1 %v2642_v54  ;;  %839 = vmatpush.msra.mxu3 %v2428_v20  ;;  %v5688_v20 = vld [vmem:[#allocation24_spill] sm:$0xff]  ;;  %v5695_v34 = vld [vmem:[#allocation30_spill] sm:$0xff]  ;;  %v5707_v54 = vld [vmem:[#allocation39_spill] sm:$0xff] }
  0x9d   : > { %905 = vmatpush.msra.mxu2 %v2873_v56  ;;  %1986 = vmatmul.msk.f32.gmra.mxu1 %vm374_vm1, %v2736_v36  ;;  %v5696_v36 = vld [vmem:[#allocation54_spill] sm:$0xff]  ;;  %v5709_v56 = vld [vmem:[#allocation28_spill] sm:$0xff] }
  0x9e   : > { %796 = vmatmul.f32.vlgmr.msrb.gmra.mxu2 %v3565_v0  ;;  %850 = vmatpush.msra.mxu0 %v2542_v38  ;;  %v5698_v38 = vld [vmem:[#allocation6_spill] sm:$0xff] }
  0x9f   : > { %868 = vmatpush.msrb.mxu3 %v2312_v1  ;;  %934 = vmatpush.msrb.mxu2 %v2861_v60  ;;  %v5686_v1 = vld [vmem:[#allocation3_spill] sm:$0xff] }
  0xa0   : > { %815 = vmatpush.msra.mxu1 %v2667_v58  ;;  %851 = vmatpush.msra.mxu0 %v2567_v42  ;;  %v5701_v42 = vld [vmem:[#allocation22_spill] sm:$0xff]  ;;  %v5711_v58 = vld [vmem:[#allocation41_spill] sm:$0xff]  ;;  %v5713_v60 = vld [vmem:[#allocation31_spill] sm:$0xff] }
  0xa1   : > { %869 = vmatpush.msrb.mxu3 %v5682_v2  ;;  %935 = vmatpush.msrb.mxu2 %v5683_v6  ;;  %v5715_v2 = vld [vmem:[#allocation45_spill] sm:$0xff]  ;;  %v5716_v6 = vld [vmem:[#allocation74_spill] sm:$0xff] }
  0xa2   : > { %706 = vmatmul.f32.gmra.mxu0 %v2950_v3  ;;  %816 = vmatpush.msra.mxu1 %v5684_v10  ;;  %v5690_v3 = vld [vmem:[#allocation4_spill] sm:$0xff]  ;;  %v5717_v10 = vld [vmem:[#allocation34_spill] sm:$0xff] }
  0xa3   : > { %852 = vmatpush.msra.mxu0 %v5685_v16  ;;  %870 = vmatpush.msrb.mxu3 %v5686_v1  ;;  %v5718_v16 = vld [vmem:[#allocation11_spill] sm:$0xff]  ;;  %v5719_v1 = vld [vmem:[#allocation49_spill] sm:$0xff] }
  0xa4   : > { %936 = vmatpush.msrb.mxu2 %v5687_v17  ;;  %817 = vmatpush.msra.mxu1 %v5688_v20  ;;  %v5720_v17 = vld [vmem:[#allocation78_spill] sm:$0xff]  ;;  %v3634_v20 = vld [vmem:[%s2601_s11 + $0x58] sm:$0x3] }
  0xa5   : > { %1995 = vmatmul.msk.f32.vlgmr.msra.gmra.mxu3 %vm374_vm1, %v3583_v11  ;;  %853 = vmatpush.msra.mxu0 %v5689_v26  ;;  %v5721_v26 = vld [vmem:[#allocation37_spill] sm:$0xff] }
  0xa6   : > { %871 = vmatpush.msrb.mxu3 %v5690_v3  ;;  %912 = vmatpush.msrb.mxu1 %v5691_v28  ;;  %v5722_v3 = vld [vmem:[#allocation12_spill] sm:$0xff] }
  0xa7   : > { %937 = vmatpush.msrb.mxu2 %v5692_v29  ;;  %818 = vmatmul.f32.vlgmr.msra.gmra.mxu1 %v3590_v22  ;;  %v5723_v29 = vld [vmem:[#allocation53_spill] sm:$0xff] }
  0xa8   : > { %854 = vmatpush.msra.mxu0 %v5693_v32  ;;  %872 = vmatpush.msrb.mxu3 %v5694_v33  ;;  %v5724_v32 = vld [vmem:[#allocation82_spill] sm:$0xff]  ;;  %v5725_v33 = vld [vmem:[#allocation23_spill] sm:$0xff] }
  0xa9   : > { %913 = vmatpush.msrb.mxu1 %v5695_v34  ;;  %938 = vmatpush.msrb.mxu2 %v5696_v36  ;;  %v5726_v36 = vld [vmem:[#allocation14_spill] sm:$0xff] }
  0xaa   : > { %799 = vmatmul.f32.gmra.mxu2 %v3600_v30  ;;  %855 = vmatpush.msra.mxu0 %v5697_v37  ;;  %v3638_v28 = vpop.f32.mrf.mxu3  ;;  %v5727_v37 = vld [vmem:[#allocation57_spill] sm:$0xff] }
  0xab   : > { %873 = vmatpush.msrb.mxu3 %v5698_v38  ;;  %914 = vmatpush.msrb.mxu1 %v5699_v40  ;;  %v3646_v34 = vpop.f32.mrf.mxu0  ;;  %v5728_v38 = vld [vmem:[#allocation85_spill] sm:$0xff]  ;;  %v5729_v40 = vld [vmem:[#allocation26_spill] sm:$0xff] }
  0xac   : > { %939 = vmatpush.msrb.mxu2 %v5700_v41  ;;  %856 = vmatpush.msra.mxu0 %v5701_v42  ;;  %v5730_v41 = vld [vmem:[#allocation16_spill] sm:$0xff]  ;;  %v5731_v42 = vld [vmem:[#allocation61_spill] sm:$0xff] }
  0xad   : > { %874 = vmatpush.msrb.mxu3 %v5702_v44  ;;  %915 = vmatpush.msrb.mxu1 %v5703_v45  ;;  %v5732_v44 = vld [vmem:[#allocation29_spill] sm:$0xff]  ;;  %v5733_v45 = vld [vmem:[#allocation18_spill] sm:$0xff] }
  0xae   : > { %940 = vmatpush.msrb.mxu2 %v5704_v49  ;;  %857 = vmatpush.msra.mxu0 %v5705_v52  ;;  %v5734_v49 = vld [vmem:[#allocation65_spill] sm:$0xff]  ;;  %v3662_v52 = vld [vmem:[%s2601_s11 + $0x50] sm:$0x3] }
  0xaf   : > { %875 = vmatpush.msrb.mxu3 %v5706_v53  ;;  %916 = vmatpush.msrb.mxu1 %v5707_v54  ;;  %v5735_v53 = vld [vmem:[#allocation32_spill] sm:$0xff] }
  0xb0   : > { %941 = vmatpush.msrb.mxu2 %v5708_v55  ;;  %858 = vmatpush.msra.mxu0 %v5709_v56  ;;  %v5736_v55 = vld [vmem:[#allocation20_spill] sm:$0xff]  ;;  %v5737_v56 = vld [vmem:[#allocation69_spill] sm:$0xff] }
  0xb1   : > { %876 = vmatpush.msrb.mxu3 %v5710_v57  ;;  %917 = vmatpush.msrb.mxu1 %v5711_v58  ;;  %v5738_v57 = vld [vmem:[#allocation94_spill] sm:$0xff]  ;;  %v5739_v58 = vld [vmem:[#allocation35_spill] sm:$0xff] }
  0xb2   : > { %942 = vmatpush.msrb.mxu2 %v5712_v59  ;;  %859 = vmatpush.msra.mxu0 %v5713_v60  ;;  %v461_v54 = vpop.f32.mrf.mxu3  ;;  %v5740_v59 = vld [vmem:[#allocation44_spill] sm:$0xff]  ;;  %v5741_v60 = vld [vmem:[#allocation98_spill] sm:$0xff] }
  0xb3   : > { %1998 = vmatmul.msk.f32.vlgmr.msra.gmra.mxu2 %vm374_vm1, %v3583_v11  ;;  %877 = vmatpush.msrb.mxu3 %v5714_v61  ;;  %v5743_v61 = vld [vmem:[#allocation38_spill] sm:$0xff]  ;;  %v5766_v54 = vld [vmem:[#allocation103_spill] sm:$0xff] }
  0xb4   : > { %918 = vmatpush.msrb.mxu1 %v5715_v2  ;;  %943 = vmatpush.msrb.mxu2 %v5716_v6  ;;  %v5744_v2 = vld [vmem:[#allocation48_spill] sm:$0xff]  ;;  %v5745_v6 = vld [vmem:[#allocation77_spill] sm:$0xff] }
  0xb5   : > { %860 = vmatpush.msra.mxu0 %v5717_v10  ;;  %878 = vmatpush.msrb.mxu3 %v5718_v16  ;;  %v5746_v10 = vld [vmem:[#allocation40_spill] sm:$0xff] }
  0xb6   : > { %919 = vmatpush.msrb.mxu1 %v5719_v1  ;;  %944 = vmatpush.msrb.mxu2 %v5720_v17  ;;  %v5747_v16 = vld [vmem:[#allocation52_spill] sm:$0xff]  ;;  %v5748_v17 = vld [vmem:[#allocation81_spill] sm:$0xff] }
  0xb7   : > { %861 = vmatpush.msra.mxu0 %v5721_v26  ;;  %879 = vmatpush.msrb.mxu3 %v5722_v3  ;;  %v5749_v26 = vld [vmem:[#allocation43_spill] sm:$0xff]  ;;  %v5750_v3 = vld [vmem:[#allocation56_spill] sm:$0xff] }
  0xb8   : > { %920 = vmatpush.msrb.mxu1 %v5723_v29  ;;  %945 = vmatpush.msrb.mxu2 %v5724_v32  ;;  %v5751_v29 = vld [vmem:[#allocation87_spill] sm:$0xff]  ;;  %v5753_v32 = vld [vmem:[#allocation60_spill] sm:$0xff] }
  0xb9   : > { %1996 = vmatmul.msk.f32.gmra.mxu3 %vm374_vm1, %v3634_v20  ;;  %2000 = vmatpush.msk.msrb.mxu0 %vm381_vm0, %v5725_v33  ;;  %v5754_v33 = vld [vmem:[#allocation90_spill] sm:$0xff] }
  0xba   : > { %880 = vmatpush.msrb.mxu3 %v5726_v36  ;;  %921 = vmatpush.msrb.mxu1 %v5727_v37  ;;  %v3684_v1 = vpop.f32.mrf.mxu2  ;;  %v5755_v36 = vld [vmem:[#allocation51_spill] sm:$0xff]  ;;  %v5756_v37 = vld [vmem:[#allocation64_spill] sm:$0xff] }
  0xbb   : > { %946 = vmatpush.msrb.mxu2 %v5728_v38  ;;  %862 = vmatmul.f32.vlgmr.msra.gmra.mxu0 %v3565_v0  ;;  %v5758_v38 = vld [vmem:[#allocation55_spill] sm:$0xff] }
  0xbc   : > { %1999 = vmatmul.msk.f32.gmra.mxu2 %vm374_vm1, %v3634_v20  ;;  %967 = vmatpush.msrb.mxu0 %v5729_v40  ;;  %v5759_v40 = vld [vmem:[#allocation68_spill] sm:$0xff] }
  0xbd   : > { %881 = vmatpush.msrb.mxu3 %v5730_v41  ;;  %922 = vmatpush.msrb.mxu1 %v5731_v42  ;;  %v5760_v41 = vld [vmem:[#allocation99_spill] sm:$0xff] }
  0xbe   : > { %947 = vmatpush.msrb.mxu2 %v3180_v62  ;;  %968 = vmatpush.msrb.mxu0 %v5732_v44  ;;  %v417_v62 = vpop.f32.mrf.mxu0  ;;  %v5762_v44 = vld [vmem:[#allocation72_spill] sm:$0xff] }
  0xbf   : > { %882 = vmatpush.msrb.mxu3 %v5733_v45  ;;  %923 = vmatpush.msrb.mxu1 %v5734_v49  ;;  %v5763_v45 = vld [vmem:[#allocation101_spill] sm:$0xff]  ;;  %v5764_v49 = vld [vmem:[#allocation63_spill] sm:$0xff]  ;;  %v5772_v62 = vld [vmem:[#allocation84_spill] sm:$0xff] }
  0xc0   : > { %948 = vmatpush.msrb.mxu2 %v3205_v24  ;;  %969 = vmatpush.msrb.mxu0 %v5735_v53  ;;  %v5742_v24 = vld [vmem:[#allocation73_spill] sm:$0xff]  ;;  %v5765_v53 = vld [vmem:[#allocation76_spill] sm:$0xff] }
  0xc1   : > { %883 = vmatpush.msrb.mxu3 %v5736_v55  ;;  %924 = vmatpush.msrb.mxu1 %v5737_v56  ;;  %v5767_v55 = vld [vmem:[#allocation67_spill] sm:$0xff]  ;;  %v5769_v56 = vld [vmem:[#allocation80_spill] sm:$0xff] }
  0xc2   : > { %949 = vmatpush.msrb.mxu2 %v5738_v57  ;;  %821 = vmatmul.f32.gmra.mxu1 %v3662_v52  ;;  %v5770_v57 = vld [vmem:[#allocation71_spill] sm:$0xff] }
  0xc3   : > { %884 = vmatmul.f32.vlgmr.msrb.gmra.mxu3 %v3590_v22  ;;  %970 = vmatpush.msrb.mxu0 %v5739_v58  ;;  %v5773_v58 = vld [vmem:[#allocation75_spill] sm:$0xff] }
  0xc4   : > { %978 = vmatpush.msra.mxu3 %v5740_v59  ;;  %1047 = vmatpush.msra.mxu2 %v5741_v60  ;;  %v5774_v59 = vld [vmem:[#allocation106_spill] sm:$0xff]  ;;  %v3728_v60 = vpop.f32.mrf.mxu3 }
  0xc5   : > { %925 = vmatpush.msrb.mxu1 %v5742_v24  ;;  %865 = vmatmul.f32.gmra.mxu0 %v3600_v30  ;;  %v505_v42 = vpop.f32.mrf.mxu2 }
  0xc6   : > { %950 = vmatmul.f32.vlgmr.msrb.gmra.mxu2 %v3590_v22  ;;  %971 = vmatpush.msrb.mxu0 %v5743_v61  ;;  %v5776_v61 = vld [vmem:[#allocation79_spill] sm:$0xff] }
  0xc7   : > { %979 = vmatpush.msra.mxu3 %v5744_v2  ;;  %1048 = vmatpush.msra.mxu2 %v3272_v63  ;;  %v5752_v63 = vld [vmem:[#allocation47_spill] sm:$0xff]  ;;  %v5777_v2 = vld [vmem:[#allocation108_spill] sm:$0xff] }
  0xc8   : > { %926 = vmatpush.msrb.mxu1 %v5745_v6  ;;  %1001 = vmatpush.msra.mxu0 %v5746_v10  ;;  %v5779_v10 = vld [vmem:[#allocation83_spill] sm:$0xff] }
  0xc9   : > { %980 = vmatpush.msra.mxu3 %v5747_v16  ;;  %1049 = vmatpush.msra.mxu2 %v3291_v50  ;;  %v3695_v50 = vpop.f32.mrf.mxu1  ;;  %v5780_v16 = vld [vmem:[#allocation110_spill] sm:$0xff]  ;;  %v3822_v42 = vld [vmem:[%s5336_s1 + $0x528] sm:$0xff] }
  0xca   : > { %927 = vmatpush.msrb.mxu1 %v5748_v17  ;;  %1002 = vmatpush.msra.mxu0 %v5749_v26  ;;  %v5782_v17 = vld [vmem:[#allocation86_spill] sm:$0xff]  ;;  %v5783_v26 = vld [vmem:[#allocation97_spill] sm:$0xff] }
  0xcb   : > { %981 = vmatpush.msra.mxu3 %v5750_v3  ;;  %1050 = vmatpush.msra.mxu2 %v3310_v21  ;;  %v5757_v21 = vld [vmem:[#allocation96_spill] sm:$0xff]  ;;  %v5784_v3 = vld [vmem:[#allocation89_spill] sm:$0xff] }
  0xcc   : > { %2003 = vmatpush.msk.msra.mxu1 %vm381_vm0, %v5751_v29  ;;  %1003 = vmatpush.msra.mxu0 %v5752_v63  ;;  %v5785_v29 = vld [vmem:[#allocation113_spill] sm:$0xff] }
  0xcd   : > { %928 = vmatmul.f32.vlgmr.msrb.gmra.mxu1 %v3565_v0  ;;  %982 = vmatpush.msra.mxu3 %v5753_v32 }
  0xce   : > { %1035 = vmatpush.msra.mxu1 %v5754_v33  ;;  %1051 = vmatpush.msra.mxu2 %v3331_v12  ;;  %v5761_v12 = vld [vmem:[#allocation59_spill] sm:$0xff]  ;;  %v5786_v33 = vld [vmem:[#allocation100_spill] sm:$0xff] }
  0xcf   : > { %1004 = vmatpush.msra.mxu0 %v5755_v36  ;;  %983 = vmatpush.msra.mxu3 %v5756_v37  ;;  %v3730_v24 = vpop.f32.mrf.mxu2  ;;  %v3765_v36 = vld [vmem:[%s5336_s1 + $0x5c8] sm:$0xf] }
  0xd0   : > { %2001 = vmatmul.msk.f32.vlgmr.msrb.gmra.mxu0 %vm374_vm1, %v3583_v11  ;;  %1036 = vmatpush.msra.mxu1 %v5757_v21  ;;  %v5789_v37 = vld [vmem:[#allocation95_spill] sm:$0xff]  ;;  %v3784_v21 = vld [vmem:[%s5336_s1 + $0x258] sm:$0xff] }
  0xd1   : > { %1052 = vmatpush.msra.mxu2 %v3351_v8  ;;  %1005 = vmatpush.msra.mxu0 %v5758_v38  ;;  %v439_v8 = vpop.f32.mrf.mxu1  ;;  %v3792_v38 = vld [vmem:[%s5336_s1 + $0x578] sm:$0xff] }
  0xd2   : > { %984 = vmatpush.msra.mxu3 %v5759_v40  ;;  %1037 = vmatpush.msra.mxu1 %v5760_v41  ;;  %v3798_v40 = vld [vmem:[%s5336_s1 + $0x230] sm:$0xff] }
  0xd3   : > { %1053 = vmatpush.msra.mxu2 %v3371_v46  ;;  %1006 = vmatpush.msra.mxu0 %v5761_v12  ;;  %v5768_v46 = vld [vmem:[#allocation102_spill] sm:$0xff]  ;;  %v3807_v41 = vld [vmem:[%s5336_s1 + $0x550] sm:$0xff]  ;;  %v3813_v12 = vld [vmem:[%s5336_s1 + $0x208] sm:$0xff] }
  0xd4   : > { %985 = vmatpush.msra.mxu3 %v5762_v44  ;;  %1038 = vmatpush.msra.mxu1 %v5763_v45  ;;  %v3828_v44 = vld [vmem:[%s5336_s1 + $0x1e0] sm:$0xff]  ;;  %v3864_v8 = vld [vmem:[%s5336_s1 + $0x190] sm:$0xff] }
  0xd5   : > { %1054 = vmatpush.msra.mxu2 %v3390_v4  ;;  %1007 = vmatpush.msra.mxu0 %v5764_v49  ;;  %v5771_v4 = vld [vmem:[#allocation104_spill] sm:$0xff]  ;;  %v3837_v45 = vld [vmem:[%s5336_s1 + $0x500] sm:$0xff]  ;;  %v3845_v49 = vld [vmem:[%s5336_s1 + $0x1b8] sm:$0xff] }
  0xd6   : > { %986 = vmatpush.msra.mxu3 %v5765_v53  ;;  %1039 = vmatpush.msra.mxu1 %v5766_v54  ;;  %v3870_v53 = vld [vmem:[%s5336_s1 + $0x4b0] sm:$0xff]  ;;  %v3876_v54 = vld [vmem:[%s5336_s1 + $0x4b8] sm:$0xff] }
  0xd7   : > { %1055 = vmatpush.msra.mxu2 %v3411_v48  ;;  %1008 = vmatpush.msra.mxu0 %v5767_v55  ;;  %v5775_v48 = vld [vmem:[#allocation88_spill] sm:$0xff]  ;;  %v593_v32 = vpop.f32.mrf.mxu2  ;;  %5795 = vst [vmem:[#allocation2_spill] sm:$0xff] %v3876_v54  ;;  %v3890_v55 = vld [vmem:[%s5336_s1 + $0x488] sm:$0xff] }
  0xd8   : > { %1070 = vmatpush.msrb.mxu1 %v5768_v46  ;;  %987 = vmatpush.msra.mxu3 %v5769_v56  ;;  %v3896_v46 = vld [vmem:[%s5336_s1 + $0x490] sm:$0xff]  ;;  %v3911_v56 = vld [vmem:[%s5336_s1 + $0x460] sm:$0xff]  ;;  %v4040_v32 = vld [vmem:[%s5336_s1 + $0x78] sm:$0xff] }
  0xd9   : > { %1056 = vmatpush.msra.mxu2 %v3433_v14  ;;  %1009 = vmatpush.msra.mxu0 %v5770_v57  ;;  %v3734_v14 = vpop.f32.mrf.mxu0  ;;  %v3740_v6 = vpop.f32.mrf.mxu1  ;;  %5796 = vst [vmem:[#allocation42_spill] sm:$0xff] %v3896_v46 }
  0xda   : > { %1071 = vmatpush.msrb.mxu1 %v5771_v4  ;;  %988 = vmatpush.msra.mxu3 %v5772_v62  ;;  %v3933_v4 = vld [vmem:[%s5336_s1 + $0x118] sm:$0xff] }
  0xdb   : > { %1057 = vmatpush.msra.mxu2 %v3447_v23  ;;  %1010 = vmatpush.msra.mxu0 %v5773_v58  ;;  %v5778_v23 = vld [vmem:[#allocation91_spill] sm:$0xff]  ;;  %v3939_v62 = vld [vmem:[%s5336_s1 + $0x438] sm:$0xff]  ;;  %v3957_v58 = vld [vmem:[%s5336_s1 + $0xf0] sm:$0xff] }
  0xdc   : > { %1072 = vmatpush.msrb.mxu1 %v5774_v59  ;;  %989 = vmatpush.msra.mxu3 %v5775_v48  ;;  %v3965_v48 = vld [vmem:[%s5336_s1 + $0x410] sm:$0xff] }
  0xdd   : > { %1058 = vmatpush.msra.mxu2 %v3461_v5  ;;  %887 = vmatmul.f32.gmra.mxu3 %v3662_v52  ;;  %v5781_v5 = vld [vmem:[#allocation93_spill] sm:$0xff] }
  0xde   : > { %1011 = vmatpush.msra.mxu0 %v5776_v61  ;;  %1073 = vmatpush.msrb.mxu1 %v5777_v2  ;;  %v3971_v61 = vld [vmem:[%s5336_s1 + $0x210] sm:$0xff] }
  0xdf   : > { %990 = vmatpush.msra.mxu3 %v5778_v23  ;;  %1059 = vmatpush.msra.mxu2 %v3475_v9  ;;  %v483_v9 = vpop.f32.mrf.mxu3  ;;  %5799 = vst [vmem:[#allocation3_spill] sm:$0xff] %v3971_v61  ;;  %v3979_v23 = vld [vmem:[%s5336_s1 + $0x418] sm:$0xff] }
  0xe0   : > { %1012 = vmatpush.msra.mxu0 %v5779_v10  ;;  %1074 = vmatpush.msrb.mxu1 %v5780_v16  ;;  %5800 = vst [vmem:[#allocation46_spill] sm:$0xff] %v3979_v23  ;;  %v3985_v10 = vld [vmem:[%s5336_s1 + $0xc8] sm:$0xff]  ;;  %v4014_v9 = vld [vmem:[%s5336_s1 + $0xa0] sm:$0xff] }
  0xe1   : > { %931 = vmatmul.f32.gmra.mxu1 %v3600_v30  ;;  %991 = vmatpush.msra.mxu3 %v5781_v5  ;;  %v527_v63 = vpop.f32.mrf.mxu0  ;;  %v3991_v16 = vld [vmem:[%s5336_s1 + $0x3e8] sm:$0xff] }
  0xe2   : > { %1060 = vmatpush.msra.mxu2 %v3489_v13  ;;  %1013 = vmatpush.msra.mxu0 %v5782_v17  ;;  %v549_v13 = vpop.f32.mrf.mxu1  ;;  %v3997_v5 = vld [vmem:[%s5336_s1 + $0x1e8] sm:$0xff]  ;;  %v4003_v17 = vld [vmem:[%s5336_s1 + $0x3f0] sm:$0xff] }
  0xe3   : > { %1075 = vmatpush.msrb.mxu1 %v3385_v18  ;;  %992 = vmatpush.msra.mxu3 %v5783_v26  ;;  %v5787_v18 = vld [vmem:[#allocation92_spill] sm:$0xff]  ;;  %5801 = vst [vmem:[#allocation24_spill] sm:$0xff] %v3997_v5 }
  0xe4   : > { %1061 = vmatpush.msra.mxu2 %v3503_v27  ;;  %2002 = vmatmul.msk.f32.gmra.mxu0 %vm374_vm1, %v3634_v20  ;;  %v5788_v27 = vld [vmem:[#allocation105_spill] sm:$0xff]  ;;  %5802 = vst [vmem:[#allocation15_spill] sm:$0xff] %v4003_v17  ;;  %v4009_v26 = vld [vmem:[%s2601_s11 + $0x70] sm:$0xff] }
  0xe5   : > { %1014 = vmatpush.msra.mxu0 %v5784_v3  ;;  %1076 = vmatpush.msrb.mxu1 %v5785_v29  ;;  %v4020_v3 = vld [vmem:[%s5336_s1 + $0x3c0] sm:$0xff]  ;;  %v4032_v29 = vld [vmem:[%s5336_s1 + $0x3c8] sm:$0xff] }
  0xe6   : > { %993 = vmatpush.msra.mxu3 %v5786_v33  ;;  %1062 = vmatpush.msra.mxu2 %v3517_v51  ;;  %v5790_v51 = vld [vmem:[#allocation107_spill] sm:$0xff]  ;;  %5804 = vst [vmem:[#allocation27_spill] sm:$0xff] %v4032_v29 }
  0xe7   : > { %994 = vmatmul.f32.vlgmr.msra.gmra.mxu3 %v3565_v0  ;;  %1015 = vmatpush.msra.mxu0 %v5787_v18  ;;  %v4048_v18 = vld [vmem:[%s5336_s1 + $0x398] sm:$0xff] }
  0xe8   : > { %1077 = vmatpush.msrb.mxu1 %v3425_v7  ;;  %2006 = vmatpush.msk.msrb.mxu3 %vm381_vm0, %v5788_v27  ;;  %v3776_v7 = vld [vmem:[%s5336_s1 + $0x5a0] sm:$0xff]  ;;  %v4054_v27 = vld [vmem:[%s5336_s1 + $0x198] sm:$0xff] }
  0xe9   : > { %2017 = vmatpush.msk.msrb.mxu2 %vm381_vm0, %v3765_v36  ;;  %1016 = vmatpush.msra.mxu0 %v5789_v37  ;;  %5805 = vst [vmem:[#allocation50_spill] sm:$0xff] %v4054_v27  ;;  %v4060_v37 = vld [vmem:[%s5336_s1 + $0x3a0] sm:$0xff] }
  0xea   : > { %953 = vmatmul.f32.gmra.mxu2 %v3662_v52  ;;  %1078 = vmatpush.msrb.mxu1 %v3440_v31  ;;  %v5791_v31 = vld [vmem:[#allocation109_spill] sm:$0xff]  ;;  %5806 = vst [vmem:[#allocation17_spill] sm:$0xff] %v4060_v37 }
  0xeb   : > { %1104 = vmatpush.msrb.mxu3 %v5790_v51  ;;  %1215 = vmatpush.msrb.mxu2 %v3776_v7  ;;  %v4067_v51 = vld [vmem:[%s5336_s1 + $0x50] sm:$0xff] }
  0xec   : > { %2004 = vmatmul.msk.f32.vlgmr.msra.gmra.mxu1 %vm374_vm1, %v3583_v11  ;;  %1160 = vmatpush.msrb.mxu0 %v3784_v21  ;;  %v3960_v59 = vpop.f32.mrf.mxu3 }
  0xed   : > { %1079 = vmatpush.msrb.mxu1 %v3454_v35  ;;  %1105 = vmatpush.msrb.mxu3 %v5791_v31  ;;  %v5792_v35 = vld [vmem:[#allocation111_spill] sm:$0xff]  ;;  %v635_v63 = vpop.f32.mrf.mxu2  ;;  %v4073_v31 = vld [vmem:[%s5336_s1 + $0x370] sm:$0xff] }
  0xee   : > { %1216 = vmatpush.msrb.mxu2 %v3792_v38  ;;  %1161 = vmatpush.msrb.mxu0 %v3798_v40 }
  0xef   : > { %1017 = vmatmul.f32.vlgmr.msra.gmra.mxu0 %v3590_v22  ;;  %1080 = vmatpush.msrb.mxu1 %v3468_v39  ;;  %v5793_v39 = vld [vmem:[#allocation112_spill] sm:$0xff]  ;;  %v3974_v2 = vpop.f32.mrf.mxu0 }
  0xf0   : > { %1106 = vmatpush.msrb.mxu3 %v5792_v35  ;;  %1217 = vmatpush.msrb.mxu2 %v3807_v41  ;;  %v4085_v35 = vld [vmem:[%s5336_s1 + $0x378] sm:$0xff] }
  0xf1   : > { %1162 = vmatpush.msrb.mxu0 %v3813_v12  ;;  %997 = vmatmul.f32.gmra.mxu3 %v3600_v30  ;;  %5808 = vst [vmem:[#allocation30_spill] sm:$0xff] %v4085_v35 }
  0xf2   : > { %1081 = vmatpush.msrb.mxu1 %v3482_v43  ;;  %1107 = vmatpush.msrb.mxu3 %v5793_v39  ;;  %v5794_v43 = vld [vmem:[#allocation114_spill] sm:$0xff]  ;;  %v3927_v57 = vpop.f32.mrf.mxu1 }
  0xf3   : > { %1218 = vmatpush.msrb.mxu2 %v3822_v42  ;;  %1163 = vmatpush.msrb.mxu0 %v3828_v44 }
  0xf4   : > { %1063 = vmatmul.f32.vlgmr.msra.gmra.mxu2 %v3565_v0  ;;  %1082 = vmatpush.msrb.mxu1 %v3496_v47  ;;  %v3851_v47 = vld [vmem:[%s5336_s1 + $0x4d8] sm:$0xff]  ;;  %v3857_v0 = vld [vmem:[%s5336_s1 + $0x4e0] sm:$0xff] }
  0xf5   : > { %1108 = vmatpush.msrb.mxu3 %v5794_v43  ;;  %1219 = vmatpush.msrb.mxu2 %v3837_v45  ;;  %v4091_v43 = vld [vmem:[%s5336_s1 + $0x28] sm:$0xff] }
  0xf6   : > { %2005 = vmatmul.msk.f32.gmra.mxu1 %vm374_vm1, %v3634_v20  ;;  %1164 = vmatpush.msrb.mxu0 %v3845_v49 }
  0xf7   : > { %1182 = vmatpush.msra.mxu3 %v3851_v47  ;;  %1248 = vmatpush.msra.mxu2 %v3857_v0 }
  0xf8   : > { %1083 = vmatpush.msrb.mxu1 %v3510_v15  ;;  %1165 = vmatpush.msrb.mxu0 %v3864_v8  ;;  %v3884_v15 = vld [vmem:[%s5336_s1 + $0x168] sm:$0xff] }
  0xf9   : > { %1183 = vmatpush.msra.mxu3 %v3870_v53  ;;  %1249 = vmatpush.msra.mxu2 %v3876_v54 }
  0xfa   : > { %1020 = vmatmul.f32.gmra.mxu0 %v3662_v52  ;;  %1084 = vmatpush.msrb.mxu1 %v3526_v19  ;;  %v3905_v19 = vld [vmem:[%s5336_s1 + $0x140] sm:$0xff]  ;;  %v571_v13 = vpop.f32.mrf.mxu3  ;;  %v615_v39 = vpop.f32.mrf.mxu0 }
  0xfb   : > { %1166 = vmatpush.msrb.mxu0 %v3884_v15  ;;  %1184 = vmatpush.msra.mxu3 %v3890_v55  ;;  %v4097_v13 = vld [vmem:[%s5336_s1 + $0x348] sm:$0xff] }
  0xfc   : > { %1250 = vmatpush.msra.mxu2 %v3896_v46  ;;  %1085 = vmatpush.msrb.mxu1 %v3535_v25  ;;  %v3917_v25 = vld [vmem:[%s5336_s1 + $0x260] sm:$0xff]  ;;  %v4043_v33 = vpop.f32.mrf.mxu1 }
  0xfd   : > { %2007 = vmatmul.msk.f32.vlgmr.msrb.gmra.mxu3 %vm374_vm1, %v3583_v11  ;;  %1167 = vmatpush.msrb.mxu0 %v3905_v19  ;;  %v3923_v11 = vld [vmem:[%s5336_s1 + $0x468] sm:$0xff]  ;;  %v4169_v46 = vld [vmem:[%s5336_s1 + $0x300] sm:$0xff] }
  0xfe   : > { %1185 = vmatpush.msra.mxu3 %v3911_v56  ;;  %1226 = vmatpush.msra.mxu1 %v3917_v25  ;;  %5797 = vst [vmem:[#allocation21_spill] sm:$0xff] %v3923_v11 }
  0xff   : > { %1251 = vmatpush.msra.mxu2 %v3923_v11  ;;  %1086 = vmatmul.f32.vlgmr.msrb.gmra.mxu1 %v3590_v22  ;;  %v3945_v22 = vld [vmem:[%s5336_s1 + $0x238] sm:$0xff]  ;;  %5816 = vst [vmem:[#allocation36_spill] sm:$0xff] %v4169_v46 }
 0x100   : > { %1066 = vmatmul.f32.gmra.mxu2 %v3600_v30  ;;  %1168 = vmatpush.msrb.mxu0 %v3933_v4  ;;  %v3951_v30 = vld [vmem:[%s5336_s1 + $0x440] sm:$0xff] }
 0x101   : > { %1186 = vmatpush.msra.mxu3 %v3939_v62  ;;  %1227 = vmatpush.msra.mxu1 %v3945_v22  ;;  %5798 = vst [vmem:[#allocation13_spill] sm:$0xff] %v3951_v30 }
 0x102   : > { %1252 = vmatpush.msra.mxu2 %v3951_v30  ;;  %1169 = vmatpush.msrb.mxu0 %v3957_v58 }
 0x103   : > { %1187 = vmatpush.msra.mxu3 %v3965_v48  ;;  %1228 = vmatpush.msra.mxu1 %v3971_v61 }
 0x104   : > { %1253 = vmatpush.msra.mxu2 %v3979_v23  ;;  %1170 = vmatpush.msrb.mxu0 %v3985_v10  ;;  %v4121_v23 = vld [vmem:[%s5336_s1] sm:$0xff] }
 0x105   : > { %1188 = vmatpush.msra.mxu3 %v3991_v16  ;;  %1229 = vmatpush.msra.mxu1 %v3997_v5  ;;  %5811 = vst [vmem:[#allocation6_spill] sm:$0xff] %v4121_v23  ;;  %v4177_v5 = vld [vmem:[%s5336_s1 + $0x5a8] sm:$0xff] }
 0x106   : > { %1254 = vmatpush.msra.mxu2 %v4003_v17  ;;  %2008 = vmatmul.msk.f32.gmra.mxu3 %vm374_vm1, %v3634_v20  ;;  %v4026_v20 = vld [vmem:[%s5336_s1 + $0x1c0] sm:$0xff]  ;;  %v4116_v17 = vld [vmem:[%s2601_s11 + $0x88] sm:$0x3]  ;;  %5817 = vst [vmem:[#allocation62_spill] sm:$0xff] %v4177_v5 }
 0x107   : > { %1171 = vmatpush.msrb.mxu0 %v4014_v9  ;;  %1189 = vmatpush.msra.mxu3 %v4020_v3  ;;  %5803 = vst [vmem:[#allocation4_spill] sm:$0xff] %v4026_v20 }
 0x108   : > { %1230 = vmatpush.msra.mxu1 %v4026_v20  ;;  %1255 = vmatpush.msra.mxu2 %v4032_v29  ;;  %v4113_v29 = vld [vmem:[%s2601_s11 + $0x60] sm:$0xff]  ;;  %v4163_v20 = vld [vmem:[%s5336_s1 + $0xf8] sm:$0xff] }
 0x109   : > { %2018 = vmatmul.msk.f32.vlgmr.msrb.gmra.mxu2 %vm374_vm1, %v4009_v26  ;;  %1172 = vmatpush.msrb.mxu0 %v4040_v32  ;;  %5815 = vst [vmem:[#allocation7_spill] sm:$0xff] %v4163_v20 }
 0x10a   : > { %1190 = vmatpush.msra.mxu3 %v4048_v18  ;;  %1231 = vmatpush.msra.mxu1 %v4054_v27  ;;  %v4150_v27 = vld [vmem:[%s5336_s1 + $0x5d0] sm:$0xf] }
 0x10b   : > { %1256 = vmatpush.msra.mxu2 %v4060_v37  ;;  %1089 = vmatmul.f32.gmra.mxu1 %v3662_v52  ;;  %v4079_v52 = vld [vmem:[%s5336_s1 + $0x170] sm:$0xff]  ;;  %v4103_v37 = vld [vmem:[%s5336_s1 + $0x148] sm:$0xff]  ;;  %5814 = vst [vmem:[#allocation22_spill] sm:$0xff] %v4150_v27 }
 0x10c   : > { %1173 = vmatpush.msrb.mxu0 %v4067_v51  ;;  %1191 = vmatpush.msra.mxu3 %v4073_v31  ;;  %5807 = vst [vmem:[#allocation5_spill] sm:$0xff] %v4079_v52 }
 0x10d   : > { %1232 = vmatpush.msra.mxu1 %v4079_v52  ;;  %1257 = vmatpush.msra.mxu2 %v4085_v35  ;;  %5809 = vst [vmem:[#allocation54_spill] sm:$0xff] %v4103_v37  ;;  %v4109_v35 = vld [vmem:[%s5336_s1 + $0x350] sm:$0xff]  ;;  %v4139_v52 = vld [vmem:[%s5336_s1 + $0x328] sm:$0xff] }
 0x10e   : > { %1174 = vmatpush.msrb.mxu0 %v4091_v43  ;;  %1192 = vmatpush.msra.mxu3 %v4097_v13  ;;  %5810 = vst [vmem:[#allocation19_spill] sm:$0xff] %v4109_v35 }
 0x10f   : > { %1233 = vmatpush.msra.mxu1 %v4103_v37  ;;  %1258 = vmatpush.msra.mxu2 %v4109_v35  ;;  %v4127_v37 = vld [vmem:[%s5336_s1 + $0x320] sm:$0xff]  ;;  %5813 = vst [vmem:[#allocation58_spill] sm:$0xff] %v4139_v52 }
 0x110   : > { %1175 = vmatpush.msrb.mxu0 %v4121_v23  ;;  %1193 = vmatpush.msra.mxu3 %v4127_v37  ;;  %v4133_v35 = vld [vmem:[%s5336_s1 + $0x120] sm:$0xff]  ;;  %v569_v23 = vadd.f32 %v3960_v59, %v3740_v6  ;;  %v4222_v6 = vld [vmem:[%s5336_s1 + $0x2b0] sm:$0xff]  ;;  %v4226_v59 = vld [vmem:[%s2601_s11 + $0x78] sm:$0x3] }
 0x111   : > { %5812 = vst [vmem:[#allocation33_spill] sm:$0xff] %v4133_v35  ;;  %1234 = vmatpush.msra.mxu1 %v4133_v35  ;;  %1259 = vmatpush.msra.mxu2 %v4139_v52  ;;  %v4142_v30 = vpop.f32.mrf.mxu1  ;;  %v638_v35 = vpop.f32.mrf.mxu2  ;;  %v4157_v52 = vld [vmem:[%s5336_s1 + $0x2f8] sm:$0xff] }
 0x112   : > { %1176 = vmatmul.f32.vlgmr.msrb.gmra.mxu0 %v4113_v29  ;;  %2019 = vmatmul.msk.f32.gmra.mxu2 %vm374_vm1, %v4116_v17  ;;  %v681_v11 = vpop.f32.mrf.mxu3  ;;  %5822 = vst [vmem:[#allocation28_spill] sm:$0xff] %v4222_v6 }
 0x113   : > { %2020 = vmatpush.msk.msra.mxu0 %vm381_vm0, %v4150_v27  ;;  %1194 = vmatpush.msra.mxu3 %v4157_v52  ;;  %v503_v27 = vadd.f32 %v3684_v1, %v3728_v60  ;;  %v639_v1 = vadd.f32 %v638_v35, %v615_v39  ;;  %v4190_v60 = vld [vmem:[%s5336_s1 + $0xd0] sm:$0xff]  ;;  %v4216_v35 = vld [vmem:[%s5336_s1 + $0xa8] sm:$0xff] }
 0x114   : > { %1235 = vmatpush.msra.mxu1 %v4163_v20  ;;  %1260 = vmatpush.msra.mxu2 %v4169_v46  ;;  %v4183_v20 = vld [vmem:[%s5336_s1 + $0x2d0] sm:$0xff]  ;;  %v704_v54 = vpop.f32.mrf.mxu0  ;;  %v636_v46 = vadd.f32 %v635_v63, %v3974_v2  ;;  %5818 = vst [vmem:[#allocation25_spill] sm:$0xff] %v4190_v60  ;;  %v4204_v2 = vld [vmem:[%s5336_s1 + $0x580] sm:$0xff]  ;;  %v4210_v63 = vld [vmem:[%s5336_s1 + $0x2a8] sm:$0xff] }
 0x115   : > { %1281 = vmatpush.msra.mxu0 %v4177_v5  ;;  %1195 = vmatpush.msra.mxu3 %v4183_v20  ;;  %v4196_v5 = vld [vmem:[%s5336_s1 + $0x2d8] sm:$0xff]  ;;  %5820 = vst [vmem:[#allocation39_spill] sm:$0xff] %v4204_v2  ;;  %v4229_v39 = vld [vmem:[%s2601_s11 + $0x68] sm:$0xff] }
 0x116   : > { %1236 = vmatpush.msra.mxu1 %v4190_v60  ;;  %5819 = vst [vmem:[#allocation8_spill] sm:$0xff] %v4196_v5  ;;  %1261 = vmatpush.msra.mxu2 %v4196_v5  ;;  %v525_v5 = vadd.f32 %v3734_v14, %v503_v27  ;;  %v4235_v60 = vld [vmem:[%s5336_s1 + $0x558] sm:$0xff]  ;;  %v4249_v14 = vld [vmem:[%s5336_s1 + $0x80] sm:$0xff]  ;;  %v4255_v27 = vld [vmem:[%s5336_s1 + $0x288] sm:$0xff] }
 0x117   : > { %1282 = vmatpush.msra.mxu0 %v4204_v2  ;;  %1196 = vmatpush.msra.mxu3 %v4210_v63  ;;  %5821 = vst [vmem:[#allocation66_spill] sm:$0xff] %v4216_v35  ;;  %v662_v2 = vadd.f32 %v4043_v33, %v639_v1  ;;  %v4267_v33 = vld [vmem:[%s5336_s1 + $0x530] sm:$0xff]  ;;  %v4291_v1 = vld [vmem:[%s5336_s1 + $0x508] sm:$0xff] }
 0x118   : > { %1237 = vmatpush.msra.mxu1 %v4216_v35  ;;  %1262 = vmatpush.msra.mxu2 %v4222_v6  ;;  %5823 = vst [vmem:[#allocation9_spill] sm:$0xff] %v4235_v60  ;;  %v4241_v35 = vld [vmem:[%s5336_s1 + $0x280] sm:$0xff]  ;;  %v659_v6 = vadd.f32 %v3927_v57, %v636_v46  ;;  %v437_v46 = vadd.f32 %v3695_v50, %v3646_v34  ;;  %v4273_v34 = vld [vmem:[%s5336_s1 + $0x268] sm:$0xff]  ;;  %v4279_v50 = vld [vmem:[%s5336_s1 + $0x270] sm:$0xff] }
 0x119   : > { %1283 = vmatpush.msra.mxu0 %v4235_v60  ;;  %1197 = vmatpush.msra.mxu3 %v4241_v35  ;;  %5824 = vst [vmem:[#allocation41_spill] sm:$0xff] %v4249_v14  ;;  %v705_v60 = vadd.f32 %v704_v54, %v681_v11  ;;  %v591_v57 = vadd.f32 %v3730_v24, %v569_v23  ;;  %v734_v54 = vrot.slane %v525_v5, 1  ;;  %v745_v23 = vrot.slane %v662_v2, 3  ;;  %v4285_v5 = vld [vmem:[%s5336_s1 + $0x58] sm:$0xff]  ;;  %v4299_v2 = vld [vmem:[%s5336_s1 + $0x240] sm:$0xff] }
 0x11a   : > { %1238 = vmatpush.msra.mxu1 %v4249_v14  ;;  %5825 = vst [vmem:[#allocation70_spill] sm:$0xff] %v4255_v27  ;;  %1263 = vmatpush.msra.mxu2 %v4255_v27  ;;  %v730_v61 = vpop.f32.mrf.mxu1  ;;  %v744_v11 = vrot.slane %v659_v6, 3 }
 0x11b   : > { %1179 = vmatmul.f32.gmra.mxu0 %v4226_v59  ;;  %1198 = vmatmul.f32.vlgmr.msra.gmra.mxu3 %v4229_v39  ;;  %5826 = vst [vmem:[#allocation31_spill] sm:$0xff] %v4279_v50  ;;  %v728_v27 = vadd.f32 %v4142_v30, %v705_v60  ;;  %v738_v6 = vrot.slane %v591_v57, 2  ;;  %v4317_v30 = vld [vmem:[%s5336_s1 + $0x4e8] sm:$0xff]  ;;  %v4323_v57 = vld [vmem:[%s5336_s1 + $0x218] sm:$0xff] }
 0x11c   : > { %1264 = vmatmul.f32.vlgmr.msra.gmra.mxu2 %v4229_v39  ;;  %1284 = vmatpush.msra.mxu0 %v4267_v33  ;;  %v684_v24 = vpop.f32.mrf.mxu3  ;;  %5827 = vst [vmem:[#allocation10_spill] sm:$0xff] %v4285_v5 }
 0x11d   : > { %1292 = vmatpush.msrb.mxu3 %v4273_v34  ;;  %1358 = vmatpush.msrb.mxu2 %v4279_v50  ;;  %5828 = vst [vmem:[#allocation45_spill] sm:$0xff] %v4291_v1  ;;  %v459_v50 = vadd.f32 %v3638_v28, %v437_v46  ;;  %v4311_v28 = vld [vmem:[%s5336_s1 + $0x30] sm:$0xff] }
 0x11e   : > { %1239 = vmatpush.msra.mxu1 %v4285_v5  ;;  %1285 = vmatpush.msra.mxu0 %v4291_v1  ;;  %v4305_v5 = vld [vmem:[%s5336_s1 + $0x248] sm:$0xff]  ;;  %5830 = vst [vmem:[#allocation34_spill] sm:$0xff] %v4311_v28 }
 0x11f   : > { %1293 = vmatpush.msrb.mxu3 %v4299_v2  ;;  %5829 = vst [vmem:[#allocation74_spill] sm:$0xff] %v4305_v5  ;;  %1359 = vmatpush.msrb.mxu2 %v4305_v5  ;;  %v707_v14 = vpop.f32.mrf.mxu0  ;;  %v736_v46 = vadd.f32 %v734_v54, %v459_v50  ;;  %v4329_v5 = vld [vmem:[%s5336_s1 + $0x220] sm:$0xff]  ;;  %v751_v50 = vrot.slane %v728_v27, 4 }
 0x120   : > { %1240 = vmatpush.msra.mxu1 %v4311_v28  ;;  %5831 = vst [vmem:[#allocation11_spill] sm:$0xff] %v4317_v30  ;;  %1314 = vmatpush.msrb.mxu0 %v4317_v30  ;;  %v708_v60 = vadd.f32 %v707_v14, %v684_v24  ;;  %v746_v28 = vsel %vm743_vm2, %v744_v11, %v745_v23  ;;  %v4336_v14 = vld [vmem:[%s5336_s1 + $0x8] sm:$0xff]  ;;  %v4342_v54 = vld [vmem:[%s5336_s1 + $0x4c0] sm:$0xff]  ;;  %v4349_v11 = vld [vmem:[%s5336_s1 + $0x1f0] sm:$0xff] }
 0x121   : > { %1294 = vmatpush.msrb.mxu3 %v4323_v57  ;;  %5832 = vst [vmem:[#allocation49_spill] sm:$0xff] %v4329_v5  ;;  %1360 = vmatpush.msrb.mxu2 %v4329_v5  ;;  %v797_v30 = vpop.f32.mrf.mxu2  ;;  %v740_v5 = vadd.f32 %v738_v6, %v736_v46  ;;  %v4355_v23 = vld [vmem:[%s5336_s1 + $0x5d8] sm:$0xf] }
 0x122   : > { %5833 = vst [vmem:[#allocation78_spill] sm:$0xff] %v4336_v14  ;;  %1241 = vmatpush.msra.mxu1 %v4336_v14  ;;  %1315 = vmatpush.msrb.mxu0 %v4342_v54  ;;  %v731_v24 = vadd.f32 %v730_v61, %v708_v60  ;;  %v4362_v61 = vld [vmem:[%s5336_s1 + $0x1f8] sm:$0xff]  ;;  %v4394_v14 = vld [vmem:[%s5336_s1 + $0x1d0] sm:$0xff] }
 0x123   : > { %5834 = vst [vmem:[#allocation37_spill] sm:$0xff] %v4342_v54  ;;  %1242 = vmatmul.f32.vlgmr.msra.gmra.mxu1 %v4113_v29  ;;  %1295 = vmatpush.msrb.mxu3 %v4349_v11  ;;  %v748_v60 = vadd.f32 %v746_v28, %v740_v5  ;;  %v4368_v46 = vld [vmem:[%s5336_s1 + $0x498] sm:$0xff]  ;;  %v4387_v28 = vld [vmem:[%s5336_s1 + $0x5b0] sm:$0xff] }
 0x124   : > { %5835 = vst [vmem:[#allocation12_spill] sm:$0xff] %v4355_v23  ;;  %2023 = vmatpush.msk.msrb.mxu1 %vm381_vm0, %v4355_v23  ;;  %1361 = vmatpush.msrb.mxu2 %v4362_v61  ;;  %v752_v27 = vrot.slane %v731_v24, 4  ;;  %v819_v6 = vpop.f32.mrf.mxu1  ;;  %v4374_v23 = vld [vmem:[%s5336_s1 + $0x1c8] sm:$0xff]  ;;  %v4380_v24 = vld [vmem:[%s5337_s2] ss:$0 sm:$0xff]  ;;  %v4566_v54 = vld [vmem:[%s5336_s1 + $0xb0] sm:$0xff] }
 0x125   : > { %5836 = vst [vmem:[#allocation53_spill] sm:$0xff] %v4362_v61  ;;  %1316 = vmatpush.msrb.mxu0 %v4368_v46  ;;  %1296 = vmatpush.msrb.mxu3 %v4374_v23  ;;  %v820_v5 = vadd.f32 %v819_v6, %v797_v30  ;;  %v4400_v30 = vld [vmem:[%s5336_s1 + $0x470] sm:$0xff] }
 0x126   : > { %5837 = vst [vmem:[#allocation82_spill] sm:$0xff] %v4368_v46  ;;  %2021 = vmatmul.msk.f32.vlgmr.msra.gmra.mxu0 %vm374_vm1, %v4009_v26  ;;  %1347 = vmatpush.msrb.mxu1 %v4387_v28  ;;  %v753_v61 = vsel %vm381_vm0, %v751_v50, %v752_v27  ;;  %v4412_v50 = vld [vmem:[%s5336_s1 + $0x588] sm:$0xff] }
 0x127   : > { %5838 = vst [vmem:[#allocation23_spill] sm:$0xff] %v4380_v24  ;;  %1362 = vmatpush.msrb.mxu2 %v4394_v14  ;;  %1317 = vmatpush.msrb.mxu0 %v4400_v30  ;;  %v755_v6 = vadd.f32 %v753_v61, %v748_v60  ;;  %v4424_v61 = vld [vmem:[%s5336_s1 + $0x448] sm:$0xff] }
 0x128   : > { %5839 = vst [vmem:[#allocation14_spill] sm:$0xff] %v4387_v28  ;;  %v4406_v28 = vld [vmem:[%s5336_s1 + $0x1a0] sm:$0xff]  ;;  %1348 = vmatpush.msrb.mxu1 %v4412_v50  ;;  %v841_v27 = vpop.f32.mrf.mxu3 }
 0x129   : > { %5840 = vst [vmem:[#allocation57_spill] sm:$0xff] %v4394_v14  ;;  %1297 = vmatpush.msrb.mxu3 %v4406_v28  ;;  %v4418_v14 = vld [vmem:[%s5336_s1 + $0x1a8] sm:$0xff]  ;;  %1318 = vmatpush.msrb.mxu0 %v4424_v61  ;;  %v4428_v60 = vadd.f32 %v4380_v24, %v755_v6  ;;  %v4447_v6 = vld [vmem:[%s5336_s1 + $0x180] sm:$0xff]  ;;  %v4478_v24 = vld [vmem:[%s5336_s1 + $0x3f8] sm:$0xff] }
 0x12a   : > { %5841 = vst [vmem:[#allocation85_spill] sm:$0xff] %v4400_v30  ;;  %1363 = vmatpush.msrb.mxu2 %v4418_v14  ;;  %v4430_v30 = vadd.f32 %v841_v27, %v820_v5  ;;  %v4453_v5 = vld [vmem:[%s5336_s1 + $0x420] sm:$0xff] }
 0x12b   : > { %5842 = vst [vmem:[#allocation26_spill] sm:$0xff] %v4412_v50  ;;  %v4435_v50 = vld [vmem:[%s5336_s1 + $0x178] sm:$0xff]  ;;  %1319 = vmatpush.msrb.mxu0 %v4453_v5  ;;  %v761_v27 = vmin.f32 %v4428_v60, 0.0  ;;  %vm760_vm3 = vcmp.gt.f32.partialorder %v4428_v60, 0.0  ;;  %1245 = vmatmul.f32.gmra.mxu1 %v4226_v59 }
 0x12c   : > { %5843 = vst [vmem:[#allocation16_spill] sm:$0xff] %v4418_v14  ;;  %1298 = vmatpush.msrb.mxu3 %v4435_v50  ;;  %v4441_v14 = vld [vmem:[%s5336_s1 + $0x560] sm:$0xff]  ;;  %1364 = vmatpush.msrb.mxu2 %v4447_v6 }
 0x12d   : > { %5844 = vst [vmem:[#allocation61_spill] sm:$0xff] %v4424_v61  ;;  %1349 = vmatpush.msrb.mxu1 %v4441_v14  ;;  %1320 = vmatpush.msrb.mxu0 %v4478_v24  ;;  %v762_v61 = vmul.f32 1.442695, %v761_v27  ;;  %v800_v46 = vpop.f32.mrf.mxu2  ;;  %v4508_v27 = vld [vmem:[%s5336_s1 + $0x4f0] sm:$0xff] }
 0x12e   : > { %5845 = vst [vmem:[#allocation29_spill] sm:$0xff] %v4441_v14  ;;  %v4460_v14 = vld [vmem:[%s5336_s1 + $0x150] sm:$0xff]  ;;  %2022 = vmatmul.msk.f32.gmra.mxu0 %vm374_vm1, %v4116_v17 }
 0x12f   : > { %5846 = vst [vmem:[#allocation18_spill] sm:$0xff] %v4447_v6  ;;  %1299 = vmatpush.msrb.mxu3 %v4460_v14  ;;  %v4466_v6 = vld [vmem:[%s5336_s1 + $0x538] sm:$0xff]  ;;  %v4502_v46 = vld [vmem:[%s5336_s1 + $0x3d0] sm:$0xff]  ;;  %2069 = vpow2.f32 %v762_v61  ;;  %v4526_v61 = vld [vmem:[%s5336_s1 + $0x3a8] sm:$0xff] }
 0x130   : > { %5847 = vst [vmem:[#allocation65_spill] sm:$0xff] %v4453_v5  ;;  %1350 = vmatpush.msrb.mxu1 %v4466_v6  ;;  %v4472_v5 = vld [vmem:[%s5336_s1 + $0x158] sm:$0xff]  ;;  %1321 = vmatpush.msrb.mxu0 %v4502_v46 }
 0x131   : > { %5848 = vst [vmem:[#allocation32_spill] sm:$0xff] %v4466_v6  ;;  %1365 = vmatpush.msrb.mxu2 %v4472_v5  ;;  %v4484_v6 = vld [vmem:[%s5336_s1 + $0x128] sm:$0xff] }
 0x132   : > { %5849 = vst [vmem:[#allocation20_spill] sm:$0xff] %v4472_v5  ;;  %1300 = vmatpush.msrb.mxu3 %v4484_v6  ;;  %v4490_v5 = vld [vmem:[%s5336_s1 + $0x510] sm:$0xff]  ;;  %1322 = vmatpush.msrb.mxu0 %v4526_v61 }
 0x133   : > { %5850 = vst [vmem:[#allocation69_spill] sm:$0xff] %v4478_v24  ;;  %1351 = vmatpush.msrb.mxu1 %v4490_v5  ;;  %v4496_v24 = vld [vmem:[%s5336_s1 + $0x130] sm:$0xff] }
 0x134   : > { %5851 = vst [vmem:[#allocation94_spill] sm:$0xff] %v4484_v6  ;;  %1366 = vmatpush.msrb.mxu2 %v4496_v24  ;;  %v4612_v6 = vld [vmem:[%s5336_s1 + $0x330] sm:$0xff]  ;;  %2024 = vmatmul.msk.f32.vlgmr.msrb.gmra.mxu1 %vm374_vm1, %v4009_v26 }
 0x135   : > { %5852 = vst [vmem:[#allocation35_spill] sm:$0xff] %v4490_v5  ;;  %1381 = vmatpush.msra.mxu1 %v4508_v27  ;;  %v4520_v5 = vld [vmem:[%s5336_s1 + $0x108] sm:$0xff] }
 0x136   : > { %5853 = vst [vmem:[#allocation44_spill] sm:$0xff] %v4496_v24  ;;  %v4514_v24 = vld [vmem:[%s5336_s1 + $0x100] sm:$0xff]  ;;  %1367 = vmatpush.msrb.mxu2 %v4520_v5 }
 0x137   : > { %5854 = vst [vmem:[#allocation98_spill] sm:$0xff] %v4502_v46  ;;  %1301 = vmatpush.msrb.mxu3 %v4514_v24  ;;  %v4538_v46 = vld [vmem:[%s5336_s1 + $0xd8] sm:$0xff] }
 0x138   : > { %5855 = vst [vmem:[#allocation73_spill] sm:$0xff] %v4508_v27  ;;  %v4532_v27 = vld [vmem:[%s5336_s1 + $0x4c8] sm:$0xff]  ;;  %v863_v1 = vpop.f32.mrf.mxu0 }
 0x139   : > { %5856 = vst [vmem:[#allocation38_spill] sm:$0xff] %v4514_v24  ;;  %1382 = vmatpush.msra.mxu1 %v4532_v27  ;;  %1302 = vmatpush.msrb.mxu3 %v4538_v46  ;;  %v4593_v24 = vpop.f32.mrf.mxu2 }
 0x13a   : > { %5857 = vst [vmem:[#allocation48_spill] sm:$0xff] %v4520_v5  ;;  %v4542_v5 = vld [vmem:[%s2601_s11 + $0x80] sm:$0x3] }
 0x13b   : > { %5858 = vst [vmem:[#allocation77_spill] sm:$0xff] %v4526_v61  ;;  %v4547_v61 = vld [vmem:[%s5336_s1 + $0xe0] sm:$0xff]  ;;  %1303 = vmatpush.msrb.mxu3 %v4566_v54  ;;  %1267 = vmatmul.f32.gmra.mxu2 %v4542_v5 }
 0x13c   : > { %5859 = vst [vmem:[#allocation40_spill] sm:$0xff] %v4532_v27  ;;  %1368 = vmatpush.msrb.mxu2 %v4547_v61  ;;  %v4553_v27 = vld [vmem:[%s5336_s1 + $0x380] sm:$0xff]  ;;  %1201 = vmatmul.f32.gmra.mxu3 %v4542_v5 }
 0x13d   : > { %5860 = vst [vmem:[#allocation52_spill] sm:$0xff] %v4538_v46  ;;  %1323 = vmatpush.msrb.mxu0 %v4553_v27  ;;  %v4560_v46 = vld [vmem:[%s5336_s1 + $0x4a0] sm:$0xff]  ;;  %2025 = vmatmul.msk.f32.gmra.mxu1 %vm374_vm1, %v4116_v17 }
 0x13e   : > { %5861 = vst [vmem:[#allocation81_spill] sm:$0xff] %v4547_v61  ;;  %1383 = vmatpush.msra.mxu1 %v4560_v46  ;;  %v2070_v61 = vpop.eup %2069 }
 0x13f   : > { %5862 = vst [vmem:[#allocation43_spill] sm:$0xff] %v4553_v27  ;;  %v4572_v27 = vld [vmem:[%s5336_s1 + $0xb8] sm:$0xff] }
 0x140   : > { %5863 = vst [vmem:[#allocation56_spill] sm:$0xff] %v4560_v46  ;;  %1369 = vmatpush.msrb.mxu2 %v4572_v27  ;;  %v4579_v46 = vld [vmem:[%s5336_s1 + $0x358] sm:$0xff] }
 0x141   : > { %5864 = vst [vmem:[#allocation87_spill] sm:$0xff] %v4566_v54  ;;  %1324 = vmatpush.msrb.mxu0 %v4579_v46  ;;  %v4585_v54 = vld [vmem:[%s5336_s1 + $0x478] sm:$0xff] }
 0x142   : > { %5865 = vst [vmem:[#allocation47_spill] sm:$0xff] %v4572_v27  ;;  %1384 = vmatpush.msra.mxu1 %v4585_v54  ;;  %v1987_v27 = vadd.f32 -1.0, %v2070_v61 }
 0x143   : > { %5866 = vst [vmem:[#allocation60_spill] sm:$0xff] %v4579_v46  ;;  %v4599_v46 = vld [vmem:[%s5336_s1 + $0x88] sm:$0xff]  ;;  %1325 = vmatpush.msrb.mxu0 %v4612_v6 }
 0x144   : > { %5867 = vst [vmem:[#allocation90_spill] sm:$0xff] %v4585_v54  ;;  %1304 = vmatpush.msrb.mxu3 %v4599_v46  ;;  %v4605_v54 = vld [vmem:[%s5336_s1 + $0x90] sm:$0xff]  ;;  %v765_v61 = vsel %vm760_vm3, %v4428_v60, %v1987_v27  ;;  %v4626_v60 = vld [vmem:[%s5336_s1 + $0x60] sm:$0xff]  ;;  %v4632_v27 = vld [vmem:[%s5336_s1 + $0x68] sm:$0xff] }
 0x145   : > { %5868 = vst [vmem:[#allocation51_spill] sm:$0xff] %v4599_v46  ;;  %1370 = vmatpush.msrb.mxu2 %v4605_v54  ;;  %v4618_v46 = vld [vmem:[%s5336_s1 + $0x450] sm:$0xff] }
 0x146   : > { %5869 = vst [vmem:[#allocation64_spill] sm:$0xff] %v4605_v54  ;;  %1385 = vmatpush.msra.mxu1 %v4618_v46  ;;  %1305 = vmatpush.msrb.mxu3 %v4626_v60  ;;  %v4644_v54 = vld [vmem:[%s5336_s1 + $0x428] sm:$0xff] }
 0x147   : > { %5870 = vst [vmem:[#allocation96_spill] sm:$0xff] %v4612_v6  ;;  %1371 = vmatpush.msrb.mxu2 %v4632_v27  ;;  %v4670_v6 = vld [vmem:[%s5336_s1 + $0x400] sm:$0xff] }
 0x148   : > { %5871 = vst [vmem:[#allocation55_spill] sm:$0xff] %v4618_v46  ;;  %1386 = vmatpush.msra.mxu1 %v4644_v54  ;;  %v4650_v46 = vld [vmem:[%s5336_s1 + $0x38] sm:$0xff] }
 0x149   : > { %766 = vst [vmem:[%s4591_s16] sm:$0x3f] %v765_v61  ;;  %v4638_v61 = vld [vmem:[%s5336_s1 + $0x308] sm:$0xff]  ;;  %1306 = vmatpush.msrb.mxu3 %v4650_v46 }
 0x14a   : > { %5872 = vst [vmem:[#allocation68_spill] sm:$0xff] %v4626_v60  ;;  %1326 = vmatpush.msrb.mxu0 %v4638_v61  ;;  %1387 = vmatpush.msra.mxu1 %v4670_v6  ;;  %v4791_v60 = vld [vmem:[%s5336_s1 + $0x228] sm:$0xff] }
 0x14b   : > { %5873 = vst [vmem:[#allocation99_spill] sm:$0xff] %v4632_v27  ;;  %v4656_v27 = vld [vmem:[%s5336_s1 + $0x40] sm:$0xff] }
 0x14c   : > { %5874 = vst [vmem:[#allocation59_spill] sm:$0xff] %v4638_v61  ;;  %1372 = vmatpush.msrb.mxu2 %v4656_v27  ;;  %v844_v61 = vpop.f32.mrf.mxu3 }
 0x14d   : > { %5875 = vst [vmem:[#allocation72_spill] sm:$0xff] %v4644_v54  ;;  %v4664_v54 = vld [vmem:[%s5336_s1 + $0x2e0] sm:$0xff]  ;;  %v4682_v61 = vld [vmem:[%s5336_s1 + $0x18] sm:$0xff] }
 0x14e   : > { %5876 = vst [vmem:[#allocation101_spill] sm:$0xff] %v4650_v46  ;;  %1327 = vmatpush.msrb.mxu0 %v4664_v54  ;;  %1373 = vmatpush.msrb.mxu2 %v4682_v61  ;;  %v910_v46 = vpop.f32.mrf.mxu2 }
 0x14f   : > { %5877 = vst [vmem:[#allocation63_spill] sm:$0xff] %v4656_v27  ;;  %v4676_v27 = vld [vmem:[%s5336_s1 + $0x10] sm:$0xff]  ;;  %1374 = vmatmul.f32.vlgmr.msrb.gmra.mxu2 %v4113_v29 }
 0x150   : > { %5878 = vst [vmem:[#allocation76_spill] sm:$0xff] %v4664_v54  ;;  %1307 = vmatpush.msrb.mxu3 %v4676_v27  ;;  %v822_v54 = vpop.f32.mrf.mxu1  ;;  %v4715_v46 = vld [vmem:[%s5336_s1 + $0x290] sm:$0xff] }
 0x151   : > { %5879 = vst [vmem:[#allocation103_spill] sm:$0xff] %v4670_v6  ;;  %1308 = vmatmul.f32.vlgmr.msrb.gmra.mxu3 %v4113_v29  ;;  %v4689_v6 = vld [vmem:[%s5336_s1 + $0x2b8] sm:$0xff]  ;;  %v4708_v54 = vld [vmem:[%s5336_s1 + $0x5e8] sm:$0xf] }
 0x152   : > { %5880 = vst [vmem:[#allocation67_spill] sm:$0xff] %v4676_v27  ;;  %1328 = vmatpush.msrb.mxu0 %v4689_v6  ;;  %v4695_v27 = vld [vmem:[%s5336_s1 + $0x3d8] sm:$0xff]  ;;  %2029 = vmatpush.msk.msra.mxu2 %vm381_vm0, %v4708_v54 }
 0x153   : > { %5881 = vst [vmem:[#allocation102_spill] sm:$0xff] %v4682_v61  ;;  %1388 = vmatpush.msra.mxu1 %v4695_v27  ;;  %v4701_v61 = vld [vmem:[%s5336_s1 + $0x5e0] sm:$0xf] }
 0x154   : > { %5882 = vst [vmem:[#allocation80_spill] sm:$0xff] %v4689_v6  ;;  %2026 = vmatpush.msk.msra.mxu3 %vm381_vm0, %v4701_v61  ;;  %1329 = vmatpush.msrb.mxu0 %v4715_v46  ;;  %v4727_v6 = vld [vmem:[%s5336_s1 + $0x5b8] sm:$0xff] }
 0x155   : > { %5883 = vst [vmem:[#allocation71_spill] sm:$0xff] %v4695_v27  ;;  %v4721_v27 = vld [vmem:[%s5336_s1 + $0x3b0] sm:$0xff]  ;;  %1330 = vmatmul.f32.vlgmr.msrb.gmra.mxu0 %v4229_v39 }
 0x156   : > { %5884 = vst [vmem:[#allocation104_spill] sm:$0xff] %v4701_v61  ;;  %1389 = vmatpush.msra.mxu1 %v4721_v27  ;;  %1415 = vmatpush.msra.mxu3 %v4727_v6  ;;  %v4733_v61 = vld [vmem:[%s5336_s1 + $0x5c0] sm:$0xff] }
 0x157   : > { %5885 = vst [vmem:[#allocation84_spill] sm:$0xff] %v4708_v54  ;;  %v866_v54 = vpop.f32.mrf.mxu0  ;;  %1484 = vmatpush.msra.mxu2 %v4733_v61 }
 0x158   : > { %5886 = vst [vmem:[#allocation75_spill] sm:$0xff] %v4715_v46  ;;  %v4748_v54 = vld [vmem:[%s5336_s1 + $0x388] sm:$0xff]  ;;  %v4760_v46 = vld [vmem:[%s5336_s1 + $0x598] sm:$0xff]  ;;  %1377 = vmatmul.f32.gmra.mxu2 %v4226_v59 }
 0x159   : > { %5887 = vst [vmem:[#allocation106_spill] sm:$0xff] %v4721_v27  ;;  %v4742_v27 = vld [vmem:[%s5336_s1 + $0x278] sm:$0xff]  ;;  %1390 = vmatpush.msra.mxu1 %v4748_v54  ;;  %1485 = vmatpush.msra.mxu2 %v4760_v46 }
 0x15a   : > { %5888 = vst [vmem:[#allocation88_spill] sm:$0xff] %v4727_v6  ;;  %1427 = vmatpush.msra.mxu0 %v4742_v27  ;;  %1311 = vmatmul.f32.gmra.mxu3 %v4226_v59 }
 0x15b   : > { %5889 = vst [vmem:[#allocation79_spill] sm:$0xff] %v4733_v61  ;;  %v4754_v61 = vld [vmem:[%s5336_s1 + $0x590] sm:$0xff] }
 0x15c   : > { %5890 = vst [vmem:[#allocation108_spill] sm:$0xff] %v4742_v27  ;;  %1416 = vmatpush.msra.mxu3 %v4754_v61  ;;  %v4766_v27 = vld [vmem:[%s5336_s1 + $0x250] sm:$0xff] }
 0x15d   : > { %5891 = vst [vmem:[#allocation91_spill] sm:$0xff] %v4748_v54  ;;  %1428 = vmatpush.msra.mxu0 %v4766_v27  ;;  %v885_v54 = vpop.f32.mrf.mxu3 }
 0x15e   : > { %5892 = vst [vmem:[#allocation83_spill] sm:$0xff] %v4754_v61  ;;  %v4773_v61 = vld [vmem:[%s5336_s1 + $0x360] sm:$0xff]  ;;  %v886_v6 = vadd.f32 %v885_v54, %v863_v1  ;;  %v4799_v54 = vld [vmem:[%s5336_s1 + $0x338] sm:$0xff]  ;;  %1333 = vmatmul.f32.gmra.mxu0 %v4542_v5 }
 0x15f   : > { %5893 = vst [vmem:[#allocation110_spill] sm:$0xff] %v4760_v46  ;;  %1391 = vmatpush.msra.mxu1 %v4773_v61  ;;  %v4779_v46 = vld [vmem:[%s5336_s1 + $0x568] sm:$0xff]  ;;  %1429 = vmatpush.msra.mxu0 %v4791_v60 }
 0x160   : > { %5894 = vst [vmem:[#allocation93_spill] sm:$0xff] %v4766_v27  ;;  %1417 = vmatpush.msra.mxu3 %v4779_v46  ;;  %v4785_v27 = vld [vmem:[%s5336_s1 + $0x570] sm:$0xff]  ;;  %v908_v1 = vadd.f32 %v4593_v24, %v886_v6  ;;  %v4817_v24 = vld [vmem:[%s5336_s1 + $0x200] sm:$0xff] }
 0x161   : > { %5895 = vst [vmem:[#allocation86_spill] sm:$0xff] %v4773_v61  ;;  %1486 = vmatpush.msra.mxu2 %v4785_v27  ;;  %1392 = vmatpush.msra.mxu1 %v4799_v54  ;;  %v4811_v61 = vld [vmem:[%s5336_s1 + $0x548] sm:$0xff] }
 0x162   : > { %5896 = vst [vmem:[#allocation97_spill] sm:$0xff] %v4785_v27  ;;  %v4805_v27 = vld [vmem:[%s5336_s1 + $0x540] sm:$0xff]  ;;  %1430 = vmatpush.msra.mxu0 %v4817_v24  ;;  %v1117_v6 = vrot.slane %v908_v1, 1 }
 0x163   : > { %5897 = vst [vmem:[#allocation89_spill] sm:$0xff] %v4791_v60  ;;  %1418 = vmatpush.msra.mxu3 %v4805_v27  ;;  %1487 = vmatpush.msra.mxu2 %v4811_v61  ;;  %v4829_v60 = vld [vmem:[%s5336_s1 + $0x518] sm:$0xff] }
 0x164   : > { %5898 = vst [vmem:[#allocation113_spill] sm:$0xff] %v4799_v54  ;;  %v4823_v54 = vld [vmem:[%s5336_s1 + $0x310] sm:$0xff]  ;;  %v4841_v1 = vadd.f32 %v1117_v6, %v4430_v30  ;;  %v4860_v30 = vld [vmem:[%s5336_s1 + $0x2e8] sm:$0xff] }
 0x165   : > { %5899 = vst [vmem:[#allocation100_spill] sm:$0xff] %v4811_v61  ;;  %1393 = vmatpush.msra.mxu1 %v4823_v54  ;;  %1419 = vmatpush.msra.mxu3 %v4829_v60  ;;  %v4835_v61 = vld [vmem:[%s5336_s1 + $0x520] sm:$0xff]  ;;  %v4866_v6 = vld [vmem:[%s5336_s1 + $0x1b0] sm:$0xff] }
 0x166   : > { %5900 = vst [vmem:[#allocation92_spill] sm:$0xff] %v4817_v24  ;;  %1488 = vmatpush.msra.mxu2 %v4835_v61  ;;  %v4853_v24 = vld [vmem:[%s5336_s1 + $0x4f8] sm:$0xff]  ;;  %2027 = vmatmul.msk.f32.vlgmr.msra.gmra.mxu3 %vm374_vm1, %v4009_v26 }
 0x167   : > { %5901 = vst [vmem:[#allocation105_spill] sm:$0xff] %v4823_v54  ;;  %v4847_v54 = vld [vmem:[%s5336_s1 + $0x1d8] sm:$0xff]  ;;  %1450 = vmatpush.msrb.mxu3 %v4853_v24  ;;  %1394 = vmatpush.msra.mxu1 %v4860_v30 }
 0x168   : > { %5902 = vst [vmem:[#allocation95_spill] sm:$0xff] %v4835_v61  ;;  %1431 = vmatpush.msra.mxu0 %v4847_v54  ;;  %1562 = vmatpush.msrb.mxu2 %v3851_v47  ;;  %v4872_v61 = vld [vmem:[%s5336_s1 + $0x4d0] sm:$0xff]  ;;  %v4879_v47 = vld [vmem:[%s5336_s1 + $0x2c0] sm:$0xff] }
 0x169   : > { %5903 = vst [vmem:[#allocation107_spill] sm:$0xff] %v4860_v30  ;;  %1451 = vmatpush.msrb.mxu3 %v4872_v61  ;;  %1395 = vmatpush.msra.mxu1 %v4879_v47  ;;  %v4885_v30 = vld [vmem:[%s5336_s1 + $0x188] sm:$0xff] }
 0x16a   : > { %5904 = vst [vmem:[#allocation109_spill] sm:$0xff] %v4866_v6  ;;  %1432 = vmatpush.msra.mxu0 %v4866_v6  ;;  %1563 = vmatpush.msrb.mxu2 %v3870_v53  ;;  %v4891_v6 = vld [vmem:[%s5336_s1 + $0x4a8] sm:$0xff]  ;;  %v4898_v53 = vld [vmem:[%s5336_s1 + $0x298] sm:$0xff] }
 0x16b   : > { %5905 = vst [vmem:[#allocation111_spill] sm:$0xff] %v4879_v47  ;;  %1452 = vmatpush.msrb.mxu3 %v4891_v6  ;;  %1396 = vmatpush.msra.mxu1 %v4898_v53  ;;  %v4906_v47 = vld [vmem:[%s5336_s1 + $0x160] sm:$0xff] }
 0x16c   : > { %5906 = vst [vmem:[#allocation112_spill] sm:$0xff] %v4885_v30  ;;  %1433 = vmatpush.msra.mxu0 %v4885_v30  ;;  %1564 = vmatpush.msrb.mxu2 %v3890_v55  ;;  %v4912_v55 = vld [vmem:[%s5336_s1 + $0x480] sm:$0xff]  ;;  %v4923_v30 = vld [vmem:[%s5336_s1 + $0x138] sm:$0xff] }
 0x16d   : > { %5907 = vst [vmem:[#allocation114_spill] sm:$0xff] %v4898_v53  ;;  %1453 = vmatpush.msrb.mxu3 %v4912_v55  ;;  %1540 = vmatpush.msrb.mxu1 %v3784_v21  ;;  %v4917_v53 = vpop.f32.mrf.mxu1  ;;  %v4937_v21 = vld [vmem:[%s5336_s1 + $0x110] sm:$0xff] }
 0x16e   : > { %5908 = vst [vmem:[#allocation115_spill] sm:$0xff] %v4906_v47  ;;  %1434 = vmatpush.msra.mxu0 %v4906_v47  ;;  %1565 = vmatpush.msrb.mxu2 %v3911_v56  ;;  %v4929_v47 = vld [vmem:[%s5336_s1 + $0x458] sm:$0xff]  ;;  %v4940_v56 = vpop.f32.mrf.mxu0 }
 0x16f   : > { %1397 = vmatmul.f32.vlgmr.msra.gmra.mxu1 %v4229_v39  ;;  %5909 = vst [vmem:[#allocation116_spill] sm:$0xff] %v4923_v30  ;;  %1454 = vmatpush.msrb.mxu3 %v4929_v47 }
 0x170   : > { %1435 = vmatpush.msra.mxu0 %v4923_v30  ;;  %1541 = vmatpush.msrb.mxu1 %v3798_v40  ;;  %v4945_v30 = vld [vmem:[%s5336_s1 + $0x430] sm:$0xff]  ;;  %v4953_v40 = vld [vmem:[%s5336_s1 + $0xe8] sm:$0xff] }
 0x171   : > { %1566 = vmatpush.msrb.mxu2 %v3939_v62  ;;  %1455 = vmatpush.msrb.mxu3 %v4945_v30  ;;  %5910 = vst [vmem:[#allocation117_spill] sm:$0xff] %v4953_v40  ;;  %v4960_v62 = vld [vmem:[%s5336_s1 + $0x408] sm:$0xff] }
 0x172   : > { %1436 = vmatpush.msra.mxu0 %v4937_v21  ;;  %1542 = vmatpush.msrb.mxu1 %v3813_v12  ;;  %v4970_v12 = vld [vmem:[%s5336_s1 + $0xc0] sm:$0xff] }
 0x173   : > { %1567 = vmatpush.msrb.mxu2 %v3965_v48  ;;  %1456 = vmatpush.msrb.mxu3 %v4960_v62 }
 0x174   : > { %1437 = vmatpush.msra.mxu0 %v4953_v40  ;;  %1543 = vmatpush.msrb.mxu1 %v3828_v44  ;;  %v4976_v40 = vld [vmem:[%s5336_s1 + $0x3e0] sm:$0xff]  ;;  %v4984_v44 = vld [vmem:[%s5336_s1 + $0x98] sm:$0xff] }
 0x175   : > { %1568 = vmatpush.msrb.mxu2 %v3991_v16  ;;  %2028 = vmatmul.msk.f32.gmra.mxu3 %vm374_vm1, %v4116_v17  ;;  %v932_v48 = vpop.f32.mrf.mxu1  ;;  %v888_v16 = vpop.f32.mrf.mxu3 }
 0x176   : > { %1438 = vmatpush.msra.mxu0 %v4970_v12  ;;  %1457 = vmatpush.msrb.mxu3 %v4976_v40  ;;  %v4990_v48 = vld [vmem:[%s5336_s1 + $0x3b8] sm:$0xff]  ;;  %v5005_v16 = vld [vmem:[%s5336_s1 + $0x390] sm:$0xff] }
 0x177   : > { %1544 = vmatpush.msrb.mxu1 %v3845_v49  ;;  %1569 = vmatpush.msrb.mxu2 %v4020_v3  ;;  %v976_v49 = vpop.f32.mrf.mxu0  ;;  %v4999_v3 = vld [vmem:[%s5336_s1 + $0x70] sm:$0xff] }
 0x178   : > { %1439 = vmatpush.msra.mxu0 %v4984_v44  ;;  %1458 = vmatpush.msrb.mxu3 %v4990_v48  ;;  %v5021_v49 = vld [vmem:[%s5336_s1 + $0x368] sm:$0xff] }
 0x179   : > { %1545 = vmatpush.msrb.mxu1 %v3864_v8  ;;  %1570 = vmatpush.msrb.mxu2 %v4048_v18  ;;  %v5010_v8 = vpop.f32.mrf.mxu2  ;;  %v5015_v18 = vld [vmem:[%s5336_s1 + $0x48] sm:$0xff] }
 0x17a   : > { %1400 = vmatmul.f32.gmra.mxu1 %v4542_v5  ;;  %1440 = vmatpush.msra.mxu0 %v4999_v3 }
 0x17b   : > { %1459 = vmatpush.msrb.mxu3 %v5005_v16  ;;  %1546 = vmatpush.msrb.mxu1 %v3884_v15  ;;  %v5029_v15 = vld [vmem:[%s5336_s1 + $0x20] sm:$0xff] }
 0x17c   : > { %1571 = vmatpush.msrb.mxu2 %v4073_v31  ;;  %1441 = vmatpush.msra.mxu0 %v5015_v18  ;;  %v5035_v31 = vld [vmem:[%s5336_s1 + $0x340] sm:$0xff] }
 0x17d   : > { %1460 = vmatpush.msrb.mxu3 %v5021_v49  ;;  %1547 = vmatpush.msrb.mxu1 %v3905_v19  ;;  %v5045_v19 = vld [vmem:[%s5336_s1 + $0x318] sm:$0xff] }
 0x17e   : > { %1572 = vmatpush.msrb.mxu2 %v4097_v13  ;;  %1442 = vmatpush.msra.mxu0 %v5029_v15  ;;  %v5050_v13 = vpop.f32.mrf.mxu1 }
 0x17f   : > { %1461 = vmatpush.msrb.mxu3 %v5035_v31  ;;  %1548 = vmatpush.msrb.mxu1 %v3933_v4  ;;  %v5056_v4 = vld [vmem:[%s5336_s1 + $0x2f0] sm:$0xff] }
 0x180   : > { %1573 = vmatpush.msrb.mxu2 %v4127_v37  ;;  %2040 = vmatpush.msk.msrb.mxu0 %vm381_vm0, %v3765_v36  ;;  %v995_v36 = vpop.f32.mrf.mxu3  ;;  %v5918_v37 = vld [vmem:[#allocation4_spill] sm:$0xff] }
 0x181   : > { %1462 = vmatpush.msrb.mxu3 %v5045_v19  ;;  %1549 = vmatpush.msrb.mxu1 %v3957_v58  ;;  %v954_v58 = vpop.f32.mrf.mxu2 }
 0x182   : > { %1574 = vmatpush.msrb.mxu2 %v4157_v52  ;;  %1595 = vmatpush.msrb.mxu0 %v3776_v7  ;;  %v5066_v7 = vld [vmem:[%s5336_s1 + $0x2c8] sm:$0xff] }
 0x183   : > { %1463 = vmatpush.msrb.mxu3 %v5056_v4  ;;  %1550 = vmatpush.msrb.mxu1 %v3985_v10  ;;  %v1018_v10 = vpop.f32.mrf.mxu0 }
 0x184   : > { %1575 = vmatpush.msrb.mxu2 %v4183_v20  ;;  %1596 = vmatpush.msrb.mxu0 %v3792_v38  ;;  %v5077_v38 = vld [vmem:[%s5336_s1 + $0x2a0] sm:$0xff] }
 0x185   : > { %1464 = vmatpush.msrb.mxu3 %v5066_v7  ;;  %2030 = vmatmul.msk.f32.vlgmr.msra.gmra.mxu2 %vm374_vm1, %v4009_v26  ;;  %v5915_v20 = vld [vmem:[#allocation22_spill] sm:$0xff] }
 0x186   : > { %1551 = vmatpush.msrb.mxu1 %v4014_v9  ;;  %1576 = vmatpush.msrb.mxu2 %v4210_v63  ;;  %v5914_v9 = vld [vmem:[#allocation24_spill] sm:$0xff]  ;;  %v5113_v63 = vld [vmem:[%s2601_s11 + $0x98] sm:$0xff] }
 0x187   : > { %1597 = vmatpush.msrb.mxu0 %v3807_v41  ;;  %1465 = vmatpush.msrb.mxu3 %v5077_v38  ;;  %v1044_v41 = vpop.f32.mrf.mxu1 }
 0x188   : > { %1552 = vmatpush.msrb.mxu1 %v4040_v32  ;;  %1577 = vmatpush.msrb.mxu2 %v4241_v35  ;;  %v998_v26 = vpop.f32.mrf.mxu3  ;;  %v1019_v35 = vadd.f32 %v1018_v10, %v995_v36  ;;  %v5928_v10 = vld [vmem:[#allocation33_spill] sm:$0xff] }
 0x189   : > { %1466 = vmatmul.f32.vlgmr.msrb.gmra.mxu3 %v4229_v39  ;;  %1598 = vmatpush.msrb.mxu0 %v3822_v42  ;;  %v5911_v42 = vld [vmem:[#allocation3_spill] sm:$0xff] }
 0x18a   : > { %1606 = vmatpush.msra.mxu3 %v3917_v25  ;;  %1672 = vmatpush.msra.mxu2 %v4273_v34  ;;  %v5912_v25 = vld [vmem:[#allocation6_spill] sm:$0xff]  ;;  %v952_v34 = vadd.f32 %v5010_v8, %v4917_v53  ;;  %v1042_v53 = vadd.f32 %v5050_v13, %v1019_v35 }
 0x18b   : > { %1553 = vmatpush.msrb.mxu1 %v4067_v51  ;;  %1599 = vmatpush.msrb.mxu0 %v3837_v45  ;;  %v5913_v45 = vld [vmem:[#allocation2_spill] sm:$0xff]  ;;  %v1021_v32 = vpop.f32.mrf.mxu0  ;;  %v5920_v51 = vld [vmem:[#allocation39_spill] sm:$0xff] }
 0x18c   : > { %1607 = vmatpush.msra.mxu3 %v3945_v22  ;;  %1673 = vmatpush.msra.mxu2 %v4299_v2  ;;  %v1064_v22 = vpop.f32.mrf.mxu2  ;;  %v1022_v39 = vadd.f32 %v1021_v32, %v998_v26  ;;  %v5922_v2 = vld [vmem:[#allocation13_spill] sm:$0xff]  ;;  %v974_v58 = vadd.f32 %v4940_v56, %v952_v34  ;;  %v1126_v13 = vrot.slane %v1042_v53, 3  ;;  %v5931_v56 = vld [vmem:[#allocation27_spill] sm:$0xff]  ;;  %v5939_v34 = vld [vmem:[#allocation30_spill] sm:$0xff] }
 0x18d   : > { %1443 = vmatmul.f32.vlgmr.msra.gmra.mxu0 %v4113_v29  ;;  %1554 = vmatpush.msrb.mxu1 %v4091_v43  ;;  %v5917_v29 = vld [vmem:[#allocation62_spill] sm:$0xff] }
 0x18e   : > { %1628 = vmatpush.msra.mxu0 %v3857_v0  ;;  %1608 = vmatpush.msra.mxu3 %v5911_v42  ;;  %v5916_v0 = vld [vmem:[#allocation42_spill] sm:$0xff]  ;;  %v1045_v8 = vadd.f32 %v1044_v41, %v1022_v39  ;;  %v5929_v42 = vld [vmem:[#allocation45_spill] sm:$0xff] }
 0x18f   : > { %1674 = vmatpush.msra.mxu2 %v4323_v57  ;;  %1555 = vmatpush.msrb.mxu1 %v5912_v25  ;;  %v1087_v52 = vpop.f32.mrf.mxu1  ;;  %v5921_v43 = vld [vmem:[#allocation50_spill] sm:$0xff]  ;;  %v5923_v57 = vld [vmem:[#allocation9_spill] sm:$0xff] }
 0x190   : > { %2031 = vmatmul.msk.f32.gmra.mxu2 %vm374_vm1, %v4116_v17  ;;  %1629 = vmatpush.msra.mxu0 %v5913_v45  ;;  %v5919_v17 = vld [vmem:[#allocation21_spill] sm:$0xff]  ;;  %v1088_v26 = vadd.f32 %v1087_v52, %v1064_v22  ;;  %v5930_v25 = vld [vmem:[#allocation94_spill] sm:$0xff]  ;;  %v1127_v41 = vrot.slane %v1045_v8, 3  ;;  %v5932_v45 = vld [vmem:[#allocation11_spill] sm:$0xff] }
 0x191   : > { %1609 = vmatpush.msra.mxu3 %v5914_v9  ;;  %2043 = vmatpush.msk.msra.mxu1 %vm381_vm0, %v5915_v20  ;;  %v5141_v9 = vld [vmem:[%s2601_s11 + $0xa0] sm:$0xff]  ;;  %v5935_v22 = vld [vmem:[#allocation17_spill] sm:$0xff]  ;;  %v5938_v52 = vld [vmem:[#allocation52_spill] sm:$0xff] }
 0x192   : > { %1675 = vmatpush.msra.mxu2 %v4349_v11  ;;  %1630 = vmatpush.msra.mxu0 %v5916_v0  ;;  %v1110_v11 = vpop.f32.mrf.mxu3  ;;  %v5934_v0 = vld [vmem:[#allocation38_spill] sm:$0xff]  ;;  %v5943_v8 = vld [vmem:[#allocation19_spill] sm:$0xff] }
 0x193   : > { %1469 = vmatmul.f32.gmra.mxu3 %v4542_v5  ;;  %1661 = vmatpush.msra.mxu1 %v5917_v29  ;;  %v5926_v5 = vld [vmem:[#allocation54_spill] sm:$0xff]  ;;  %v1111_v29 = vadd.f32 %v1110_v11, %v1088_v26  ;;  %v1177_v26 = vpop.f32.mrf.mxu0 }
 0x194   : > { %1610 = vmatpush.msra.mxu3 %v5918_v37  ;;  %1676 = vmatpush.msra.mxu2 %v4374_v23  ;;  %v5924_v23 = vld [vmem:[#allocation5_spill] sm:$0xff]  ;;  %v1067_v36 = vpop.f32.mrf.mxu2  ;;  %v5941_v11 = vld [vmem:[#allocation66_spill] sm:$0xff] }
 0x195   : > { %1631 = vmatpush.msra.mxu0 %v5919_v17  ;;  %1662 = vmatpush.msra.mxu1 %v5920_v51  ;;  %v5936_v17 = vld [vmem:[#allocation37_spill] sm:$0xff] }
 0x196   : > { %1611 = vmatpush.msra.mxu3 %v5921_v43  ;;  %1677 = vmatpush.msra.mxu2 %v4406_v28  ;;  %v5925_v28 = vld [vmem:[#allocation46_spill] sm:$0xff]  ;;  %v5937_v51 = vld [vmem:[#allocation25_spill] sm:$0xff]  ;;  %v1128_v43 = vsel %vm743_vm2, %v1126_v13, %v1127_v41 }
 0x197   : > { %1632 = vmatpush.msra.mxu0 %v5922_v2  ;;  %1663 = vmatpush.msra.mxu1 %v5923_v57  ;;  %v1090_v20 = vpop.f32.mrf.mxu1  ;;  %v5940_v2 = vld [vmem:[#allocation82_spill] sm:$0xff]  ;;  %v5948_v13 = vld [vmem:[#allocation61_spill] sm:$0xff] }
 0x198   : > { %1612 = vmatpush.msra.mxu3 %v5924_v23  ;;  %1678 = vmatpush.msra.mxu2 %v4435_v50  ;;  %v5130_v50 = vld [vmem:[%s2601_s11 + $0x90] sm:$0xff]  ;;  %v1091_v32 = vadd.f32 %v1090_v20, %v1067_v36  ;;  %v5942_v23 = vld [vmem:[#allocation87_spill] sm:$0xff]  ;;  %v5944_v36 = vld [vmem:[#allocation85_spill] sm:$0xff] }
 0x199   : > { %1446 = vmatmul.f32.gmra.mxu0 %v4226_v59  ;;  %1578 = vmatmul.f32.vlgmr.msrb.gmra.mxu2 %v5113_v63  ;;  %v5927_v59 = vld [vmem:[#allocation15_spill] sm:$0xff]  ;;  %v5171_v41 = vld [vmem:[%s2601_s11 + $0xb8] sm:$0x3] }
 0x19a   : > { %1633 = vmatpush.msra.mxu0 %v5925_v28  ;;  %1613 = vmatpush.msra.mxu3 %v5926_v5  ;;  %v1113_v37 = vpop.f32.mrf.mxu3  ;;  %v5159_v28 = vld [vmem:[%s2601_s11 + $0xa8] sm:$0x3]  ;;  %v1133_v5 = vrot.slane %v1111_v29, 4  ;;  %v5955_v29 = vld [vmem:[#allocation101_spill] sm:$0xff] }
 0x19b   : > { %1664 = vmatpush.msra.mxu1 %v4267_v33  ;;  %1679 = vmatpush.msra.mxu2 %v4460_v14  ;;  %v1121_v33 = vrot.slane %v974_v58, 2  ;;  %v5933_v14 = vld [vmem:[#allocation7_spill] sm:$0xff]  ;;  %v1114_v35 = vadd.f32 %v1113_v37, %v1091_v32  ;;  %v5945_v58 = vld [vmem:[#allocation41_spill] sm:$0xff]  ;;  %v5956_v37 = vld [vmem:[#allocation8_spill] sm:$0xff] }
 0x19c   : > { %1634 = vmatpush.msra.mxu0 %v5927_v59  ;;  %1614 = vmatpush.msra.mxu3 %v5928_v10  ;;  %v5154_v57 = vpop.f32.mrf.mxu2  ;;  %v5946_v59 = vld [vmem:[#allocation51_spill] sm:$0xff] }
 0x19d   : > { %1665 = vmatpush.msra.mxu1 %v5929_v42  ;;  %1680 = vmatpush.msra.mxu2 %v5930_v25  ;;  %v1123_v39 = vadd.f32 %v1121_v33, %v4841_v1  ;;  %v1134_v53 = vrot.slane %v1114_v35, 4  ;;  %v5947_v42 = vld [vmem:[#allocation58_spill] sm:$0xff]  ;;  %v5950_v33 = vld [vmem:[#allocation68_spill] sm:$0xff] }
 0x19e   : > { %1556 = vmatmul.f32.vlgmr.msrb.gmra.mxu1 %v5130_v50  ;;  %1635 = vmatpush.msra.mxu0 %v5931_v56  ;;  %v5949_v56 = vld [vmem:[#allocation10_spill] sm:$0xff] }
 0x19f   : > { %1694 = vmatpush.msrb.mxu1 %v5932_v45  ;;  %1615 = vmatpush.msra.mxu3 %v5933_v14  ;;  %v1130_v1 = vadd.f32 %v1128_v43, %v1123_v39  ;;  %v1135_v10 = vsel %vm381_vm0, %v1133_v5, %v1134_v53  ;;  %v5951_v45 = vld [vmem:[#allocation36_spill] sm:$0xff]  ;;  %v5952_v14 = vld [vmem:[#allocation23_spill] sm:$0xff]  ;;  %v5964_v53 = vld [vmem:[#allocation70_spill] sm:$0xff] }
 0x1a0   : > { %1681 = vmatpush.msra.mxu2 %v5934_v0  ;;  %1636 = vmatpush.msra.mxu0 %v5935_v22  ;;  %v5953_v0 = vld [vmem:[#allocation65_spill] sm:$0xff]  ;;  %v5954_v22 = vld [vmem:[#allocation34_spill] sm:$0xff]  ;;  %v5959_v43 = vld [vmem:[#allocation67_spill] sm:$0xff] }
 0x1a1   : > { %1695 = vmatpush.msrb.mxu1 %v5936_v17  ;;  %1616 = vmatpush.msra.mxu3 %v5937_v51  ;;  %v1137_v25 = vadd.f32 %v1135_v10, %v1130_v1  ;;  %v5957_v17 = vld [vmem:[#allocation69_spill] sm:$0xff]  ;;  %v5960_v39 = vld [vmem:[#allocation28_spill] sm:$0xff]  ;;  %v5970_v10 = vld [vmem:[#allocation26_spill] sm:$0xff] }
 0x1a2   : > { %1682 = vmatpush.msra.mxu2 %v5938_v52  ;;  %2041 = vmatmul.msk.f32.vlgmr.msrb.gmra.mxu0 %vm374_vm1, %v5141_v9  ;;  %v5958_v52 = vld [vmem:[#allocation78_spill] sm:$0xff]  ;;  %v5963_v5 = vld [vmem:[#allocation104_spill] sm:$0xff] }
 0x1a3   : > { %1637 = vmatpush.msra.mxu0 %v5939_v34  ;;  %1696 = vmatpush.msrb.mxu1 %v5940_v2  ;;  %v1138_v20 = vadd.f32 %v5952_v14, %v1137_v25  ;;  %v5188_v34 = vld [vmem:[%s2601_s11 + $0xb0] sm:$0x3]  ;;  %v5961_v2 = vld [vmem:[#allocation98_spill] sm:$0xff]  ;;  %v5971_v25 = vld [vmem:[#allocation83_spill] sm:$0xff] }
 0x1a4   : > { %1617 = vmatpush.msra.mxu3 %v5941_v11  ;;  %1683 = vmatpush.msra.mxu2 %v5942_v23  ;;  %v1224_v51 = vpop.f32.mrf.mxu2  ;;  %v5962_v11 = vld [vmem:[#allocation12_spill] sm:$0xff]  ;;  %v1180_v23 = vpop.f32.mrf.mxu0 }
 0x1a5   : > { %1638 = vmatpush.msra.mxu0 %v5943_v8  ;;  %1697 = vmatpush.msrb.mxu1 %v5944_v36  ;;  %v1140_v32 = vmin.f32 %v1138_v20, 0.0  ;;  %v5965_v8 = vld [vmem:[#allocation77_spill] sm:$0xff]  ;;  %v5966_v36 = vld [vmem:[#allocation14_spill] sm:$0xff]  ;;  %v5967_v1 = vld [vmem:[#allocation88_spill] sm:$0xff]  ;;  %vm1139_vm4 = vcmp.gt.f32.partialorder %v1138_v20, 0.0 }
 0x1a6   : > { %1618 = vmatpush.msra.mxu3 %v5945_v58  ;;  %1684 = vmatpush.msra.mxu2 %v5946_v59  ;;  %v5968_v58 = vld [vmem:[#allocation31_spill] sm:$0xff]  ;;  %v5982_v23 = vld [vmem:[#allocation73_spill] sm:$0xff] }
 0x1a7   : > { %1559 = vmatmul.f32.gmra.mxu1 %v5159_v28  ;;  %1639 = vmatpush.msra.mxu0 %v5947_v42  ;;  %v1141_v35 = vmul.f32 1.442695, %v1140_v32  ;;  %v5969_v59 = vld [vmem:[#allocation43_spill] sm:$0xff]  ;;  %v1243_v32 = vpop.f32.mrf.mxu1 }
 0x1a8   : > { %1698 = vmatpush.msrb.mxu1 %v5948_v13  ;;  %1619 = vmatpush.msra.mxu3 %v5949_v56  ;;  %v5972_v13 = vld [vmem:[#allocation74_spill] sm:$0xff]  ;;  %v1199_v56 = vpop.f32.mrf.mxu3 }
 0x1a9   : > { %1685 = vmatpush.msra.mxu2 %v5950_v33  ;;  %1640 = vmatpush.msra.mxu0 %v5951_v45  ;;  %2071 = vpow2.f32 %v1141_v35  ;;  %v5973_v33 = vld [vmem:[#allocation60_spill] sm:$0xff] }
 0x1aa   : > { %1699 = vmatpush.msrb.mxu1 %v5953_v0  ;;  %1620 = vmatpush.msra.mxu3 %v5954_v22  ;;  %v1200_v0 = vadd.f32 %v1199_v56, %v1177_v26  ;;  %v5977_v35 = vld [vmem:[#allocation32_spill] sm:$0xff]  ;;  %v5978_v26 = vld [vmem:[#allocation53_spill] sm:$0xff] }
 0x1ab   : > { %1686 = vmatpush.msra.mxu2 %v5955_v29  ;;  %2042 = vmatmul.msk.f32.gmra.mxu0 %vm374_vm1, %v5171_v41  ;;  %v5974_v29 = vld [vmem:[#allocation29_spill] sm:$0xff] }
 0x1ac   : > { %1641 = vmatpush.msra.mxu0 %v5956_v37  ;;  %1700 = vmatpush.msrb.mxu1 %v5957_v17  ;;  %v1265_v22 = vpop.f32.mrf.mxu2  ;;  %v5975_v37 = vld [vmem:[#allocation49_spill] sm:$0xff]  ;;  %v1222_v51 = vadd.f32 %v5154_v57, %v1200_v0  ;;  %v5980_v57 = vld [vmem:[#allocation35_spill] sm:$0xff] }
 0x1ad   : > { %1621 = vmatpush.msra.mxu3 %v5958_v52  ;;  %1687 = vmatpush.msra.mxu2 %v5959_v43  ;;  %v1266_v52 = vadd.f32 %v1265_v22, %v1243_v32  ;;  %v5976_v43 = vld [vmem:[#allocation96_spill] sm:$0xff]  ;;  %v5998_v56 = vld [vmem:[#allocation89_spill] sm:$0xff]  ;;  %v6002_v0 = vld [vmem:[#allocation47_spill] sm:$0xff] }
 0x1ae   : > { %1622 = vmatmul.f32.vlgmr.msra.gmra.mxu3 %v5130_v50  ;;  %1642 = vmatpush.msra.mxu0 %v5960_v39  ;;  %v6003_v22 = vld [vmem:[#allocation71_spill] sm:$0xff]  ;;  %v6005_v32 = vld [vmem:[#allocation106_spill] sm:$0xff] }
 0x1af   : > { %1701 = vmatpush.msrb.mxu1 %v5961_v2  ;;  %2046 = vmatpush.msk.msrb.mxu3 %vm381_vm0, %v5962_v11  ;;  %v2072_v42 = vpop.eup %2071  ;;  %v5981_v2 = vld [vmem:[#allocation57_spill] sm:$0xff] }
 0x1b0   : > { %2049 = vmatpush.msk.msrb.mxu2 %vm381_vm0, %v5963_v5  ;;  %1643 = vmatpush.msra.mxu0 %v5964_v53  ;;  %v2009_v45 = vadd.f32 -1.0, %v2072_v42  ;;  %v5984_v5 = vld [vmem:[#allocation16_spill] sm:$0xff]  ;;  %v5995_v42 = vld [vmem:[#allocation93_spill] sm:$0xff] }
 0x1b1   : > { %1581 = vmatmul.f32.gmra.mxu2 %v5188_v34  ;;  %2044 = vmatmul.msk.f32.vlgmr.msra.gmra.mxu1 %vm374_vm1, %v5141_v9 }
 0x1b2   : > { %1702 = vmatpush.msrb.mxu1 %v5965_v8  ;;  %1727 = vmatpush.msrb.mxu3 %v5966_v36  ;;  %v1144_v17 = vsel %vm1139_vm4, %v1138_v20, %v2009_v45  ;;  %v5979_v20 = vld [vmem:[#allocation59_spill] sm:$0xff]  ;;  %v5985_v8 = vld [vmem:[#allocation40_spill] sm:$0xff] }
 0x1b3   : > { %1795 = vmatpush.msrb.mxu2 %v5967_v1  ;;  %1738 = vmatpush.msrb.mxu0 %v5968_v58  ;;  %2010 = vst [vmem:[%s4591_s16 + $0x8] sm:$0x3f] %v1144_v17  ;;  %v5986_v36 = vld [vmem:[#allocation80_spill] sm:$0xff]  ;;  %v5989_v58 = vld [vmem:[#allocation75_spill] sm:$0xff] }
 0x1b4   : > { %1703 = vmatpush.msrb.mxu1 %v5969_v59  ;;  %1728 = vmatpush.msrb.mxu3 %v5970_v10  ;;  %v5988_v1 = vld [vmem:[#allocation56_spill] sm:$0xff]  ;;  %v5991_v59 = vld [vmem:[#allocation90_spill] sm:$0xff]  ;;  %v6007_v17 = vld [vmem:[#allocation99_spill] sm:$0xff] }
 0x1b5   : > { %1796 = vmatpush.msrb.mxu2 %v5971_v25  ;;  %1739 = vmatpush.msrb.mxu0 %v5972_v13  ;;  %v5992_v10 = vld [vmem:[#allocation108_spill] sm:$0xff] }
 0x1b6   : > { %1644 = vmatmul.f32.vlgmr.msra.gmra.mxu0 %v5113_v63  ;;  %1704 = vmatpush.msrb.mxu1 %v5973_v33  ;;  %v5996_v25 = vld [vmem:[#allocation48_spill] sm:$0xff]  ;;  %v6000_v33 = vld [vmem:[#allocation103_spill] sm:$0xff] }
 0x1b7   : > { %1729 = vmatpush.msrb.mxu3 %v5974_v29  ;;  %1797 = vmatpush.msrb.mxu2 %v4779_v46  ;;  %v1287_v46 = vpop.f32.mrf.mxu0  ;;  %v5997_v13 = vld [vmem:[#allocation72_spill] sm:$0xff] }
 0x1b8   : > { %1740 = vmatpush.msrb.mxu0 %v5975_v37  ;;  %1625 = vmatmul.f32.gmra.mxu3 %v5159_v28  ;;  %v1288_v39 = vadd.f32 %v1287_v46, %v1266_v52  ;;  %v6001_v45 = vld [vmem:[#allocation92_spill] sm:$0xff]  ;;  %v6006_v37 = vld [vmem:[#allocation109_spill] sm:$0xff]  ;;  %v6011_v52 = vld [vmem:[#allocation86_spill] sm:$0xff] }
 0x1b9   : > { %1705 = vmatpush.msrb.mxu1 %v5976_v43  ;;  %1730 = vmatpush.msrb.mxu3 %v5977_v35  ;;  %v6004_v29 = vld [vmem:[#allocation64_spill] sm:$0xff]  ;;  %v6012_v43 = vld [vmem:[#allocation115_spill] sm:$0xff]  ;;  %v6013_v35 = vld [vmem:[#allocation102_spill] sm:$0xff] }
 0x1ba   : > { %1798 = vmatpush.msrb.mxu2 %v4805_v27  ;;  %1741 = vmatpush.msrb.mxu0 %v5978_v26  ;;  %v1497_v11 = vrot.slane %v1288_v39, 1  ;;  %v5983_v27 = vld [vmem:[#allocation76_spill] sm:$0xff]  ;;  %v6014_v26 = vld [vmem:[#allocation113_spill] sm:$0xff] }
 0x1bb   : > { %2045 = vmatmul.msk.f32.gmra.mxu1 %vm374_vm1, %v5171_v41  ;;  %1688 = vmatmul.f32.vlgmr.msra.gmra.mxu2 %v5130_v50  ;;  %v6017_v39 = vld [vmem:[#allocation84_spill] sm:$0xff] }
 0x1bc   : > { %1706 = vmatpush.msrb.mxu1 %v5979_v20  ;;  %1731 = vmatpush.msrb.mxu3 %v5980_v57  ;;  %v5230_v53 = vadd.f32 %v1497_v11, %v1222_v51  ;;  %v6010_v51 = vld [vmem:[#allocation63_spill] sm:$0xff]  ;;  %v6019_v20 = vld [vmem:[#allocation117_spill] sm:$0xff]  ;;  %v6023_v11 = vld [vmem:[#allocation110_spill] sm:$0xff] }
 0x1bd   : > { %1799 = vmatpush.msrb.mxu2 %v4829_v60  ;;  %1742 = vmatpush.msrb.mxu0 %v5981_v2  ;;  %v5987_v60 = vld [vmem:[#allocation18_spill] sm:$0xff]  ;;  %v6020_v57 = vld [vmem:[#allocation111_spill] sm:$0xff] }
 0x1be   : > { %1761 = vmatpush.msra.mxu3 %v5982_v23  ;;  %1707 = vmatpush.msrb.mxu1 %v5983_v27  ;;  %v6021_v2 = vld [vmem:[#allocation79_spill] sm:$0xff]  ;;  %v6025_v23 = vld [vmem:[#allocation100_spill] sm:$0xff] }
 0x1bf   : > { %1830 = vmatpush.msra.mxu2 %v4853_v24  ;;  %1743 = vmatpush.msrb.mxu0 %v5984_v5  ;;  %v5990_v24 = vld [vmem:[#allocation20_spill] sm:$0xff] }
 0x1c0   : > { %1762 = vmatpush.msra.mxu3 %v5985_v8  ;;  %1708 = vmatpush.msrb.mxu1 %v5986_v36 }
 0x1c1   : > { %1831 = vmatpush.msra.mxu2 %v4872_v61  ;;  %1744 = vmatpush.msrb.mxu0 %v5987_v60  ;;  %v5993_v61 = vld [vmem:[#allocation44_spill] sm:$0xff] }
 0x1c2   : > { %1763 = vmatpush.msra.mxu3 %v5988_v1  ;;  %1709 = vmatpush.msrb.mxu1 %v5989_v58 }
 0x1c3   : > { %1832 = vmatpush.msra.mxu2 %v4891_v6  ;;  %2047 = vmatmul.msk.f32.vlgmr.msrb.gmra.mxu3 %vm374_vm1, %v5141_v9  ;;  %v5994_v6 = vld [vmem:[#allocation55_spill] sm:$0xff] }
 0x1c4   : > { %1745 = vmatpush.msrb.mxu0 %v5990_v24  ;;  %1764 = vmatpush.msra.mxu3 %v5991_v59 }
 0x1c5   : > { %1807 = vmatpush.msra.mxu1 %v5992_v10  ;;  %1833 = vmatpush.msra.mxu2 %v4912_v55  ;;  %v5999_v55 = vld [vmem:[#allocation81_spill] sm:$0xff] }
 0x1c6   : > { %1691 = vmatmul.f32.gmra.mxu2 %v5159_v28  ;;  %1710 = vmatmul.f32.vlgmr.msrb.gmra.mxu1 %v5113_v63 }
 0x1c7   : > { %1746 = vmatpush.msrb.mxu0 %v5993_v61  ;;  %1765 = vmatpush.msra.mxu3 %v5994_v6 }
 0x1c8   : > { %1808 = vmatpush.msra.mxu1 %v5995_v42  ;;  %1834 = vmatpush.msra.mxu2 %v4929_v47  ;;  %v1246_v47 = vpop.f32.mrf.mxu1 }
 0x1c9   : > { %1747 = vmatpush.msrb.mxu0 %v5996_v25  ;;  %1766 = vmatpush.msra.mxu3 %v5997_v13 }
 0x1ca   : > { %1809 = vmatpush.msra.mxu1 %v5998_v56  ;;  %1835 = vmatpush.msra.mxu2 %v4945_v30  ;;  %v1202_v30 = vpop.f32.mrf.mxu3 }
 0x1cb   : > { %1748 = vmatpush.msrb.mxu0 %v5999_v55  ;;  %1767 = vmatpush.msra.mxu3 %v6000_v33 }
 0x1cc   : > { %1810 = vmatpush.msra.mxu1 %v6001_v45  ;;  %1836 = vmatpush.msra.mxu2 %v4960_v62  ;;  %v1290_v62 = vpop.f32.mrf.mxu0 }
 0x1cd   : > { %1749 = vmatpush.msrb.mxu0 %v6002_v0  ;;  %1768 = vmatpush.msra.mxu3 %v6003_v22 }
 0x1ce   : > { %1811 = vmatpush.msra.mxu1 %v4847_v54  ;;  %1837 = vmatpush.msra.mxu2 %v4976_v40  ;;  %v6008_v54 = vld [vmem:[#allocation91_spill] sm:$0xff]  ;;  %v6009_v40 = vld [vmem:[#allocation112_spill] sm:$0xff] }
 0x1cf   : > { %1647 = vmatmul.f32.gmra.mxu0 %v5188_v34  ;;  %2050 = vmatmul.msk.f32.vlgmr.msrb.gmra.mxu2 %vm374_vm1, %v5141_v9 }
 0x1d0   : > { %1750 = vmatpush.msrb.mxu0 %v6004_v29  ;;  %1769 = vmatpush.msra.mxu3 %v6005_v32  ;;  %v1353_v46 = vpop.f32.mrf.mxu1 }
 0x1d1   : > { %1812 = vmatpush.msra.mxu1 %v6006_v37  ;;  %1838 = vmatpush.msra.mxu2 %v4990_v48  ;;  %v6015_v48 = vld [vmem:[#allocation116_spill] sm:$0xff] }
 0x1d2   : > { %1751 = vmatpush.msrb.mxu0 %v6007_v17  ;;  %1770 = vmatpush.msra.mxu3 %v6008_v54 }
 0x1d3   : > { %1813 = vmatpush.msra.mxu1 %v6009_v40  ;;  %1839 = vmatpush.msra.mxu2 %v5005_v16  ;;  %v6016_v16 = vld [vmem:[#allocation105_spill] sm:$0xff] }
 0x1d4   : > { %1752 = vmatpush.msrb.mxu0 %v6010_v51  ;;  %1771 = vmatpush.msra.mxu3 %v6011_v52 }
 0x1d5   : > { %1814 = vmatpush.msra.mxu1 %v6012_v43  ;;  %1840 = vmatpush.msra.mxu2 %v5021_v49  ;;  %v1309_v49 = vpop.f32.mrf.mxu3 }
 0x1d6   : > { %1753 = vmatpush.msrb.mxu0 %v6013_v35  ;;  %1772 = vmatpush.msra.mxu3 %v6014_v26 }
 0x1d7   : > { %1815 = vmatpush.msra.mxu1 %v6015_v48  ;;  %1841 = vmatpush.msra.mxu2 %v5035_v31  ;;  %v6018_v31 = vld [vmem:[#allocation107_spill] sm:$0xff] }
 0x1d8   : > { %2048 = vmatmul.msk.f32.gmra.mxu3 %vm374_vm1, %v5171_v41  ;;  %1754 = vmatmul.f32.vlgmr.msrb.gmra.mxu0 %v5130_v50 }
 0x1d9   : > { %2051 = vmatmul.msk.f32.gmra.mxu2 %vm374_vm1, %v5171_v41  ;;  %1773 = vmatpush.msra.mxu3 %v6016_v16 }
 0x1da   : > { %1816 = vmatpush.msra.mxu1 %v4937_v21  ;;  %1842 = vmatpush.msra.mxu2 %v5045_v19  ;;  %v1268_v21 = vpop.f32.mrf.mxu2  ;;  %v6022_v19 = vld [vmem:[#allocation114_spill] sm:$0xff] }
 0x1db   : > { %2052 = vmatpush.msk.msra.mxu0 %vm381_vm0, %v6017_v39  ;;  %1774 = vmatpush.msra.mxu3 %v6018_v31 }
 0x1dc   : > { %1817 = vmatpush.msra.mxu1 %v6019_v20  ;;  %1843 = vmatpush.msra.mxu2 %v5056_v4  ;;  %v1356_v4 = vpop.f32.mrf.mxu1 }
 0x1dd   : > { %1775 = vmatpush.msra.mxu3 %v6020_v57  ;;  %1864 = vmatpush.msra.mxu0 %v6021_v2 }
 0x1de   : > { %1818 = vmatpush.msra.mxu1 %v4970_v12  ;;  %1844 = vmatpush.msra.mxu2 %v5066_v7  ;;  %v1312_v12 = vpop.f32.mrf.mxu3  ;;  %v6024_v7 = vld [vmem:[#allocation97_spill] sm:$0xff] }
 0x1df   : > { %1713 = vmatmul.f32.gmra.mxu1 %v5188_v34  ;;  %1776 = vmatpush.msra.mxu3 %v6022_v19 }
 0x1e0   : > { %1819 = vmatpush.msra.mxu1 %v4984_v44  ;;  %1845 = vmatpush.msra.mxu2 %v5077_v38  ;;  %v6026_v44 = vld [vmem:[#allocation95_spill] sm:$0xff] }
 0x1e1   : > { %1757 = vmatmul.f32.gmra.mxu0 %v5159_v28  ;;  %1777 = vmatmul.f32.vlgmr.msra.gmra.mxu3 %v5113_v63 }
 0x1e2   : > { %1846 = vmatmul.f32.vlgmr.msra.gmra.mxu2 %v5113_v63  ;;  %1865 = vmatpush.msra.mxu0 %v6023_v11 }
 0x1e3   : > { %1820 = vmatpush.msra.mxu1 %v4999_v3  ;;  %v1375_v3 = vpop.f32.mrf.mxu2 }
 0x1e4   : > { %1866 = vmatpush.msra.mxu0 %v6024_v7 }
 0x1e5   : > { %1821 = vmatpush.msra.mxu1 %v5015_v18  ;;  %v1331_v18 = vpop.f32.mrf.mxu0 }
 0x1e6   : > { %1867 = vmatpush.msra.mxu0 %v6025_v23 }
 0x1e7   : > { %1822 = vmatpush.msra.mxu1 %v5029_v15 }
 0x1e8   : > { %1823 = vmatmul.f32.vlgmr.msra.gmra.mxu1 %v5130_v50  ;;  %1868 = vmatpush.msra.mxu0 %v6026_v44 }
 0x1e9   : > { %1780 = vmatmul.f32.gmra.mxu3 %v5188_v34  ;;  %2053 = vmatmul.msk.f32.vlgmr.msra.gmra.mxu0 %vm374_vm1, %v5141_v9  ;;  %v1421_v38 = vpop.f32.mrf.mxu3  ;;  %v1332_v9 = vadd.f32 %v1331_v18, %v1309_v49 }
 0x1ea   : > { %1849 = vmatmul.f32.gmra.mxu2 %v5188_v34 }
 0x1eb   : > { %v1378_v50 = vpop.f32.mrf.mxu2  ;;  %v1354_v24 = vadd.f32 %v1353_v46, %v1332_v9 }
 0x1ec   : > { %v1398_v15 = vpop.f32.mrf.mxu1 }
 0x1ed   : > { %v1334_v63 = vpop.f32.mrf.mxu0  ;;  %v1399_v58 = vadd.f32 %v1398_v15, %v1375_v3  ;;  %v1501_v61 = vrot.slane %v1354_v24, 2 }
 0x1ef   : > { %v1503_v45 = vadd.f32 %v1501_v61, %v5230_v53 }
 0x1f0   : > { %1826 = vmatmul.f32.gmra.mxu1 %v5159_v28  ;;  %v1422_v28 = vadd.f32 %v1421_v38, %v1399_v58 }
 0x1f1   : > { %2054 = vmatmul.msk.f32.gmra.mxu0 %vm374_vm1, %v5171_v41 }
 0x1f2   : > { %v1506_v25 = vrot.slane %v1422_v28, 3 }
 0x1f7   : > { %v1401_v8 = vpop.f32.mrf.mxu1 }
 0x1f8   : > { %v1424_v27 = vpop.f32.mrf.mxu3  ;;  %v1402_v1 = vadd.f32 %v1401_v8, %v1378_v50 }
 0x1fa   : > { %v1425_v34 = vadd.f32 %v1424_v27, %v1402_v1 }
 0x1fc   : > { %v1507_v41 = vrot.slane %v1425_v34, 3 }
 0x1fe   : > { %v1508_v55 = vsel %vm743_vm2, %v1506_v25, %v1507_v41 }
 0x1ff   : > { %v1510_v30 = vadd.f32 %v1508_v55, %v1503_v45 }
 0x208   : > { %v1490_v5 = vpop.f32.mrf.mxu2 }
 0x20a   : > { %v1444_v36 = vpop.f32.mrf.mxu0 }
 0x20c   : > { %v1467_v60 = vpop.f32.mrf.mxu3 }
 0x20d   : > { %v1468_v59 = vadd.f32 %v1467_v60, %v1444_v36 }
 0x20f   : > { %v1491_v13 = vadd.f32 %v1490_v5, %v1468_v59 }
 0x211   : > { %v1513_v0 = vrot.slane %v1491_v13, 4 }
 0x213   : > { %v1493_v10 = vpop.f32.mrf.mxu2 }
 0x216   : > { %v1447_v6 = vpop.f32.mrf.mxu0  ;;  %v1470_v42 = vpop.f32.mrf.mxu3 }
 0x217   : > { %v1471_v56 = vadd.f32 %v1470_v42, %v1447_v6 }
 0x219   : > { %v1494_v33 = vadd.f32 %v1493_v10, %v1471_v56 }
 0x21b   : > { %v1514_v22 = vrot.slane %v1494_v33, 4  ;;  %v1557_v47 = vpop.f32.mrf.mxu1 }
 0x21c   : > { %v1579_v29 = vpop.f32.mrf.mxu2 }
 0x21d   : > { %v1515_v32 = vsel %vm381_vm0, %v1513_v0, %v1514_v22  ;;  %v1580_v62 = vadd.f32 %v1579_v29, %v1557_v47 }
 0x21e   : > { %v1517_v37 = vadd.f32 %v1515_v32, %v1510_v30  ;;  %v2267_v30 = vld [vmem:[%s5337_s2] ss:$0 sm:$0xff] }
 0x21f   : > { %v1601_v17 = vpop.f32.mrf.mxu0 }
 0x220   : > { %v1518_v54 = vadd.f32 %v5952_v14, %v1517_v37  ;;  %v1602_v40 = vadd.f32 %v1601_v17, %v1580_v62 }
 0x222   : > { %v1520_v51 = vmin.f32 %v1518_v54, 0.0  ;;  %vm1519_vm5 = vcmp.gt.f32.partialorder %v1518_v54, 0.0 }
 0x224   : > { %v1521_v52 = vmul.f32 1.442695, %v1520_v51  ;;  %v1560_v43 = vpop.f32.mrf.mxu1 }
 0x226   : > { %2073 = vpow2.f32 %v1521_v52 }
 0x228   : > { %v1604_v35 = vpop.f32.mrf.mxu0 }
 0x22c   : > { %v2074_v53 = vpop.eup %2073 }
 0x22d   : > { %v2032_v26 = vadd.f32 -1.0, %v2074_v53 }
 0x22e   : > { %v1667_v48 = vpop.f32.mrf.mxu1 }
 0x22f   : > { %v1524_v46 = vsel %vm1519_vm5, %v1518_v54, %v2032_v26 }
 0x230   : > { %2033 = vst [vmem:[%s4591_s16 + $0x10] sm:$0x3f] %v1524_v46 }
 0x231   : > { %v1623_v16 = vpop.f32.mrf.mxu3 }
 0x233   : > { %v1645_v57 = vpop.f32.mrf.mxu0 }
 0x234   : > { %v1582_v49 = vpop.f32.mrf.mxu2  ;;  %v1646_v3 = vadd.f32 %v1645_v57, %v1623_v16 }
 0x236   : > { %v1668_v50 = vadd.f32 %v1667_v48, %v1646_v3 }
 0x238   : > { %v1670_v39 = vpop.f32.mrf.mxu1  ;;  %v1877_v60 = vrot.slane %v1668_v50, 1 }
 0x23a   : > { %v1879_v6 = vadd.f32 %v1877_v60, %v1602_v40 }
 0x23b   : > { %v1626_v31 = vpop.f32.mrf.mxu3 }
 0x23e   : > { %v1689_v20 = vpop.f32.mrf.mxu2 }
 0x243   : > { %v1711_v4 = vpop.f32.mrf.mxu1 }
 0x244   : > { %v1712_v27 = vadd.f32 %v1711_v4, %v1689_v20 }
 0x246   : > { %v1733_v19 = vpop.f32.mrf.mxu3 }
 0x247   : > { %v1734_v8 = vadd.f32 %v1733_v19, %v1712_v27 }
 0x249   : > { %v1692_v2 = vpop.f32.mrf.mxu2  ;;  %v1881_v28 = vrot.slane %v1734_v8, 2 }
 0x24b   : > { %v1883_v56 = vadd.f32 %v1881_v28, %v1879_v6 }
 0x24c   : > { %v1648_v14 = vpop.f32.mrf.mxu0 }
 0x252   : > { %v1801_v21 = vpop.f32.mrf.mxu2 }
 0x255   : > { %v1755_v11 = vpop.f32.mrf.mxu0 }
 0x25b   : > { %v1736_v12 = vpop.f32.mrf.mxu3 }
 0x25c   : > { %v1714_v7 = vpop.f32.mrf.mxu1  ;;  %v1804_v23 = vpop.f32.mrf.mxu2 }
 0x25e   : > { %v1758_v44 = vpop.f32.mrf.mxu0 }
 0x264   : > { %v1778_v18 = vpop.f32.mrf.mxu3 }
 0x265   : > { %v1824_v38 = vpop.f32.mrf.mxu1  ;;  %v1847_v15 = vpop.f32.mrf.mxu2  ;;  %v1779_v5 = vadd.f32 %v1778_v18, %v1755_v11 }
 0x266   : > { %v1870_v63 = vpop.f32.mrf.mxu0  ;;  %v1848_v36 = vadd.f32 %v1847_v15, %v1824_v38 }
 0x267   : > { %v1802_v9 = vadd.f32 %v1801_v21, %v1779_v5 }
 0x268   : > { %v1871_v41 = vadd.f32 %v1870_v63, %v1848_v36 }
 0x269   : > { %v1886_v25 = vrot.slane %v1802_v9, 3 }
 0x26a   : > { %v1893_v33 = vrot.slane %v1871_v41, 4 }
 0x26c   : > { %v1781_v1 = vpop.f32.mrf.mxu3 }
 0x26d   : > { %v1782_v58 = vadd.f32 %v1781_v1, %v1758_v44  ;;  %v1827_v34 = vpop.f32.mrf.mxu1  ;;  %v1850_v24 = vpop.f32.mrf.mxu2 }
 0x26e   : > { %v1851_v59 = vadd.f32 %v1850_v24, %v1827_v34  ;;  %v1873_v10 = vpop.f32.mrf.mxu0 }
 0x26f   : > { %v1805_v61 = vadd.f32 %v1804_v23, %v1782_v58 }
 0x270   : > { %v1874_v42 = vadd.f32 %v1873_v10, %v1851_v59 }
 0x271   : > { %v1887_v13 = vrot.slane %v1805_v61, 3 }
 0x272   : > { %v1894_v55 = vrot.slane %v1874_v42, 4 }
 0x273   : > { %v1888_v45 = vsel %vm743_vm2, %v1886_v25, %v1887_v13 }
 0x274   : > { %v1890_v0 = vadd.f32 %v1888_v45, %v1883_v56  ;;  %v1895_v22 = vsel %vm381_vm0, %v1893_v33, %v1894_v55 }
 0x276   : > { %v1897_v47 = vadd.f32 %v1895_v22, %v1890_v0 }
 0x278   : > { %v1898_v29 = vadd.f32 %v2267_v30, %v1897_v47 }
 0x27a   : > { %v1900_v32 = vmin.f32 %v1898_v29, 0.0  ;;  %vm1899_vm6 = vcmp.gt.f32.partialorder %v1898_v29, 0.0 }
 0x27c   : > { %v1901_v62 = vmul.f32 1.442695, %v1900_v32 }
 0x27e   : > { %2075 = vpow2.f32 %v1901_v62 }
 0x284   : > { %v2076_v37 = vpop.eup %2075 }
 0x285   : > { %v2055_v17 = vadd.f32 -1.0, %v2076_v37 }
 0x287   : > { %v1904_v54 = vsel %vm1899_vm6, %v1898_v29, %v2055_v17 }
 0x288   : > { %2056 = vst [vmem:[%s4591_s16 + $0x18] sm:$0x3f] %v1904_v54 }
 0x289 PF: > { %s13_s12 = sadd.s32 1, %s2274_s12  }
 0x28a   : > { %p10_p4 = scmp.ge.s32.totalorder %s13_s12, 4  }
 0x28c   :  { %12 = sbr.rel (!%p10_p4) target bundleno = 1 (0x1), region = 68 }

</bundles_post_ra>
